<compile_context>
chip_gen: v7x
topology: tpu7x:2x2x1
jax: 0.10.0
libtpu: 0.0.40
codegen_flags: <defaults>
</compile_context>

<pallas_src>
import jax
import jax.numpy as jnp
import numpy as np
from jax import lax
from jax.experimental import pallas as pl
from jax.experimental.pallas import tpu as pltpu

NUM_MID = 18     # number of Conv_Relu_Block layers
C = 64           # hidden channels
KIN = 16         # input-conv im2col K (9 real taps, zero-padded to 16)


def vdsr_kernel(pat_ref, x_ref, w_in_ref, w_mid_ref, w_out_ref, o_ref,
                strip_ref):
    # pat_ref:   (1, H*W, KIN)          bf16  im2col patches of the 1-ch input
    # x_ref:     (1, H, W)              f32   original image (global residual)
    # w_in_ref:  (KIN, C)               bf16  input conv weights (t = dy*3+dx)
    # w_mid_ref: (NUM_MID, 3, 3*C, C)   bf16  mid conv weights, (dx, ci) merged
    # w_out_ref: (3, 3*C)               f32   output conv weights, (dx, ci) merged
    # o_ref:     (1, H, W)              f32
    # strip_ref: (2, H+2, W, 3*C)       bf16  ping-pong dx-im2col activations
    H, W = o_ref.shape[1], o_ref.shape[2]
    bf16 = strip_ref.dtype
    C3 = 3 * C

    # Re-zero only the halo cells of both strip slots every grid step (cheap;
    # interior is fully overwritten each layer).  Doing it every step keeps the
    # kernel correct when the "parallel" batch axis is sharded across
    # TensorCores (per-core scratch may hold stale data).
    zrow = jnp.zeros((2, 1, W, C3), bf16)
    zcol = jnp.zeros((2, H + 2, 1, C), bf16)
    strip_ref[:, 0:1, :, :] = zrow                       # top padded row
    strip_ref[:, H + 1:H + 2, :, :] = zrow               # bottom padded row
    strip_ref[:, :, 0:1, 0:C] = zcol                     # dx=0 slot: left pad
    strip_ref[:, :, W - 1:W, 2 * C:C3] = zcol            # dx=2 slot: right pad

    def store_to_strip(y, s):
        # y: (H, W, C) bf16.  Write the three dx-shifted copies so the next
        # layer's matmul LHS is a free leading-dim (dy) slice of the strip.
        strip_ref[s, 1:H + 1, 1:W, 0:C] = y[:, 0:W - 1, :]        # dx = 0
        strip_ref[s, 1:H + 1, :, C:2 * C] = y                     # dx = 1
        strip_ref[s, 1:H + 1, 0:W - 1, 2 * C:C3] = y[:, 1:W, :]   # dx = 2

    # ---- input conv (1 -> 64) + ReLU: one (H*W, KIN) x (KIN, C) matmul -----
    y0 = jnp.dot(pat_ref[0], w_in_ref[...],
                 preferred_element_type=jnp.float32)               # (H*W, C)
    store_to_strip(jnp.maximum(y0, 0.0).reshape(H, W, C).astype(bf16), 0)

    # ---- 18 x [Conv(64->64, SAME) + ReLU], ping-pong between the 2 slots ----
    def mid_layer(l, s_src, s_dst):
        acc = jnp.zeros((H * W, C), jnp.float32)
        for dy in range(3):                           # 3 MXU matmuls, K = 192
            lhs = strip_ref[s_src, dy:dy + H].reshape(H * W, C3)
            acc = acc + jnp.dot(lhs, w_mid_ref[l, dy],
                                preferred_element_type=jnp.float32)
        store_to_strip(jnp.maximum(acc, 0.0).reshape(H, W, C).astype(bf16),
                       s_dst)

    @pl.loop(0, NUM_MID // 2)          # 9 iterations, 2 layers each
    def _(i):
        mid_layer(2 * i, 0, 1)         # even layer: slot 0 -> slot 1
        mid_layer(2 * i + 1, 1, 0)     # odd  layer: slot 1 -> slot 0

    # ---- output conv (64 -> 1) + global residual, lane-dense store ---------
    # 3 wide VPU FMAs over (H, W, 192) strip slices + one cross-lane reduce;
    # the (H, W) result is produced directly in the output block's layout.
    acc3 = jnp.zeros((H, W, C3), jnp.float32)
    for dy in range(3):
        a = strip_ref[0, dy:dy + H].astype(jnp.float32)
        acc3 = acc3 + a * w_out_ref[dy]
    res = jnp.sum(acc3, axis=-1)                                   # (H, W)
    o_ref[0] = (x_ref[0] + res).astype(o_ref.dtype)


@jax.jit
def vdsr_forward(x, w_in, w_mid, w_out):
    """x: (N, H, W, 1) f32 NHWC; weights in HWIO. Returns (N, H, W, 1) f32."""
    N, H, W, _ = x.shape
    x2 = x[..., 0]                                                 # (N, H, W)

    # Host-side layout prep (no math): im2col of the single-channel input and
    # weight repacking for the in-kernel matmul layouts.
    xpad = jnp.pad(x2, ((0, 0), (1, 1), (1, 1)))
    taps = [xpad[:, dy:dy + H, dx:dx + W]
            for dy in range(3) for dx in range(3)]                 # t = dy*3+dx
    pat = jnp.stack(taps, axis=-1).reshape(N, H * W, 9)
    pat = jnp.pad(pat, ((0, 0), (0, 0), (0, KIN - 9))).astype(jnp.bfloat16)

    w_in_r = jnp.pad(w_in.reshape(9, C),
                     ((0, KIN - 9), (0, 0))).astype(jnp.bfloat16)      # (16, 64)
    w_mid_r = w_mid.reshape(NUM_MID, 3, 3 * C, C).astype(jnp.bfloat16)
    w_out_r = w_out[..., 0].reshape(3, 3 * C).astype(jnp.float32)      # (3, 192)

    out = pl.pallas_call(
        vdsr_kernel,
        out_shape=jax.ShapeDtypeStruct((N, H, W), jnp.float32),
        grid_spec=pltpu.PrefetchScalarGridSpec(
            num_scalar_prefetch=0,
            grid=(N,),
            in_specs=[
                pl.BlockSpec((1, H * W, KIN), lambda n: (n, 0, 0)),
                pl.BlockSpec((1, H, W), lambda n: (n, 0, 0)),
                pl.BlockSpec((KIN, C), lambda n: (0, 0)),
                pl.BlockSpec((NUM_MID, 3, 3 * C, C), lambda n: (0, 0, 0, 0)),
                pl.BlockSpec((3, 3 * C), lambda n: (0, 0)),
            ],
            out_specs=pl.BlockSpec((1, H, W), lambda n: (n, 0, 0)),
            scratch_shapes=[
                pltpu.VMEM((2, H + 2, W, 3 * C), jnp.bfloat16),  # ping-pong strip
            ],
        ),
        compiler_params=pltpu.CompilerParams(
            dimension_semantics=("parallel",),      # megacore-shard the batch
            vmem_limit_bytes=48 << 20,              # < v7x 64 MiB/core physical
        ),
    )(pat, x2, w_in_r, w_mid_r, w_out_r)
    return out[..., None]                                          # back to NHWC


# ---------------- pure-JAX f32 reference (for correctness check) ------------
def _conv_ref(x, w):
    return lax.conv_general_dilated(
        x, w, window_strides=(1, 1), padding="SAME",
        dimension_numbers=("NHWC", "HWIO", "NHWC"))


def vdsr_ref(x, w_in, w_mid, w_out):
    r = jax.nn.relu(_conv_ref(x, w_in))
    for layer in range(NUM_MID):
        r = jax.nn.relu(_conv_ref(r, w_mid[layer]))
    return x + _conv_ref(r, w_out)


# ---------------- deterministic kaiming-uniform init (HWIO) -----------------
def kaiming_uniform(key, shape):
    # shape = (kh, kw, cin, cout); fan_in = kh*kw*cin, bound = sqrt(6/fan_in)
    fan_in = shape[0] * shape[1] * shape[2]
    bound = float(np.sqrt(6.0 / fan_in))
    return jax.random.uniform(key, shape, jnp.float32, -bound, bound)


if __name__ == "__main__":
    key = jax.random.PRNGKey(0)
    kx, kin, kmid, kout = jax.random.split(key, 4)

    N, H, W = 2, 16, 16
    x = jax.random.normal(kx, (N, H, W, 1), jnp.float32)

    w_in = kaiming_uniform(kin, (3, 3, 1, C))
    mid_keys = jax.random.split(kmid, NUM_MID)
    w_mid = jnp.stack([kaiming_uniform(k, (3, 3, C, C)) for k in mid_keys])
    w_out = kaiming_uniform(kout, (3, 3, C, 1))

    out = jax.block_until_ready(vdsr_forward(x, w_in, w_mid, w_out))
    ref = jax.block_until_ready(vdsr_ref(x, w_in, w_mid, w_out))

    # bf16 matmul operands / bf16 activation storage (f32 accumulation) over a
    # 20-conv stack vs. a pure-f32 reference -> loosened tolerance.
    np.testing.assert_allclose(np.asarray(out), np.asarray(ref),
                               rtol=5e-2, atol=1e-1)
    print("KERNEL_OK")
</pallas_src>

<mosaic_0001>
module attributes {stable_mosaic.version = 11 : i64} {
  func.func @vdsr_kernel(%arg0: i32, %arg1: memref<1x256x16xbf16, #tpu.memory_space<vmem>>, %arg2: memref<1x16x16xf32, #tpu.memory_space<vmem>>, %arg3: memref<16x64xbf16, #tpu.memory_space<vmem>>, %arg4: memref<18x3x192x64xbf16, #tpu.memory_space<vmem>>, %arg5: memref<3x192xf32, #tpu.memory_space<vmem>>, %arg6: memref<1x16x16xf32, #tpu.memory_space<vmem>>, %arg7: memref<2x18x16x192xbf16, #tpu.memory_space<vmem>>) attributes {dimension_semantics = [#tpu.dimension_semantics<parallel>], iteration_bounds = array<i64: 2>, scalar_prefetch = 0 : i64, scratch_operands = 1 : i64, tpu.core_type = #tpu.core_type<tc>, window_params = [{transform_indices = @transform_0, window_bounds = array<i64: 1, 256, 16>}, {transform_indices = @transform_1, window_bounds = array<i64: 1, 16, 16>}, {pipeline_mode = #tpu.pipeline_mode<synchronous>, transform_indices = @transform_2, window_bounds = array<i64: 16, 64>}, {pipeline_mode = #tpu.pipeline_mode<synchronous>, transform_indices = @transform_3, window_bounds = array<i64: 18, 3, 192, 64>}, {pipeline_mode = #tpu.pipeline_mode<synchronous>, transform_indices = @transform_4, window_bounds = array<i64: 3, 192>}, {transform_indices = @transform_5, window_bounds = array<i64: 1, 16, 16>}]} {
    %cst = arith.constant 0.000000e+00 : bf16
    %0 = vector.broadcast %cst : bf16 to vector<2x1x16x192xbf16>
    %cst_0 = arith.constant 0.000000e+00 : bf16
    %1 = vector.broadcast %cst_0 : bf16 to vector<2x18x1x64xbf16>
    %c0 = arith.constant 0 : index
    %c0_1 = arith.constant 0 : index
    %c0_2 = arith.constant 0 : index
    %c0_3 = arith.constant 0 : index
    %2 = vector.load %arg7[%c0, %c0_1, %c0_2, %c0_3] : memref<2x18x16x192xbf16, #tpu.memory_space<vmem>>, vector<2x1x16x192xbf16>
    tpu.vector_store %arg7[%c0, %c0_1, %c0_2, %c0_3], %0 {strides = array<i32>} : memref<2x18x16x192xbf16, #tpu.memory_space<vmem>>, vector<2x1x16x192xbf16>,
    %c0_4 = arith.constant 0 : index
    %c17 = arith.constant 17 : index
    %c0_5 = arith.constant 0 : index
    %c0_6 = arith.constant 0 : index
    %3 = vector.load %arg7[%c0_4, %c17, %c0_5, %c0_6] : memref<2x18x16x192xbf16, #tpu.memory_space<vmem>>, vector<2x1x16x192xbf16>
    tpu.vector_store %arg7[%c0_4, %c17, %c0_5, %c0_6], %0 {strides = array<i32>} : memref<2x18x16x192xbf16, #tpu.memory_space<vmem>>, vector<2x1x16x192xbf16>,
    %c0_7 = arith.constant 0 : index
    %c0_8 = arith.constant 0 : index
    %c0_9 = arith.constant 0 : index
    %c0_10 = arith.constant 0 : index
    %4 = vector.load %arg7[%c0_7, %c0_8, %c0_9, %c0_10] : memref<2x18x16x192xbf16, #tpu.memory_space<vmem>>, vector<2x18x1x64xbf16>
    tpu.vector_store %arg7[%c0_7, %c0_8, %c0_9, %c0_10], %1 {strides = array<i32>} : memref<2x18x16x192xbf16, #tpu.memory_space<vmem>>, vector<2x18x1x64xbf16>,
    %c0_11 = arith.constant 0 : index
    %c0_12 = arith.constant 0 : index
    %c15 = arith.constant 15 : index
    %c128 = arith.constant 128 : index
    %5 = vector.load %arg7[%c0_11, %c0_12, %c15, %c128] : memref<2x18x16x192xbf16, #tpu.memory_space<vmem>>, vector<2x18x1x64xbf16>
    tpu.vector_store %arg7[%c0_11, %c0_12, %c15, %c128], %1 {strides = array<i32>} : memref<2x18x16x192xbf16, #tpu.memory_space<vmem>>, vector<2x18x1x64xbf16>,
    %c0_13 = arith.constant 0 : index
    %c0_14 = arith.constant 0 : index
    %c0_15 = arith.constant 0 : index
    %6 = vector.load %arg1[%c0_13, %c0_14, %c0_15] : memref<1x256x16xbf16, #tpu.memory_space<vmem>>, vector<1x256x16xbf16>
    %7 = vector.shape_cast %6 : vector<1x256x16xbf16> to vector<256x16xbf16>
    %c0_16 = arith.constant 0 : index
    %c0_17 = arith.constant 0 : index
    %8 = vector.load %arg3[%c0_16, %c0_17] : memref<16x64xbf16, #tpu.memory_space<vmem>>, vector<16x64xbf16>
    %cst_18 = arith.constant dense<0.000000e+00> : vector<256x64xf32>
    %9 = tpu.matmul %7, %8, %cst_18 {dimension_numbers = #tpu.dot_dimension_numbers<[1], [0], [0], [1], [0, 0, 1, 1], [], []>} : vector<256x16xbf16>, vector<16x64xbf16>, vector<256x64xf32> -> vector<256x64xf32>
    %cst_19 = arith.constant 0.000000e+00 : f32
    %10 = vector.broadcast %cst_19 : f32 to vector<256x64xf32>
    %11 = arith.maximumf %9, %10 : vector<256x64xf32>
    %12 = vector.shape_cast %11 : vector<256x64xf32> to vector<16x16x64xf32>
    %13 = arith.truncf %12 : vector<16x16x64xf32> to vector<16x16x64xbf16>
    %14 = vector.extract_strided_slice %13 {offsets = [0, 0, 0], sizes = [16, 15, 64], strides = [1, 1, 1]} : vector<16x16x64xbf16> to vector<16x15x64xbf16>
    %c0_20 = arith.constant 0 : index
    %c1 = arith.constant 1 : index
    %c1_21 = arith.constant 1 : index
    %c0_22 = arith.constant 0 : index
    %15 = vector.load %arg7[%c0_20, %c1, %c1_21, %c0_22] : memref<2x18x16x192xbf16, #tpu.memory_space<vmem>>, vector<1x16x15x64xbf16>
    %16 = vector.shape_cast %15 : vector<1x16x15x64xbf16> to vector<16x15x64xbf16>
    %17 = vector.shape_cast %14 : vector<16x15x64xbf16> to vector<1x16x15x64xbf16>
    tpu.vector_store %arg7[%c0_20, %c1, %c1_21, %c0_22], %17 {strides = array<i32>} : memref<2x18x16x192xbf16, #tpu.memory_space<vmem>>, vector<1x16x15x64xbf16>,
    %c0_23 = arith.constant 0 : index
    %c1_24 = arith.constant 1 : index
    %c0_25 = arith.constant 0 : index
    %c64 = arith.constant 64 : index
    %18 = vector.load %arg7[%c0_23, %c1_24, %c0_25, %c64] : memref<2x18x16x192xbf16, #tpu.memory_space<vmem>>, vector<1x16x16x64xbf16>
    %19 = vector.shape_cast %18 : vector<1x16x16x64xbf16> to vector<16x16x64xbf16>
    %20 = vector.shape_cast %13 : vector<16x16x64xbf16> to vector<1x16x16x64xbf16>
    tpu.vector_store %arg7[%c0_23, %c1_24, %c0_25, %c64], %20 {strides = array<i32>} : memref<2x18x16x192xbf16, #tpu.memory_space<vmem>>, vector<1x16x16x64xbf16>,
    %21 = vector.extract_strided_slice %13 {offsets = [0, 1, 0], sizes = [16, 15, 64], strides = [1, 1, 1]} : vector<16x16x64xbf16> to vector<16x15x64xbf16>
    %c0_26 = arith.constant 0 : index
    %c1_27 = arith.constant 1 : index
    %c0_28 = arith.constant 0 : index
    %c128_29 = arith.constant 128 : index
    %22 = vector.load %arg7[%c0_26, %c1_27, %c0_28, %c128_29] : memref<2x18x16x192xbf16, #tpu.memory_space<vmem>>, vector<1x16x15x64xbf16>
    %23 = vector.shape_cast %22 : vector<1x16x15x64xbf16> to vector<16x15x64xbf16>
    %24 = vector.shape_cast %21 : vector<16x15x64xbf16> to vector<1x16x15x64xbf16>
    tpu.vector_store %arg7[%c0_26, %c1_27, %c0_28, %c128_29], %24 {strides = array<i32>} : memref<2x18x16x192xbf16, #tpu.memory_space<vmem>>, vector<1x16x15x64xbf16>,
    %c0_i32 = arith.constant 0 : i32
    %c9_i32 = arith.constant 9 : i32
    %25 = arith.addi %c0_i32, %c9_i32 : i32
    %c1_i32 = arith.constant 1 : i32
    scf.for %arg8 = %c0_i32 to %25 step %c1_i32  : i32 {
      %c1_i32_56 = arith.constant 1 : i32
      %61 = arith.muli %arg8, %c1_i32_56 : i32
      %c0_i32_57 = arith.constant 0 : i32
      %62 = arith.addi %c0_i32_57, %61 : i32
      %c2_i32 = arith.constant 2 : i32
      %63 = arith.muli %c2_i32, %62 : i32
      %cst_58 = arith.constant 0.000000e+00 : f32
      %64 = vector.broadcast %cst_58 : f32 to vector<256x64xf32>
      %c0_59 = arith.constant 0 : index
      %c0_60 = arith.constant 0 : index
      %c0_61 = arith.constant 0 : index
      %c0_62 = arith.constant 0 : index
      %65 = vector.load %arg7[%c0_59, %c0_60, %c0_61, %c0_62] : memref<2x18x16x192xbf16, #tpu.memory_space<vmem>>, vector<1x16x16x192xbf16>
      %66 = vector.shape_cast %65 : vector<1x16x16x192xbf16> to vector<16x16x192xbf16>
      %67 = vector.shape_cast %66 : vector<16x16x192xbf16> to vector<256x192xbf16>
      %68 = arith.index_cast %63 : i32 to index
      %c0_63 = arith.constant 0 : index
      %c0_64 = arith.constant 0 : index
      %c0_65 = arith.constant 0 : index
      %69 = vector.load %arg4[%68, %c0_63, %c0_64, %c0_65] : memref<18x3x192x64xbf16, #tpu.memory_space<vmem>>, vector<1x1x192x64xbf16>
      %70 = vector.shape_cast %69 : vector<1x1x192x64xbf16> to vector<192x64xbf16>
      %cst_66 = arith.constant dense<0.000000e+00> : vector<256x64xf32>
      %71 = tpu.matmul %67, %70, %cst_66 {dimension_numbers = #tpu.dot_dimension_numbers<[1], [0], [0], [1], [0, 0, 1, 1], [], []>} : vector<256x192xbf16>, vector<192x64xbf16>, vector<256x64xf32> -> vector<256x64xf32>
      %72 = arith.addf %64, %71 : vector<256x64xf32>
      %c0_67 = arith.constant 0 : index
      %c1_68 = arith.constant 1 : index
      %c0_69 = arith.constant 0 : index
      %c0_70 = arith.constant 0 : index
      %73 = vector.load %arg7[%c0_67, %c1_68, %c0_69, %c0_70] : memref<2x18x16x192xbf16, #tpu.memory_space<vmem>>, vector<1x16x16x192xbf16>
      %74 = vector.shape_cast %73 : vector<1x16x16x192xbf16> to vector<16x16x192xbf16>
      %75 = vector.shape_cast %74 : vector<16x16x192xbf16> to vector<256x192xbf16>
      %76 = arith.index_cast %63 : i32 to index
      %c1_71 = arith.constant 1 : index
      %c0_72 = arith.constant 0 : index
      %c0_73 = arith.constant 0 : index
      %77 = vector.load %arg4[%76, %c1_71, %c0_72, %c0_73] : memref<18x3x192x64xbf16, #tpu.memory_space<vmem>>, vector<1x1x192x64xbf16>
      %78 = vector.shape_cast %77 : vector<1x1x192x64xbf16> to vector<192x64xbf16>
      %cst_74 = arith.constant dense<0.000000e+00> : vector<256x64xf32>
      %79 = tpu.matmul %75, %78, %cst_74 {dimension_numbers = #tpu.dot_dimension_numbers<[1], [0], [0], [1], [0, 0, 1, 1], [], []>} : vector<256x192xbf16>, vector<192x64xbf16>, vector<256x64xf32> -> vector<256x64xf32>
      %80 = arith.addf %72, %79 : vector<256x64xf32>
      %c0_75 = arith.constant 0 : index
      %c2_76 = arith.constant 2 : index
      %c0_77 = arith.constant 0 : index
      %c0_78 = arith.constant 0 : index
      %81 = vector.load %arg7[%c0_75, %c2_76, %c0_77, %c0_78] : memref<2x18x16x192xbf16, #tpu.memory_space<vmem>>, vector<1x16x16x192xbf16>
      %82 = vector.shape_cast %81 : vector<1x16x16x192xbf16> to vector<16x16x192xbf16>
      %83 = vector.shape_cast %82 : vector<16x16x192xbf16> to vector<256x192xbf16>
      %84 = arith.index_cast %63 : i32 to index
      %c2_79 = arith.constant 2 : index
      %c0_80 = arith.constant 0 : index
      %c0_81 = arith.constant 0 : index
      %85 = vector.load %arg4[%84, %c2_79, %c0_80, %c0_81] : memref<18x3x192x64xbf16, #tpu.memory_space<vmem>>, vector<1x1x192x64xbf16>
      %86 = vector.shape_cast %85 : vector<1x1x192x64xbf16> to vector<192x64xbf16>
      %cst_82 = arith.constant dense<0.000000e+00> : vector<256x64xf32>
      %87 = tpu.matmul %83, %86, %cst_82 {dimension_numbers = #tpu.dot_dimension_numbers<[1], [0], [0], [1], [0, 0, 1, 1], [], []>} : vector<256x192xbf16>, vector<192x64xbf16>, vector<256x64xf32> -> vector<256x64xf32>
      %88 = arith.addf %80, %87 : vector<256x64xf32>
      %cst_83 = arith.constant 0.000000e+00 : f32
      %89 = vector.broadcast %cst_83 : f32 to vector<256x64xf32>
      %90 = arith.maximumf %88, %89 : vector<256x64xf32>
      %91 = vector.shape_cast %90 : vector<256x64xf32> to vector<16x16x64xf32>
      %92 = arith.truncf %91 : vector<16x16x64xf32> to vector<16x16x64xbf16>
      %93 = vector.extract_strided_slice %92 {offsets = [0, 0, 0], sizes = [16, 15, 64], strides = [1, 1, 1]} : vector<16x16x64xbf16> to vector<16x15x64xbf16>
      %c1_84 = arith.constant 1 : index
      %c1_85 = arith.constant 1 : index
      %c1_86 = arith.constant 1 : index
      %c0_87 = arith.constant 0 : index
      %94 = vector.load %arg7[%c1_84, %c1_85, %c1_86, %c0_87] : memref<2x18x16x192xbf16, #tpu.memory_space<vmem>>, vector<1x16x15x64xbf16>
      %95 = vector.shape_cast %94 : vector<1x16x15x64xbf16> to vector<16x15x64xbf16>
      %96 = vector.shape_cast %93 : vector<16x15x64xbf16> to vector<1x16x15x64xbf16>
      tpu.vector_store %arg7[%c1_84, %c1_85, %c1_86, %c0_87], %96 {strides = array<i32>} : memref<2x18x16x192xbf16, #tpu.memory_space<vmem>>, vector<1x16x15x64xbf16>,
      %c1_88 = arith.constant 1 : index
      %c1_89 = arith.constant 1 : index
      %c0_90 = arith.constant 0 : index
      %c64_91 = arith.constant 64 : index
      %97 = vector.load %arg7[%c1_88, %c1_89, %c0_90, %c64_91] : memref<2x18x16x192xbf16, #tpu.memory_space<vmem>>, vector<1x16x16x64xbf16>
      %98 = vector.shape_cast %97 : vector<1x16x16x64xbf16> to vector<16x16x64xbf16>
      %99 = vector.shape_cast %92 : vector<16x16x64xbf16> to vector<1x16x16x64xbf16>
      tpu.vector_store %arg7[%c1_88, %c1_89, %c0_90, %c64_91], %99 {strides = array<i32>} : memref<2x18x16x192xbf16, #tpu.memory_space<vmem>>, vector<1x16x16x64xbf16>,
      %100 = vector.extract_strided_slice %92 {offsets = [0, 1, 0], sizes = [16, 15, 64], strides = [1, 1, 1]} : vector<16x16x64xbf16> to vector<16x15x64xbf16>
      %c1_92 = arith.constant 1 : index
      %c1_93 = arith.constant 1 : index
      %c0_94 = arith.constant 0 : index
      %c128_95 = arith.constant 128 : index
      %101 = vector.load %arg7[%c1_92, %c1_93, %c0_94, %c128_95] : memref<2x18x16x192xbf16, #tpu.memory_space<vmem>>, vector<1x16x15x64xbf16>
      %102 = vector.shape_cast %101 : vector<1x16x15x64xbf16> to vector<16x15x64xbf16>
      %103 = vector.shape_cast %100 : vector<16x15x64xbf16> to vector<1x16x15x64xbf16>
      tpu.vector_store %arg7[%c1_92, %c1_93, %c0_94, %c128_95], %103 {strides = array<i32>} : memref<2x18x16x192xbf16, #tpu.memory_space<vmem>>, vector<1x16x15x64xbf16>,
      %c2_i32_96 = arith.constant 2 : i32
      %104 = arith.muli %c2_i32_96, %62 : i32
      %c1_i32_97 = arith.constant 1 : i32
      %105 = arith.addi %104, %c1_i32_97 : i32
      %cst_98 = arith.constant 0.000000e+00 : f32
      %106 = vector.broadcast %cst_98 : f32 to vector<256x64xf32>
      %c1_99 = arith.constant 1 : index
      %c0_100 = arith.constant 0 : index
      %c0_101 = arith.constant 0 : index
      %c0_102 = arith.constant 0 : index
      %107 = vector.load %arg7[%c1_99, %c0_100, %c0_101, %c0_102] : memref<2x18x16x192xbf16, #tpu.memory_space<vmem>>, vector<1x16x16x192xbf16>
      %108 = vector.shape_cast %107 : vector<1x16x16x192xbf16> to vector<16x16x192xbf16>
      %109 = vector.shape_cast %108 : vector<16x16x192xbf16> to vector<256x192xbf16>
      %110 = arith.index_cast %105 : i32 to index
      %c0_103 = arith.constant 0 : index
      %c0_104 = arith.constant 0 : index
      %c0_105 = arith.constant 0 : index
      %111 = vector.load %arg4[%110, %c0_103, %c0_104, %c0_105] : memref<18x3x192x64xbf16, #tpu.memory_space<vmem>>, vector<1x1x192x64xbf16>
      %112 = vector.shape_cast %111 : vector<1x1x192x64xbf16> to vector<192x64xbf16>
      %cst_106 = arith.constant dense<0.000000e+00> : vector<256x64xf32>
      %113 = tpu.matmul %109, %112, %cst_106 {dimension_numbers = #tpu.dot_dimension_numbers<[1], [0], [0], [1], [0, 0, 1, 1], [], []>} : vector<256x192xbf16>, vector<192x64xbf16>, vector<256x64xf32> -> vector<256x64xf32>
      %114 = arith.addf %106, %113 : vector<256x64xf32>
      %c1_107 = arith.constant 1 : index
      %c1_108 = arith.constant 1 : index
      %c0_109 = arith.constant 0 : index
      %c0_110 = arith.constant 0 : index
      %115 = vector.load %arg7[%c1_107, %c1_108, %c0_109, %c0_110] : memref<2x18x16x192xbf16, #tpu.memory_space<vmem>>, vector<1x16x16x192xbf16>
      %116 = vector.shape_cast %115 : vector<1x16x16x192xbf16> to vector<16x16x192xbf16>
      %117 = vector.shape_cast %116 : vector<16x16x192xbf16> to vector<256x192xbf16>
      %118 = arith.index_cast %105 : i32 to index
      %c1_111 = arith.constant 1 : index
      %c0_112 = arith.constant 0 : index
      %c0_113 = arith.constant 0 : index
      %119 = vector.load %arg4[%118, %c1_111, %c0_112, %c0_113] : memref<18x3x192x64xbf16, #tpu.memory_space<vmem>>, vector<1x1x192x64xbf16>
      %120 = vector.shape_cast %119 : vector<1x1x192x64xbf16> to vector<192x64xbf16>
      %cst_114 = arith.constant dense<0.000000e+00> : vector<256x64xf32>
      %121 = tpu.matmul %117, %120, %cst_114 {dimension_numbers = #tpu.dot_dimension_numbers<[1], [0], [0], [1], [0, 0, 1, 1], [], []>} : vector<256x192xbf16>, vector<192x64xbf16>, vector<256x64xf32> -> vector<256x64xf32>
      %122 = arith.addf %114, %121 : vector<256x64xf32>
      %c1_115 = arith.constant 1 : index
      %c2_116 = arith.constant 2 : index
      %c0_117 = arith.constant 0 : index
      %c0_118 = arith.constant 0 : index
      %123 = vector.load %arg7[%c1_115, %c2_116, %c0_117, %c0_118] : memref<2x18x16x192xbf16, #tpu.memory_space<vmem>>, vector<1x16x16x192xbf16>
      %124 = vector.shape_cast %123 : vector<1x16x16x192xbf16> to vector<16x16x192xbf16>
      %125 = vector.shape_cast %124 : vector<16x16x192xbf16> to vector<256x192xbf16>
      %126 = arith.index_cast %105 : i32 to index
      %c2_119 = arith.constant 2 : index
      %c0_120 = arith.constant 0 : index
      %c0_121 = arith.constant 0 : index
      %127 = vector.load %arg4[%126, %c2_119, %c0_120, %c0_121] : memref<18x3x192x64xbf16, #tpu.memory_space<vmem>>, vector<1x1x192x64xbf16>
      %128 = vector.shape_cast %127 : vector<1x1x192x64xbf16> to vector<192x64xbf16>
      %cst_122 = arith.constant dense<0.000000e+00> : vector<256x64xf32>
      %129 = tpu.matmul %125, %128, %cst_122 {dimension_numbers = #tpu.dot_dimension_numbers<[1], [0], [0], [1], [0, 0, 1, 1], [], []>} : vector<256x192xbf16>, vector<192x64xbf16>, vector<256x64xf32> -> vector<256x64xf32>
      %130 = arith.addf %122, %129 : vector<256x64xf32>
      %cst_123 = arith.constant 0.000000e+00 : f32
      %131 = vector.broadcast %cst_123 : f32 to vector<256x64xf32>
      %132 = arith.maximumf %130, %131 : vector<256x64xf32>
      %133 = vector.shape_cast %132 : vector<256x64xf32> to vector<16x16x64xf32>
      %134 = arith.truncf %133 : vector<16x16x64xf32> to vector<16x16x64xbf16>
      %135 = vector.extract_strided_slice %134 {offsets = [0, 0, 0], sizes = [16, 15, 64], strides = [1, 1, 1]} : vector<16x16x64xbf16> to vector<16x15x64xbf16>
      %c0_124 = arith.constant 0 : index
      %c1_125 = arith.constant 1 : index
      %c1_126 = arith.constant 1 : index
      %c0_127 = arith.constant 0 : index
      %136 = vector.load %arg7[%c0_124, %c1_125, %c1_126, %c0_127] : memref<2x18x16x192xbf16, #tpu.memory_space<vmem>>, vector<1x16x15x64xbf16>
      %137 = vector.shape_cast %136 : vector<1x16x15x64xbf16> to vector<16x15x64xbf16>
      %138 = vector.shape_cast %135 : vector<16x15x64xbf16> to vector<1x16x15x64xbf16>
      tpu.vector_store %arg7[%c0_124, %c1_125, %c1_126, %c0_127], %138 {strides = array<i32>} : memref<2x18x16x192xbf16, #tpu.memory_space<vmem>>, vector<1x16x15x64xbf16>,
      %c0_128 = arith.constant 0 : index
      %c1_129 = arith.constant 1 : index
      %c0_130 = arith.constant 0 : index
      %c64_131 = arith.constant 64 : index
      %139 = vector.load %arg7[%c0_128, %c1_129, %c0_130, %c64_131] : memref<2x18x16x192xbf16, #tpu.memory_space<vmem>>, vector<1x16x16x64xbf16>
      %140 = vector.shape_cast %139 : vector<1x16x16x64xbf16> to vector<16x16x64xbf16>
      %141 = vector.shape_cast %134 : vector<16x16x64xbf16> to vector<1x16x16x64xbf16>
      tpu.vector_store %arg7[%c0_128, %c1_129, %c0_130, %c64_131], %141 {strides = array<i32>} : memref<2x18x16x192xbf16, #tpu.memory_space<vmem>>, vector<1x16x16x64xbf16>,
      %142 = vector.extract_strided_slice %134 {offsets = [0, 1, 0], sizes = [16, 15, 64], strides = [1, 1, 1]} : vector<16x16x64xbf16> to vector<16x15x64xbf16>
      %c0_132 = arith.constant 0 : index
      %c1_133 = arith.constant 1 : index
      %c0_134 = arith.constant 0 : index
      %c128_135 = arith.constant 128 : index
      %143 = vector.load %arg7[%c0_132, %c1_133, %c0_134, %c128_135] : memref<2x18x16x192xbf16, #tpu.memory_space<vmem>>, vector<1x16x15x64xbf16>
      %144 = vector.shape_cast %143 : vector<1x16x15x64xbf16> to vector<16x15x64xbf16>
      %145 = vector.shape_cast %142 : vector<16x15x64xbf16> to vector<1x16x15x64xbf16>
      tpu.vector_store %arg7[%c0_132, %c1_133, %c0_134, %c128_135], %145 {strides = array<i32>} : memref<2x18x16x192xbf16, #tpu.memory_space<vmem>>, vector<1x16x15x64xbf16>,
    }
    %c9_i32_30 = arith.constant 9 : i32
    %cst_31 = arith.constant 0.000000e+00 : f32
    %26 = vector.broadcast %cst_31 : f32 to vector<16x16x192xf32>
    %c0_32 = arith.constant 0 : index
    %c0_33 = arith.constant 0 : index
    %c0_34 = arith.constant 0 : index
    %c0_35 = arith.constant 0 : index
    %27 = vector.load %arg7[%c0_32, %c0_33, %c0_34, %c0_35] : memref<2x18x16x192xbf16, #tpu.memory_space<vmem>>, vector<1x16x16x192xbf16>
    %28 = vector.shape_cast %27 : vector<1x16x16x192xbf16> to vector<16x16x192xbf16>
    %29 = arith.extf %28 : vector<16x16x192xbf16> to vector<16x16x192xf32>
    %c0_36 = arith.constant 0 : index
    %c0_37 = arith.constant 0 : index
    %30 = vector.load %arg5[%c0_36, %c0_37] : memref<3x192xf32, #tpu.memory_space<vmem>>, vector<1x192xf32>
    %31 = vector.shape_cast %30 : vector<1x192xf32> to vector<192xf32>
    %32 = vector.shape_cast %31 : vector<192xf32> to vector<1x1x192xf32>
    %33 = vector.broadcast %32 : vector<1x1x192xf32> to vector<16x16x192xf32>
    %34 = arith.mulf %29, %33 : vector<16x16x192xf32>
    %35 = arith.addf %26, %34 : vector<16x16x192xf32>
    %c0_38 = arith.constant 0 : index
    %c1_39 = arith.constant 1 : index
    %c0_40 = arith.constant 0 : index
    %c0_41 = arith.constant 0 : index
    %36 = vector.load %arg7[%c0_38, %c1_39, %c0_40, %c0_41] : memref<2x18x16x192xbf16, #tpu.memory_space<vmem>>, vector<1x16x16x192xbf16>
    %37 = vector.shape_cast %36 : vector<1x16x16x192xbf16> to vector<16x16x192xbf16>
    %38 = arith.extf %37 : vector<16x16x192xbf16> to vector<16x16x192xf32>
    %c1_42 = arith.constant 1 : index
    %c0_43 = arith.constant 0 : index
    %39 = vector.load %arg5[%c1_42, %c0_43] : memref<3x192xf32, #tpu.memory_space<vmem>>, vector<1x192xf32>
    %40 = vector.shape_cast %39 : vector<1x192xf32> to vector<192xf32>
    %41 = vector.shape_cast %40 : vector<192xf32> to vector<1x1x192xf32>
    %42 = vector.broadcast %41 : vector<1x1x192xf32> to vector<16x16x192xf32>
    %43 = arith.mulf %38, %42 : vector<16x16x192xf32>
    %44 = arith.addf %35, %43 : vector<16x16x192xf32>
    %c0_44 = arith.constant 0 : index
    %c2 = arith.constant 2 : index
    %c0_45 = arith.constant 0 : index
    %c0_46 = arith.constant 0 : index
    %45 = vector.load %arg7[%c0_44, %c2, %c0_45, %c0_46] : memref<2x18x16x192xbf16, #tpu.memory_space<vmem>>, vector<1x16x16x192xbf16>
    %46 = vector.shape_cast %45 : vector<1x16x16x192xbf16> to vector<16x16x192xbf16>
    %47 = arith.extf %46 : vector<16x16x192xbf16> to vector<16x16x192xf32>
    %c2_47 = arith.constant 2 : index
    %c0_48 = arith.constant 0 : index
    %48 = vector.load %arg5[%c2_47, %c0_48] : memref<3x192xf32, #tpu.memory_space<vmem>>, vector<1x192xf32>
    %49 = vector.shape_cast %48 : vector<1x192xf32> to vector<192xf32>
    %50 = vector.shape_cast %49 : vector<192xf32> to vector<1x1x192xf32>
    %51 = vector.broadcast %50 : vector<1x1x192xf32> to vector<16x16x192xf32>
    %52 = arith.mulf %47, %51 : vector<16x16x192xf32>
    %53 = arith.addf %44, %52 : vector<16x16x192xf32>
    %cst_49 = arith.constant dense<0.000000e+00> : vector<16x16xf32>
    %54 = vector.multi_reduction <add>, %53, %cst_49 [2] : vector<16x16x192xf32> to vector<16x16xf32>
    %c0_50 = arith.constant 0 : index
    %c0_51 = arith.constant 0 : index
    %c0_52 = arith.constant 0 : index
    %55 = vector.load %arg2[%c0_50, %c0_51, %c0_52] : memref<1x16x16xf32, #tpu.memory_space<vmem>>, vector<1x16x16xf32>
    %56 = vector.shape_cast %55 : vector<1x16x16xf32> to vector<16x16xf32>
    %57 = arith.addf %56, %54 : vector<16x16xf32>
    %c0_53 = arith.constant 0 : index
    %c0_54 = arith.constant 0 : index
    %c0_55 = arith.constant 0 : index
    %58 = vector.load %arg6[%c0_53, %c0_54, %c0_55] : memref<1x16x16xf32, #tpu.memory_space<vmem>>, vector<1x16x16xf32>
    %59 = vector.shape_cast %58 : vector<1x16x16xf32> to vector<16x16xf32>
    %60 = vector.shape_cast %57 : vector<16x16xf32> to vector<1x16x16xf32>
    tpu.vector_store %arg6[%c0_53, %c0_54, %c0_55], %60 {strides = array<i32>} : memref<1x16x16xf32, #tpu.memory_space<vmem>>, vector<1x16x16xf32>,
    return
  }
  func.func @transform_0(%arg0: i32) -> (i32, i32, i32) {
    %c0_i32 = arith.constant 0 : i32
    %c0_i32_0 = arith.constant 0 : i32
    %c0_i32_1 = arith.constant 0 : i32
    return %arg0, %c0_i32, %c0_i32_0 : i32, i32, i32
  }
  func.func @transform_1(%arg0: i32) -> (i32, i32, i32) {
    %c0_i32 = arith.constant 0 : i32
    %c0_i32_0 = arith.constant 0 : i32
    %c0_i32_1 = arith.constant 0 : i32
    return %arg0, %c0_i32, %c0_i32_0 : i32, i32, i32
  }
  func.func @transform_2(%arg0: i32) -> (i32, i32) {
    %c0_i32 = arith.constant 0 : i32
    %c0_i32_0 = arith.constant 0 : i32
    %c0_i32_1 = arith.constant 0 : i32
    return %c0_i32, %c0_i32_0 : i32, i32
  }
  func.func @transform_3(%arg0: i32) -> (i32, i32, i32, i32) {
    %c0_i32 = arith.constant 0 : i32
    %c0_i32_0 = arith.constant 0 : i32
    %c0_i32_1 = arith.constant 0 : i32
    %c0_i32_2 = arith.constant 0 : i32
    %c0_i32_3 = arith.constant 0 : i32
    return %c0_i32, %c0_i32_0, %c0_i32_1, %c0_i32_2 : i32, i32, i32, i32
  }
  func.func @transform_4(%arg0: i32) -> (i32, i32) {
    %c0_i32 = arith.constant 0 : i32
    %c0_i32_0 = arith.constant 0 : i32
    %c0_i32_1 = arith.constant 0 : i32
    return %c0_i32, %c0_i32_0 : i32, i32
  }
  func.func @transform_5(%arg0: i32) -> (i32, i32, i32) {
    %c0_i32 = arith.constant 0 : i32
    %c0_i32_0 = arith.constant 0 : i32
    %c0_i32_1 = arith.constant 0 : i32
    return %arg0, %c0_i32, %c0_i32_0 : i32, i32, i32
  }
}

</mosaic_0001>

<bundles_post_ra>
// kernel: squeeze.3
= control target key start
LH: loop header
LB: loop body
LE: loop exit
PB: predicated region body
PF: predicated region fallthrough
CT: control target
= control target key end

     0   :  { %vm17_vm0 = vcmask 523264   ;;  %s20_s12 = smov 3  ;;  %s26_s13 = smov 3  ;;  %vm35_vm1 = vcmask 1048064   ;;  %s79_s0 = inlined_call_operand.vmem [shape: f32[3,3,64], index: 0, kind: input, shape index: {}]   ;;  %s80_s1 = inlined_call_operand.vmem [shape: f32[3,192], index: 1, kind: output, shape index: {}]  }
   0x1   :  { %v49_v0 = vld [vmem:[%s79_s0 + $0x8] sm:$0xf]  ;;  %v50_v1 = vld [vmem:[%s79_s0 + $0x4] sm:$0xf]  ;;  %v13_v2 = vld [vmem:[%s79_s0] sm:$0xf] }
   0x2   :  { %8 = vst [vmem:[#allocation1 + $0x10] sm:$0xf] %v49_v0  ;;  %12 = vst [vmem:[#allocation1 + $0x8] sm:$0xf] %v50_v1  ;;  %s15_s0 = smov 3  ;;  %s53_s14 = smov 64  }
   0x3   :  { %14 = vst [vmem:[#allocation1] sm:$0xf] %v13_v2 }
   0x9   :  { %v21_v5 = vld [vmem:[#allocation1 + $0x8] ss:$2 sm:%s20_s12]  }
   0xa   :  { %v32_v3 = vld [vmem:[#allocation1 + $0x1] ss:$8 sm:$0x7]   ;;  %v16_v4 = vld [vmem:[#allocation1] ss:$2 sm:%s15_s0]  }
   0xb   :  { %33 = vrot.lane.b32.xlu0 %v32_v3, %s53_s14  ;;  %18 = vst.msk [vmem:[#allocation0] ss:$8 sm:$0x3] %vm17_vm0, %v16_v4   ;;  %v27_v6 = vld [vmem:[#allocation1 + $0x10] ss:$2 sm:%s26_s13]  }
   0xc   :  { %24 = vst.msk [vmem:[#allocation0 + $0x1] ss:$8 sm:$0x3] %vm17_vm0, %v21_v5   ;;  %30 = vst.msk [vmem:[#allocation0 + $0x2] ss:$8 sm:$0x3] %vm17_vm0, %v27_v6  }
  0x13   :  { %v44_v7 = vld [vmem:[#allocation0 + $0x8] sm:$0xf] }
  0x14   :  { %51 = vst [vmem:[%s80_s1 + $0x4] sm:$0xf] %v44_v7 }
  0x7d   :  { %v34_v8 = vpop.permute.xlu0 %33  }
  0x7e   :  { %36 = vst.msk [vmem:[#allocation0] sm:$0x7] %vm35_vm1, %v34_v8  }
  0x85   :  { %v40_v9 = vld [vmem:[#allocation0] sm:$0xf] }
  0x86   :  { %42 = vst [vmem:[%s80_s1] sm:$0xf] %v40_v9 }

// kernel: vdsr_forward.1
= control target key start
LH: loop header
LB: loop body
LE: loop exit
PB: predicated region body
PF: predicated region fallthrough
CT: control target
= control target key end

     0   :  { %10 = vsyncpa [#allocation4], 0  ;;  %s8122_s0 = inlined_call_operand.vmem [shape: bf16[2,256,16], index: 0, kind: input, shape index: {}]   ;;  %s8123_s1 = inlined_call_operand.vmem [shape: f32[2,16,16], index: 1, kind: input, shape index: {}]   ;;  %s8124_s2 = inlined_call_operand.vmem [shape: bf16[16,64], index: 2, kind: input, shape index: {}]   ;;  %s8125_s3 = inlined_call_operand.vmem [shape: bf16[18,3,192,64], index: 3, kind: input, shape index: {}]   ;;  %s8126_s4 = inlined_call_operand.vmem [shape: f32[3,192], index: 4, kind: input, shape index: {}]   ;;  %s8127_s5 = inlined_call_operand.hbm [shape: f32[2,16,16], index: 5, kind: output, shape index: {}]  }
   0x1   :  { %12 = vsyncpa [#allocation4 + $0x1], 0  ;;  %s6208_s18 = smov 0   ;;  %s6210_s19 = smov 0  }
   0x2   :  { %s6212_s20 = smov 0   ;;  %s6214_s21 = smov 0  }
   0x3 LB: > { %s6229_s22 = sadd.s32 4294967295, %s6165_s21   ;;  %s5294_s23 = sadd.s32 4294967294, %s6165_s21   ;;  %s6165_s21 = sphi %s6214_s21, %s8141_s21   ;;  %s6161_s20 = sphi %s6212_s20, %s8140_s20   ;;  %s6157_s19 = sphi %s6210_s19, %s8139_s19   ;;  %s6153_s18 = sphi %s6208_s18, %s8138_s18  }
   0x4   : > { %s6233_s24 = sadd.s32 1, %s6165_s21   ;;  %s140_s25 = sadd.s32 1, %s6161_s20 }
   0x5   : > { %s137_s26 = ssub.s32 %s6165_s21, %s6233_s24  ;;  %p150_p0 = scmp.ne.s32.totalorder %s6161_s20, %s6157_s19 }
   0x6   : > { %p138_p1 = scmp.eq.s32.totalorder %s137_s26, 0  ;;  %p151_p2 = scmp.eq.s32.totalorder %s6229_s22, 1 }
   0x7   : > { %p156_p3 = scmp.ne.s32.totalorder %s6157_s19, %s6153_s18  ;;  %p157_p4 = scmp.eq.s32.totalorder %s5294_s23, 1 }
   0x8   : > { %s6244_s27 = scalar_select %p138_p1, %s6161_s20, %s140_s25  }
   0x9   : > { %p6246_p5 = por %p151_p2, %p150_p0  ;;  %p6250_p6 = por %p157_p4, %p156_p3 }
   0xa   : > { %p5297_p7 = scmp.ge.s32.totalorder %s6165_s21, 1  ;;  %p200_p8 = scmp.lt.s32.totalorder %s6165_s21, 3 }
   0xc   : > { %p201_p9 = pnand %p5297_p7, %p200_p8 }
   0xd   : > { %s230_s30 = sand.u32 (!%p201_p9), 1, %s6157_s19   ;;  %v6010_v0 = vld [vmem:[%s8124_s2] sm:$0xff] (!%p201_p9)   ;;  %p233_p10 = scmp.lt.s32.totalorder (!%p201_p9), %s6229_s22, 1  ;;  %vm596_vm0 = vcmask (!%p201_p9), 130048   ;;  %vm245_vm1 = vcmask (!%p201_p9), 523264   ;;  %vm254_vm2 = vcmask (!%p201_p9), 516096  }
   0xe   : > { %204 = sbr.rel (%p201_p9) target bundleno = 2019 (0x7e3), region = 40  ;;  %s6262_s8 = sshll.u32 (!%p201_p9), %s230_s30, 4  ;;  %5665 = vmatprep.subr.bf16.mxu0 (!%p201_p9), %v6010_v0  ;;  %5699 = vmatprep.subr.bf16.mxu1 (!%p201_p9), %v6010_v0  ;;  %vm255_vm3 = vsmask.f32 (!%p201_p9), 256  ;;  %v6171_v17 = vmov (!%p201_p9), 0   ;;  %vm365_vm5 = vcmask (!%p201_p9), 523271  }
   0xf   : > { %5666 = vmatpush3.bf16.msra.mxu0 (!%p201_p9), %v6010_v0  ;;  %5700 = vmatpush3.bf16.msra.mxu1 (!%p201_p9), %v6010_v0  ;;  %244 = vst [vmem:[#allocation2] sm:$0xff] (!%p201_p9), %v6171_v17  ;;  %246 = vst.msk [vmem:[#allocation2 + $0x8] sm:$0xff] (!%p201_p9), %vm245_vm1, %v6171_v17  ;;  %v314_v19 = vld [vmem:[#allocation2 + $0x130] sm:$0x1] (!%p201_p9)  ;;  %v317_v20 = vld [vmem:[#allocation2 + $0x140] sm:$0x1] (!%p201_p9) }
  0x10   : > { %247 = vst [vmem:[#allocation2 + $0x120] sm:$0xff] (!%p201_p9), %v6171_v17  ;;  %248 = vst.msk [vmem:[#allocation2 + $0x128] sm:$0xff] (!%p201_p9), %vm245_vm1, %v6171_v17  ;;  %v320_v23 = vld [vmem:[#allocation2 + $0x150] sm:$0x1] (!%p201_p9)  ;;  %v323_v24 = vld [vmem:[#allocation2 + $0x160] sm:$0x1] (!%p201_p9) }
  0x11   : > { %250 = vst [vmem:[#allocation2 + $0x110] sm:$0xff] (!%p201_p9), %v6171_v17  ;;  %251 = vst.msk [vmem:[#allocation2 + $0x118] sm:$0xff] (!%p201_p9), %vm245_vm1, %v6171_v17  ;;  %v326_v27 = vld [vmem:[#allocation2 + $0x170] sm:$0x1] (!%p201_p9)  ;;  %v329_v28 = vld [vmem:[#allocation2 + $0x180] sm:$0x1] (!%p201_p9) }
  0x12   : > { %252 = vst [vmem:[#allocation2 + $0x230] sm:$0xff] (!%p201_p9), %v6171_v17  ;;  %253 = vst.msk [vmem:[#allocation2 + $0x238] sm:$0xff] (!%p201_p9), %vm245_vm1, %v6171_v17  ;;  %v332_v31 = vld [vmem:[#allocation2 + $0x190] sm:$0x1] (!%p201_p9)  ;;  %v335_v32 = vld [vmem:[#allocation2 + $0x1a0] sm:$0x1] (!%p201_p9) }
  0x13   : > { %vm6312_vm4 = vmand (!%p201_p9), %vm254_vm2, %vm255_vm3  ;;  %v338_v35 = vld [vmem:[#allocation2 + $0x1b0] sm:$0x1] (!%p201_p9)  ;;  %v341_v36 = vld [vmem:[#allocation2 + $0x1c0] sm:$0x1] (!%p201_p9)  ;;  %vm366_vm6 = vsmask.f32 (!%p201_p9), 7966 }
  0x14   : > { %v315_v21 = vsel (!%p201_p9), %vm6312_vm4, 0, %v314_v19  ;;  %v318_v22 = vsel (!%p201_p9), %vm6312_vm4, 0, %v317_v20  ;;  %v321_v25 = vsel (!%p201_p9), %vm6312_vm4, 0, %v320_v23  ;;  %v324_v26 = vsel (!%p201_p9), %vm6312_vm4, 0, %v323_v24  ;;  %v344_v39 = vld [vmem:[#allocation2 + $0x1d0] sm:$0x1] (!%p201_p9)  ;;  %vm6357_vm7 = vmand (!%p201_p9), %vm365_vm5, %vm366_vm6 }
  0x15   : > { %s234_s9 = scalar_select %p233_p10, %s6229_s22, 1  ;;  %316 = vst [vmem:[#allocation2 + $0x130] sm:$0x1] %v315_v21  ;;  %319 = vst [vmem:[#allocation2 + $0x140] sm:$0x1] %v318_v22  ;;  %v327_v29 = vsel %vm6312_vm4, 0, %v326_v27 }
  0x16   : > { %322 = vst [vmem:[#allocation2 + $0x150] sm:$0x1] %v321_v25  ;;  %325 = vst [vmem:[#allocation2 + $0x160] sm:$0x1] %v324_v26  ;;  %v330_v30 = vsel %vm6312_vm4, 0, %v329_v28  ;;  %v333_v33 = vsel %vm6312_vm4, 0, %v332_v31 }
  0x17   : > { %s5644_s10 = sshll.u32 %s234_s9, 7  ;;  %s5645_s11 = sshll.u32 %s234_s9, 4  ;;  %328 = vst [vmem:[#allocation2 + $0x170] sm:$0x1] %v327_v29  ;;  %331 = vst [vmem:[#allocation2 + $0x180] sm:$0x1] %v330_v30 }
  0x18   : > { %s6269_s14 = scalar_lea.vmem %s8122_s0, %s5644_s10  ;;  %s6274_s17 = scalar_lea.vmem %s8123_s1, %s5645_s11  ;;  %v336_v34 = vsel %vm6312_vm4, 0, %v335_v32  ;;  %334 = vst [vmem:[#allocation2 + $0x190] sm:$0x1] %v333_v33  ;;  %v339_v37 = vsel %vm6312_vm4, 0, %v338_v35  ;;  %v342_v38 = vsel %vm6312_vm4, 0, %v341_v36  ;;  %v345_v41 = vsel %vm6312_vm4, 0, %v344_v39 }
  0x19   : > { %v6011_v1 = vld [vmem:[%s6269_s14] sm:$0xff]   ;;  %v6013_v3 = vld [vmem:[%s6269_s14 + $0x8] sm:$0xff]   ;;  %v6015_v5 = vld [vmem:[%s6269_s14 + $0x10] sm:$0xff]   ;;  %337 = vst [vmem:[#allocation2 + $0x1a0] sm:$0x1] %v336_v34  ;;  %s6172_s23 = smov 64  }
  0x1a   : > { %v6012_v2 = vld [vmem:[%s6269_s14 + $0x40] sm:$0xff]   ;;  %5667 = vmatprep.mubr.msk.bf16.mxu0 %vm596_vm0, %v6011_v1  ;;  %v6014_v4 = vld [vmem:[%s6269_s14 + $0x48] sm:$0xff]   ;;  %v6016_v6 = vld [vmem:[%s6269_s14 + $0x50] sm:$0xff]   ;;  %340 = vst [vmem:[#allocation2 + $0x1b0] sm:$0x1] %v339_v37  ;;  %vm1098_vm12 = vcmask 1048064  }
  0x1b   : > { %5683 = vmatprep.mubr.msk.bf16.mxu1 %vm596_vm0, %v6012_v2  ;;  %5668 = vmatmul.mubr.msk.bf16.vlgmr.msra.gmra.mrb[0].mxu0 %vm596_vm0, %v6013_v3  ;;  %v6017_v7 = vld [vmem:[%s6269_s14 + $0x18] sm:$0xff]   ;;  %v6019_v9 = vld [vmem:[%s6269_s14 + $0x20] sm:$0xff]   ;;  %v6020_v11 = vld [vmem:[%s6269_s14 + $0x28] sm:$0xff]   ;;  %343 = vst [vmem:[#allocation2 + $0x1c0] sm:$0x1] %v342_v38  ;;  %s6629_s25 = scalar_lea.vmem [#allocation3], %s6262_s8 }
  0x1c   : > { %5684 = vmatmul.mubr.msk.bf16.vlgmr.msra.gmra.mrb[0].mxu1 %vm596_vm0, %v6014_v4  ;;  %5671 = vmatprep.mubr.msk.bf16.mxu0 %vm596_vm0, %v6015_v5  ;;  %v6018_v8 = vld [vmem:[%s6269_s14 + $0x58] sm:$0xff]   ;;  %v6021_v10 = vld [vmem:[%s6269_s14 + $0x60] sm:$0xff]   ;;  %v6022_v12 = vld [vmem:[%s6269_s14 + $0x68] sm:$0xff]   ;;  %346 = vst [vmem:[#allocation2 + $0x1d0] sm:$0x1] %v345_v41  ;;  %s6631_s26 = smov 0  }
  0x1d   : > { %5687 = vmatprep.mubr.msk.bf16.mxu1 %vm596_vm0, %v6016_v6  ;;  %v6023_v13 = vld [vmem:[%s6269_s14 + $0x30] sm:$0xff]   ;;  %v6024_v15 = vld [vmem:[%s6269_s14 + $0x38] sm:$0xff]   ;;  %v347_v40 = vld [vmem:[#allocation2 + $0x1e0] sm:$0x1]  ;;  %vm1163_vm8 = vsmask.f32 7424 }
  0x1e   : > { %v6025_v14 = vld [vmem:[%s6269_s14 + $0x70] sm:$0xff]   ;;  %v6026_v16 = vld [vmem:[%s6269_s14 + $0x78] sm:$0xff]   ;;  %v348_v42 = vsel %vm6312_vm4, 0, %v347_v40  ;;  %v353_v44 = vld [vmem:[#allocation2 + $0x200] sm:$0x1] }
  0x1f   : > { %v350_v43 = vld [vmem:[#allocation2 + $0x1f0] sm:$0x1]  ;;  %v425_v45 = vld [vmem:[#allocation2 + $0x138] sm:$0x80]  ;;  %v257_v46 = vld [vmem:[#allocation2] sm:$0x1] }
  0x20   : > { %v308_v47 = vld [vmem:[#allocation2 + $0x110] sm:$0x1]  ;;  %v311_v48 = vld [vmem:[#allocation2 + $0x120] sm:$0x1]  ;;  %349 = vst [vmem:[#allocation2 + $0x1e0] sm:$0x1] %v348_v42  ;;  %vm6469_vm10 = vmand %vm245_vm1, %vm1163_vm8 }
  0x21   : > { %v428_v49 = vld [vmem:[#allocation2 + $0x148] sm:$0x80]  ;;  %v431_v50 = vld [vmem:[#allocation2 + $0x158] sm:$0x80]  ;;  %v258_v52 = vsel %vm6312_vm4, 0, %v257_v46  ;;  %v309_v53 = vsel %vm6312_vm4, 0, %v308_v47 }
  0x22   : > { %v434_v51 = vld [vmem:[#allocation2 + $0x168] sm:$0x80]  ;;  %v312_v54 = vsel %vm6312_vm4, 0, %v311_v48  ;;  %v351_v55 = vsel %vm6312_vm4, 0, %v350_v43  ;;  %v356_v56 = vld [vmem:[#allocation2 + $0x210] sm:$0x1] }
  0x23   : > { %5672 = vmatmul.mubr.msk.bf16.gmra.mrb[4].mxu0 %vm596_vm0, %v6017_v7  ;;  %v437_v57 = vld [vmem:[#allocation2 + $0x178] sm:$0x80]  ;;  %v440_v58 = vld [vmem:[#allocation2 + $0x188] sm:$0x80]  ;;  %259 = vst [vmem:[#allocation2] sm:$0x1] %v258_v52 }
  0x24   : > { %5688 = vmatmul.mubr.msk.bf16.gmra.mrb[4].mxu1 %vm596_vm0, %v6018_v8  ;;  %5675 = vmatprep.mubr.msk.bf16.mxu0 %vm596_vm0, %v6019_v9  ;;  %v443_v59 = vld [vmem:[#allocation2 + $0x198] sm:$0x80]  ;;  %v446_v60 = vld [vmem:[#allocation2 + $0x1a8] sm:$0x80]  ;;  %310 = vst [vmem:[#allocation2 + $0x110] sm:$0x1] %v309_v53 }
  0x25   : > { %5691 = vmatprep.mubr.msk.bf16.mxu1 %vm596_vm0, %v6021_v10  ;;  %313 = vst [vmem:[#allocation2 + $0x120] sm:$0x1] %v312_v54  ;;  %352 = vst [vmem:[#allocation2 + $0x1f0] sm:$0x1] %v351_v55  ;;  %v354_v61 = vsel %vm6312_vm4, 0, %v353_v44  ;;  %v357_v62 = vsel %vm6312_vm4, 0, %v356_v56 }
  0x26   : > { %v359_v63 = vld [vmem:[#allocation2 + $0x220] sm:$0x1]  ;;  %v362_v0 = vld [vmem:[#allocation2 + $0x230] sm:$0x1]  ;;  %v449_v1 = vld [vmem:[#allocation2 + $0x1b8] sm:$0x80] }
  0x27   : > { %v452_v2 = vld [vmem:[#allocation2 + $0x1c8] sm:$0x80]  ;;  %v455_v3 = vld [vmem:[#allocation2 + $0x1d8] sm:$0x80]  ;;  %355 = vst [vmem:[#allocation2 + $0x200] sm:$0x1] %v354_v61 }
  0x28   : > { %v458_v4 = vld [vmem:[#allocation2 + $0x1e8] sm:$0x80]  ;;  %358 = vst [vmem:[#allocation2 + $0x210] sm:$0x1] %v357_v62  ;;  %v360_v5 = vsel %vm6312_vm4, 0, %v359_v63  ;;  %v363_v6 = vsel %vm6312_vm4, 0, %v362_v0 }
  0x29   : > { %v368_v7 = vld [vmem:[#allocation2 + $0x8] sm:$0x80]  ;;  %v461_v8 = vld [vmem:[#allocation2 + $0x1f8] sm:$0x80]  ;;  %361 = vst [vmem:[#allocation2 + $0x220] sm:$0x1] %v360_v5 }
  0x2a   : > { %v464_v9 = vld [vmem:[#allocation2 + $0x208] sm:$0x80]  ;;  %v467_v10 = vld [vmem:[#allocation2 + $0x218] sm:$0x80]  ;;  %364 = vst [vmem:[#allocation2 + $0x230] sm:$0x1] %v363_v6 }
  0x2b   : > { %5676 = vmatmul.mubr.msk.bf16.gmra.mrb[8].mxu0 %vm596_vm0, %v6020_v11  ;;  %v470_v11 = vld [vmem:[#allocation2 + $0x228] sm:$0x80]  ;;  %v426_v20 = vsel %vm6357_vm7, 0, %v425_v45  ;;  %v429_v22 = vsel %vm6357_vm7, 0, %v428_v49  ;;  %v432_v23 = vsel %vm6357_vm7, 0, %v431_v50  ;;  %v435_v24 = vsel %vm6357_vm7, 0, %v434_v51 }
  0x2c   : > { %5692 = vmatmul.mubr.msk.bf16.gmra.mrb[8].mxu1 %vm596_vm0, %v6022_v12  ;;  %5679 = vmatprep.mubr.msk.bf16.mxu0 %vm596_vm0, %v6023_v13  ;;  %v374_v13 = vld [vmem:[#allocation2 + $0x28] sm:$0x80]  ;;  %427 = vst [vmem:[#allocation2 + $0x138] sm:$0x80] %v426_v20  ;;  %v473_v25 = vld [vmem:[#allocation2 + $0x238] sm:$0x80] }
  0x2d   : > { %5695 = vmatprep.mubr.msk.bf16.mxu1 %vm596_vm0, %v6025_v14  ;;  %v419_v14 = vld [vmem:[#allocation2 + $0x118] sm:$0x80]  ;;  %v422_v19 = vld [vmem:[#allocation2 + $0x128] sm:$0x80]  ;;  %430 = vst [vmem:[#allocation2 + $0x148] sm:$0x80] %v429_v22 }
  0x2e   : > { %v420_v17 = vsel %vm6357_vm7, 0, %v419_v14  ;;  %v423_v21 = vsel %vm6357_vm7, 0, %v422_v19  ;;  %433 = vst [vmem:[#allocation2 + $0x158] sm:$0x80] %v432_v23  ;;  %436 = vst [vmem:[#allocation2 + $0x168] sm:$0x80] %v435_v24 }
  0x2f   : > { %421 = vst [vmem:[#allocation2 + $0x118] sm:$0x80] %v420_v17  ;;  %424 = vst [vmem:[#allocation2 + $0x128] sm:$0x80] %v423_v21  ;;  %v438_v26 = vsel %vm6357_vm7, 0, %v437_v57  ;;  %v441_v27 = vsel %vm6357_vm7, 0, %v440_v58 }
  0x30   : > { %v444_v28 = vsel %vm6357_vm7, 0, %v443_v59  ;;  %v447_v29 = vsel %vm6357_vm7, 0, %v446_v60  ;;  %v398_v30 = vld [vmem:[#allocation2 + $0xa8] sm:$0x80]  ;;  %439 = vst [vmem:[#allocation2 + $0x178] sm:$0x80] %v438_v26 }
  0x31   : > { %442 = vst [vmem:[#allocation2 + $0x188] sm:$0x80] %v441_v27  ;;  %445 = vst [vmem:[#allocation2 + $0x198] sm:$0x80] %v444_v28  ;;  %v450_v31 = vsel %vm6357_vm7, 0, %v449_v1  ;;  %v453_v32 = vsel %vm6357_vm7, 0, %v452_v2 }
  0x32   : > { %448 = vst [vmem:[#allocation2 + $0x1a8] sm:$0x80] %v447_v29  ;;  %v456_v33 = vsel %vm6357_vm7, 0, %v455_v3  ;;  %v459_v34 = vsel %vm6357_vm7, 0, %v458_v4  ;;  %v371_v35 = vld [vmem:[#allocation2 + $0x18] sm:$0x80] }
  0x33   : > { %5680 = vmatmul.mubr.msk.bf16.gmra.mrb[12].mxu0 %vm596_vm0, %v6024_v15  ;;  %v369_v15 = vsel %vm6357_vm7, 0, %v368_v7  ;;  %451 = vst [vmem:[#allocation2 + $0x1b8] sm:$0x80] %v450_v31  ;;  %454 = vst [vmem:[#allocation2 + $0x1c8] sm:$0x80] %v453_v32  ;;  %v462_v36 = vsel %vm6357_vm7, 0, %v461_v8 }
  0x34   : > { %5696 = vmatmul.mubr.msk.bf16.gmra.mrb[12].mxu1 %vm596_vm0, %v6026_v16  ;;  %v375_v16 = vsel %vm6357_vm7, 0, %v374_v13  ;;  %370 = vst [vmem:[#allocation2 + $0x8] sm:$0x80] %v369_v15  ;;  %457 = vst [vmem:[#allocation2 + $0x1d8] sm:$0x80] %v456_v33  ;;  %v465_v37 = vsel %vm6357_vm7, 0, %v464_v9 }
  0x35   : > { %376 = vst [vmem:[#allocation2 + $0x28] sm:$0x80] %v375_v16  ;;  %460 = vst [vmem:[#allocation2 + $0x1e8] sm:$0x80] %v459_v34  ;;  %v468_v38 = vsel %vm6357_vm7, 0, %v467_v10  ;;  %v471_v39 = vsel %vm6357_vm7, 0, %v470_v11 }
  0x36   : > { %v395_v40 = vld [vmem:[#allocation2 + $0x98] sm:$0x80]  ;;  %463 = vst [vmem:[#allocation2 + $0x1f8] sm:$0x80] %v462_v36  ;;  %466 = vst [vmem:[#allocation2 + $0x208] sm:$0x80] %v465_v37 }
  0x37   : > { %469 = vst [vmem:[#allocation2 + $0x218] sm:$0x80] %v468_v38  ;;  %472 = vst [vmem:[#allocation2 + $0x228] sm:$0x80] %v471_v39  ;;  %v474_v41 = vsel %vm6357_vm7, 0, %v473_v25  ;;  %v399_v42 = vsel %vm6357_vm7, 0, %v398_v30 }
  0x38   : > { %v372_v43 = vsel %vm6357_vm7, 0, %v371_v35  ;;  %v396_v44 = vsel %vm6357_vm7, 0, %v395_v40  ;;  %475 = vst [vmem:[#allocation2 + $0x238] sm:$0x80] %v474_v41  ;;  %400 = vst [vmem:[#allocation2 + $0xa8] sm:$0x80] %v399_v42 }
  0x39   : > { %373 = vst [vmem:[#allocation2 + $0x18] sm:$0x80] %v372_v43  ;;  %397 = vst [vmem:[#allocation2 + $0x98] sm:$0x80] %v396_v44  ;;  %v380_v45 = vld [vmem:[#allocation2 + $0x48] sm:$0x80] }
  0x3a   : > { %v404_v46 = vld [vmem:[#allocation2 + $0xc8] sm:$0x80]  ;;  %v401_v47 = vld [vmem:[#allocation2 + $0xb8] sm:$0x80]  ;;  %v381_v48 = vsel %vm6357_vm7, 0, %v380_v45 }
  0x3b   : > { %v405_v49 = vsel %vm6357_vm7, 0, %v404_v46  ;;  %v402_v50 = vsel %vm6357_vm7, 0, %v401_v47  ;;  %v377_v51 = vld [vmem:[#allocation2 + $0x38] sm:$0x80]  ;;  %382 = vst [vmem:[#allocation2 + $0x48] sm:$0x80] %v381_v48 }
  0x3c   : > { %406 = vst [vmem:[#allocation2 + $0xc8] sm:$0x80] %v405_v49  ;;  %403 = vst [vmem:[#allocation2 + $0xb8] sm:$0x80] %v402_v50  ;;  %v378_v52 = vsel %vm6357_vm7, 0, %v377_v51 }
  0x3d   : > { %v386_v53 = vld [vmem:[#allocation2 + $0x68] sm:$0x80]  ;;  %v263_v54 = vld [vmem:[#allocation2 + $0x20] sm:$0x1]  ;;  %379 = vst [vmem:[#allocation2 + $0x38] sm:$0x80] %v378_v52 }
  0x3e   : > { %v387_v55 = vsel %vm6357_vm7, 0, %v386_v53  ;;  %v264_v56 = vsel %vm6312_vm4, 0, %v263_v54  ;;  %v287_v57 = vld [vmem:[#allocation2 + $0xa0] sm:$0x1]  ;;  %v383_v58 = vld [vmem:[#allocation2 + $0x58] sm:$0x80] }
  0x3f   : > { %388 = vst [vmem:[#allocation2 + $0x68] sm:$0x80] %v387_v55  ;;  %265 = vst [vmem:[#allocation2 + $0x20] sm:$0x1] %v264_v56  ;;  %v288_v59 = vsel %vm6312_vm4, 0, %v287_v57  ;;  %v384_v61 = vsel %vm6357_vm7, 0, %v383_v58 }
  0x40   : > { %v260_v60 = vld [vmem:[#allocation2 + $0x10] sm:$0x1]  ;;  %289 = vst [vmem:[#allocation2 + $0xa0] sm:$0x1] %v288_v59  ;;  %385 = vst [vmem:[#allocation2 + $0x58] sm:$0x80] %v384_v61 }
  0x41   : > { %v261_v62 = vsel %vm6312_vm4, 0, %v260_v60  ;;  %v284_v63 = vld [vmem:[#allocation2 + $0x90] sm:$0x1]  ;;  %v410_v0 = vld [vmem:[#allocation2 + $0xe8] sm:$0x80] }
  0x42   : > { %v407_v1 = vld [vmem:[#allocation2 + $0xd8] sm:$0x80]  ;;  %262 = vst [vmem:[#allocation2 + $0x10] sm:$0x1] %v261_v62  ;;  %v285_v2 = vsel %vm6312_vm4, 0, %v284_v63  ;;  %v411_v3 = vsel %vm6357_vm7, 0, %v410_v0 }
  0x43   : > { %v408_v4 = vsel %vm6357_vm7, 0, %v407_v1  ;;  %286 = vst [vmem:[#allocation2 + $0x90] sm:$0x1] %v285_v2  ;;  %412 = vst [vmem:[#allocation2 + $0xe8] sm:$0x80] %v411_v3  ;;  %v1168_v59 = vld [vmem:[#allocation2 + $0x28] sm:$0xff] }
  0x44   : > { %409 = vst [vmem:[#allocation2 + $0xd8] sm:$0x80] %v408_v4  ;;  %v392_v5 = vld [vmem:[#allocation2 + $0x88] sm:$0x80]  ;;  %v389_v7 = vld [vmem:[#allocation2 + $0x78] sm:$0x80] }
  0x45   : > { %v393_v6 = vsel %vm6357_vm7, 0, %v392_v5  ;;  %v390_v8 = vsel %vm6357_vm7, 0, %v389_v7  ;;  %v269_v9 = vld [vmem:[#allocation2 + $0x40] sm:$0x1]  ;;  %v290_v11 = vld [vmem:[#allocation2 + $0xb0] sm:$0x1] }
  0x46   : > { %394 = vst [vmem:[#allocation2 + $0x88] sm:$0x80] %v393_v6  ;;  %391 = vst [vmem:[#allocation2 + $0x78] sm:$0x80] %v390_v8  ;;  %v270_v10 = vsel %vm6312_vm4, 0, %v269_v9  ;;  %v291_v14 = vsel %vm6312_vm4, 0, %v290_v11 }
  0x47   : > { %v293_v13 = vld [vmem:[#allocation2 + $0xc0] sm:$0x1]  ;;  %271 = vst [vmem:[#allocation2 + $0x40] sm:$0x1] %v270_v10  ;;  %v266_v16 = vld [vmem:[#allocation2 + $0x30] sm:$0x1] }
  0x48   : > { %v294_v15 = vsel %vm6312_vm4, 0, %v293_v13  ;;  %v416_v17 = vld [vmem:[#allocation2 + $0x108] sm:$0x80]  ;;  %v413_v19 = vld [vmem:[#allocation2 + $0xf8] sm:$0x80]  ;;  %v267_v20 = vsel %vm6312_vm4, 0, %v266_v16 }
  0x49   : > { %292 = vst [vmem:[#allocation2 + $0xb0] sm:$0x1] %v291_v14  ;;  %295 = vst [vmem:[#allocation2 + $0xc0] sm:$0x1] %v294_v15  ;;  %v417_v21 = vsel %vm6357_vm7, 0, %v416_v17  ;;  %v414_v22 = vsel %vm6357_vm7, 0, %v413_v19 }
  0x4a   : > { %268 = vst [vmem:[#allocation2 + $0x30] sm:$0x1] %v267_v20  ;;  %418 = vst [vmem:[#allocation2 + $0x108] sm:$0x80] %v417_v21  ;;  %v275_v23 = vld [vmem:[#allocation2 + $0x60] sm:$0x1] }
  0x4b   : > { %415 = vst [vmem:[#allocation2 + $0xf8] sm:$0x80] %v414_v22  ;;  %v272_v24 = vld [vmem:[#allocation2 + $0x50] sm:$0x1]  ;;  %v276_v25 = vsel %vm6312_vm4, 0, %v275_v23  ;;  %v1192_v17 = vld [vmem:[#allocation2 + $0xa8] sm:$0xff] }
  0x4c   : > { %v273_v26 = vsel %vm6312_vm4, 0, %v272_v24  ;;  %277 = vst [vmem:[#allocation2 + $0x60] sm:$0x1] %v276_v25  ;;  %v296_v27 = vld [vmem:[#allocation2 + $0xd0] sm:$0x1]  ;;  %v1165_v19 = vld [vmem:[#allocation2 + $0x18] sm:$0xff] }
  0x4d   : > { %274 = vst [vmem:[#allocation2 + $0x50] sm:$0x1] %v273_v26  ;;  %v299_v28 = vld [vmem:[#allocation2 + $0xe0] sm:$0x1]  ;;  %v297_v29 = vsel %vm6312_vm4, 0, %v296_v27 }
  0x4e   : > { %v300_v12 = vsel %vm6312_vm4, 0, %v299_v28  ;;  %298 = vst [vmem:[#allocation2 + $0xd0] sm:$0x1] %v297_v29  ;;  %v281_v30 = vld [vmem:[#allocation2 + $0x80] sm:$0x1]  ;;  %v1189_v28 = vld [vmem:[#allocation2 + $0x98] sm:$0xff] }
  0x4f   : > { %301 = vst [vmem:[#allocation2 + $0xe0] sm:$0x1] %v300_v12  ;;  %v278_v31 = vld [vmem:[#allocation2 + $0x70] sm:$0x1]  ;;  %v282_v32 = vsel %vm6312_vm4, 0, %v281_v30 }
  0x50   : > { %v279_v33 = vsel %vm6312_vm4, 0, %v278_v31  ;;  %283 = vst [vmem:[#allocation2 + $0x80] sm:$0x1] %v282_v32  ;;  %v302_v34 = vld [vmem:[#allocation2 + $0xf0] sm:$0x1] }
  0x51   : > { %280 = vst [vmem:[#allocation2 + $0x70] sm:$0x1] %v279_v33  ;;  %v305_v35 = vld [vmem:[#allocation2 + $0x100] sm:$0x1]  ;;  %v303_v36 = vsel %vm6312_vm4, 0, %v302_v34 }
  0x52   : > { %v306_v37 = vsel %vm6312_vm4, 0, %v305_v35  ;;  %304 = vst [vmem:[#allocation2 + $0xf0] sm:$0x1] %v303_v36  ;;  %vm984_vm9 = vsmask.f32 7938  ;;  %v989_v34 = vld [vmem:[#allocation2 + $0x20] sm:$0xff] }
  0x53   : > { %307 = vst [vmem:[#allocation2 + $0x100] sm:$0x1] %v306_v37  ;;  %vm6480_vm11 = vmand %vm245_vm1, %vm984_vm9  ;;  %v1013_v35 = vld [vmem:[#allocation2 + $0xa0] sm:$0xff] }
  0xee   : > { %v5669_v38 = vpop.f32.mrb[0].mxu0 }
  0xef   : > { %v5685_v39 = vpop.f32.mrb[0].mxu1  ;;  %v679_v40 = vpop.f32.mrb[1].mxu0  ;;  %v808_v44 = vmax.f32 %v5669_v38, 0.0 }
  0xf0   : > { %v824_v41 = vmax.f32 %v5685_v39, 0.0  ;;  %v743_v42 = vpop.f32.mrb[1].mxu1  ;;  %v5670_v43 = vpop.f32.mrb[2].mxu0  ;;  %v806_v49 = vmax.f32 %v679_v40, 0.0  ;;  %v986_v40 = vld [vmem:[#allocation2 + $0x10] sm:$0xff] }
  0xf1   : > { %v822_v45 = vmax.f32 %v743_v42, 0.0  ;;  %v809_v46 = vmax.f32 %v5670_v43, 0.0  ;;  %v5686_v47 = vpop.f32.mrb[2].mxu1  ;;  %v682_v48 = vpop.f32.mrb[3].mxu0 }
  0xf2   : > { %v825_v50 = vmax.f32 %v5686_v47, 0.0  ;;  %v807_v51 = vmax.f32 %v682_v48, 0.0  ;;  %v746_v52 = vpop.f32.mrb[3].mxu1 }
  0xf3   : > { %v839_v53 = vpack.c.bf16 %v809_v46, %v808_v44  ;;  %v823_v18 = vmax.f32 %v746_v52, 0.0 }
  0xf4   : > { %v847_v54 = vpack.c.bf16 %v825_v50, %v824_v41  ;;  %v838_v55 = vpack.c.bf16 %v807_v51, %v806_v49 }
  0xf5   : > { %v862_v56 = vshrl.u32 %v839_v53, 16  ;;  %v865_v57 = vshll.u32 %v839_v53, 16  ;;  %v846_v58 = vpack.c.bf16 %v823_v18, %v822_v45  ;;  %1052 = vrot.lane.b32.xlu0 %v839_v53, %s6172_s23 }
  0xf6   : > { %v918_v60 = vshrl.u32 %v847_v54, 16  ;;  %v921_v61 = vshll.u32 %v847_v54, 16  ;;  %v855_v62 = vshrl.u32 %v838_v55, 16  ;;  %v858_v63 = vshll.u32 %v838_v55, 16  ;;  %v5673_v0 = vpop.f32.mrb[4].mxu0  ;;  %1068 = vrot.lane.b32.xlu1 %v847_v54, %s6172_s23 }
  0xf7   : > { %v864_v1 = vrot.slane %v862_v56, 7  ;;  %v1117_v2 = vrot.slane %v865_v57, 1  ;;  %v911_v3 = vshrl.u32 %v846_v58, 16  ;;  %v914_v4 = vshll.u32 %v846_v58, 16  ;;  %v5689_v5 = vpop.f32.mrb[4].mxu1  ;;  %v695_v6 = vpop.f32.mrb[5].mxu0 }
  0xf8   : > { %v920_v8 = vrot.slane %v918_v60, 7  ;;  %v1133_v9 = vrot.slane %v921_v61, 1  ;;  %v857_v10 = vrot.slane %v855_v62, 7  ;;  %v1115_v11 = vrot.slane %v858_v63, 1  ;;  %v759_v13 = vpop.f32.mrb[5].mxu1  ;;  %v5674_v14 = vpop.f32.mrb[6].mxu0 }
  0xf9   : > { %v867_v15 = vor.u32 %v865_v57, %v864_v1  ;;  %v1118_v16 = vor.u32 %v1117_v2, %v862_v56  ;;  %v913_v20 = vrot.slane %v911_v3, 7  ;;  %v1131_v21 = vrot.slane %v914_v4, 1  ;;  %v5690_v22 = vpop.f32.mrb[6].mxu1  ;;  %1050 = vrot.lane.b32.xlu0 %v838_v55, %s6172_s23  ;;  %v698_v23 = vpop.f32.mrb[7].mxu0 }
  0xfa   : > { %v923_v24 = vor.u32 %v921_v61, %v920_v8  ;;  %v1134_v25 = vor.u32 %v1133_v9, %v918_v60  ;;  %v860_v26 = vor.u32 %v858_v63, %v857_v10  ;;  %v1116_v27 = vor.u32 %v1115_v11, %v855_v62  ;;  %v762_v29 = vpop.f32.mrb[7].mxu1 }
  0xfb   : > { %v1169_v12 = vsel %vm6469_vm10, %v1118_v16, %v1168_v59  ;;  %v6476_v30 = vor.u32 %v914_v4, %v913_v20  ;;  %v1132_v31 = vor.u32 %v1131_v21, %v911_v3  ;;  %v812_v32 = vmax.f32 %v5673_v0, 0.0 }
  0xfc   : > { %1170 = vst [vmem:[#allocation2 + $0x28] sm:$0xff] %v1169_v12  ;;  %v1193_v36 = vsel %vm6469_vm10, %v1134_v25, %v1192_v17  ;;  %v1166_v37 = vsel %vm6469_vm10, %v1116_v27, %v1165_v19  ;;  %v828_v38 = vmax.f32 %v5689_v5, 0.0  ;;  %v810_v39 = vmax.f32 %v695_v6, 0.0  ;;  %v1195_v25 = vld [vmem:[#allocation2 + $0xb8] sm:$0xff] }
  0xfd   : > { %1194 = vst [vmem:[#allocation2 + $0xa8] sm:$0xff] %v1193_v36  ;;  %1167 = vst [vmem:[#allocation2 + $0x18] sm:$0xff] %v1166_v37  ;;  %v1190_v41 = vsel %vm6469_vm10, %v1132_v31, %v1189_v28  ;;  %v826_v42 = vmax.f32 %v759_v13, 0.0  ;;  %v813_v43 = vmax.f32 %v5674_v14, 0.0  ;;  %v829_v44 = vmax.f32 %v5690_v22, 0.0  ;;  %1066 = vrot.lane.b32.xlu0 %v846_v58, %s6172_s23  ;;  %v1174_v14 = vld [vmem:[#allocation2 + $0x48] sm:$0xff] }
  0xfe   : > { %1191 = vst [vmem:[#allocation2 + $0x98] sm:$0xff] %v1190_v41  ;;  %v827_v45 = vmax.f32 %v762_v29, 0.0  ;;  %v811_v46 = vmax.f32 %v698_v23, 0.0  ;;  %v6491_v47 = vpop.f32.mrb[8].mxu0  ;;  %v990_v48 = vsel %vm6480_vm11, %v867_v15, %v989_v34  ;;  %v1014_v49 = vsel %vm6480_vm11, %v923_v24, %v1013_v35  ;;  %v1198_v15 = vld [vmem:[#allocation2 + $0xc8] sm:$0xff] }
  0xff   : > { %v841_v50 = vpack.c.bf16 %v813_v43, %v812_v32  ;;  %v849_v51 = vpack.c.bf16 %v829_v44, %v828_v38  ;;  %v816_v52 = vmax.f32 %v6491_v47, 0.0  ;;  %v6498_v53 = vpop.f32.mrb[9].mxu0  ;;  %v6500_v18 = vpop.f32.mrb[8].mxu1  ;;  %991 = vst [vmem:[#allocation2 + $0x20] sm:$0xff] %v990_v48  ;;  %1015 = vst [vmem:[#allocation2 + $0xa0] sm:$0xff] %v1014_v49  ;;  %v987_v54 = vsel %vm6480_vm11, %v860_v26, %v986_v40  ;;  %v1171_v26 = vld [vmem:[#allocation2 + $0x38] sm:$0xff] }
 0x100   : > { %v848_v55 = vpack.c.bf16 %v827_v45, %v826_v42  ;;  %v840_v56 = vpack.c.bf16 %v811_v46, %v810_v39  ;;  %v814_v57 = vmax.f32 %v6498_v53, 0.0  ;;  %v5678_v58 = vpop.f32.mrb[10].mxu0  ;;  %v832_v59 = vmax.f32 %v6500_v18, 0.0  ;;  %v6506_v60 = vpop.f32.mrb[9].mxu1  ;;  %988 = vst [vmem:[#allocation2 + $0x10] sm:$0xff] %v987_v54 }
 0x101   : > { %v876_v61 = vshrl.u32 %v841_v50, 16  ;;  %v879_v62 = vshll.u32 %v841_v50, 16  ;;  %v932_v63 = vshrl.u32 %v849_v51, 16  ;;  %v935_v0 = vshll.u32 %v849_v51, 16  ;;  %1056 = vrot.lane.b32.xlu1 %v841_v50, %s6172_s23  ;;  %v714_v1 = vpop.f32.mrb[11].mxu0  ;;  %v5694_v2 = vpop.f32.mrb[10].mxu1 }
 0x102   : > { %v925_v3 = vshrl.u32 %v848_v55, 16  ;;  %v928_v4 = vshll.u32 %v848_v55, 16  ;;  %v869_v5 = vshrl.u32 %v840_v56, 16  ;;  %v872_v6 = vshll.u32 %v840_v56, 16  ;;  %1070 = vrot.lane.b32.xlu0 %v848_v55, %s6172_s23  ;;  %v778_v8 = vpop.f32.mrb[11].mxu1 }
 0x103   : > { %v878_v9 = vrot.slane %v876_v61, 7  ;;  %v1121_v10 = vrot.slane %v879_v62, 1  ;;  %v934_v11 = vrot.slane %v932_v63, 7  ;;  %v1137_v13 = vrot.slane %v935_v0, 1 }
 0x104   : > { %v927_v16 = vrot.slane %v925_v3, 7  ;;  %v1135_v17 = vrot.slane %v928_v4, 1  ;;  %v871_v19 = vrot.slane %v869_v5, 7  ;;  %v1119_v20 = vrot.slane %v872_v6, 1 }
 0x105   : > { %v6510_v21 = vor.u32 %v879_v62, %v878_v9  ;;  %v1122_v22 = vor.u32 %v1121_v10, %v876_v61  ;;  %v6512_v23 = vor.u32 %v935_v0, %v934_v11  ;;  %v1138_v24 = vor.u32 %v1137_v13, %v932_v63  ;;  %1072 = vrot.lane.b32.xlu1 %v849_v51, %s6172_s23  ;;  %v1177_v11 = vld [vmem:[#allocation2 + $0x58] sm:$0xff]  ;;  %v1204_v13 = vld [vmem:[#allocation2 + $0xe8] sm:$0xff] }
 0x106   : > { %v6515_v27 = vor.u32 %v928_v4, %v927_v16  ;;  %v1136_v28 = vor.u32 %v1135_v17, %v925_v3  ;;  %v6517_v29 = vor.u32 %v872_v6, %v871_v19  ;;  %v1120_v12 = vor.u32 %v1119_v20, %v869_v5  ;;  %v6519_v31 = vpop.f32.mrb[12].mxu0 }
 0x107   : > { %v1175_v32 = vsel %vm6469_vm10, %v1122_v22, %v1174_v14  ;;  %v1199_v34 = vsel %vm6469_vm10, %v1138_v24, %v1198_v15  ;;  %v817_v35 = vmax.f32 %v5678_v58, 0.0  ;;  %v830_v36 = vmax.f32 %v6506_v60, 0.0  ;;  %v6526_v37 = vpop.f32.mrb[13].mxu0  ;;  %v6528_v38 = vpop.f32.mrb[12].mxu1  ;;  %v1201_v22 = vld [vmem:[#allocation2 + $0xd8] sm:$0xff] }
 0x108   : > { %1176 = vst [vmem:[#allocation2 + $0x48] sm:$0xff] %v1175_v32  ;;  %1200 = vst [vmem:[#allocation2 + $0xc8] sm:$0xff] %v1199_v34  ;;  %v1196_v39 = vsel %vm6469_vm10, %v1136_v28, %v1195_v25  ;;  %v1172_v40 = vsel %vm6469_vm10, %v1120_v12, %v1171_v26  ;;  %v815_v41 = vmax.f32 %v714_v1, 0.0  ;;  %v833_v42 = vmax.f32 %v5694_v2, 0.0  ;;  %v5682_v43 = vpop.f32.mrb[14].mxu0  ;;  %v6534_v44 = vpop.f32.mrb[13].mxu1 }
 0x109   : > { %1197 = vst [vmem:[#allocation2 + $0xb8] sm:$0xff] %v1196_v39  ;;  %1173 = vst [vmem:[#allocation2 + $0x38] sm:$0xff] %v1172_v40  ;;  %v843_v45 = vpack.c.bf16 %v817_v35, %v816_v52  ;;  %v831_v46 = vmax.f32 %v778_v8, 0.0  ;;  %1054 = vrot.lane.b32.xlu1 %v840_v56, %s6172_s23  ;;  %v820_v48 = vmax.f32 %v6519_v31, 0.0  ;;  %v818_v49 = vmax.f32 %v6526_v37, 0.0  ;;  %v730_v50 = vpop.f32.mrb[15].mxu0 }
 0x10a   : > { %v5698_v51 = vpop.f32.mrb[14].mxu1  ;;  %v842_v18 = vpack.c.bf16 %v815_v41, %v814_v57  ;;  %v851_v54 = vpack.c.bf16 %v833_v42, %v832_v59  ;;  %v821_v55 = vmax.f32 %v5682_v43, 0.0  ;;  %v836_v58 = vmax.f32 %v6528_v38, 0.0  ;;  %v1180_v59 = vld [vmem:[#allocation2 + $0x68] sm:$0xff]  ;;  %v1010_v12 = vld [vmem:[#allocation2 + $0x90] sm:$0xff]  ;;  %v995_v31 = vld [vmem:[#allocation2 + $0x40] sm:$0xff] }
 0x10b   : > { %v794_v60 = vpop.f32.mrb[15].mxu1  ;;  %v890_v61 = vshrl.u32 %v843_v45, 16  ;;  %v893_v47 = vshll.u32 %v843_v45, 16  ;;  %v850_v52 = vpack.c.bf16 %v831_v46, %v830_v36  ;;  %v834_v62 = vmax.f32 %v6534_v44, 0.0  ;;  %v1016_v37 = vld [vmem:[#allocation2 + $0xb0] sm:$0xff] }
 0x10c   : > { %v883_v56 = vshrl.u32 %v842_v18, 16  ;;  %v886_v63 = vshll.u32 %v842_v18, 16  ;;  %v946_v0 = vshrl.u32 %v851_v54, 16  ;;  %v949_v1 = vshll.u32 %v851_v54, 16  ;;  %1058 = vrot.lane.b32.xlu0 %v842_v18, %s6172_s23 }
 0x10d   : > { %v892_v2 = vrot.slane %v890_v61, 7  ;;  %v1125_v3 = vrot.slane %v893_v47, 1  ;;  %v939_v53 = vshrl.u32 %v850_v52, 16  ;;  %v942_v57 = vshll.u32 %v850_v52, 16  ;;  %1060 = vrot.lane.b32.xlu1 %v843_v45, %s6172_s23 }
 0x10e   : > { %v885_v4 = vrot.slane %v883_v56, 7  ;;  %v1123_v5 = vrot.slane %v886_v63, 1  ;;  %v948_v6 = vrot.slane %v946_v0, 7  ;;  %v1141_v8 = vrot.slane %v949_v1, 1 }
 0x10f   : > { %v6547_v9 = vor.u32 %v893_v47, %v892_v2  ;;  %v1126_v10 = vor.u32 %v1125_v3, %v890_v61  ;;  %v941_v14 = vrot.slane %v939_v53, 7  ;;  %v1139_v15 = vrot.slane %v942_v57, 1  ;;  %v1183_v61 = vld [vmem:[#allocation2 + $0x78] sm:$0xff]  ;;  %v998_v2 = vld [vmem:[#allocation2 + $0x50] sm:$0xff] }
 0x110   : > { %v6549_v16 = vor.u32 %v886_v63, %v885_v4  ;;  %v1124_v17 = vor.u32 %v1123_v5, %v883_v56  ;;  %v6551_v19 = vor.u32 %v949_v1, %v948_v6  ;;  %v1142_v20 = vor.u32 %v1141_v8, %v946_v0  ;;  %1074 = vrot.lane.b32.xlu0 %v850_v52, %s6172_s23  ;;  %v1001_v5 = vld [vmem:[#allocation2 + $0x60] sm:$0xff]  ;;  %v1022_v6 = vld [vmem:[#allocation2 + $0xd0] sm:$0xff] }
 0x111   : > { %v1181_v24 = vsel %vm6469_vm10, %v1126_v10, %v1180_v59  ;;  %v6556_v25 = vor.u32 %v942_v57, %v941_v14  ;;  %v1140_v26 = vor.u32 %v1139_v15, %v939_v53  ;;  %v845_v28 = vpack.c.bf16 %v821_v55, %v820_v48  ;;  %1076 = vrot.lane.b32.xlu1 %v851_v54, %s6172_s23  ;;  %v1207_v59 = vld [vmem:[#allocation2 + $0xf8] sm:$0xff]  ;;  %v1025_v14 = vld [vmem:[#allocation2 + $0xe0] sm:$0xff]  ;;  %v1004_v15 = vld [vmem:[#allocation2 + $0x70] sm:$0xff] }
 0x112   : > { %1182 = vst [vmem:[#allocation2 + $0x68] sm:$0xff] %v1181_v24  ;;  %v1178_v32 = vsel %vm6469_vm10, %v1124_v17, %v1177_v11  ;;  %v1205_v34 = vsel %vm6469_vm10, %v1142_v20, %v1204_v13  ;;  %v819_v35 = vmax.f32 %v730_v50, 0.0  ;;  %v837_v36 = vmax.f32 %v5698_v51, 0.0  ;;  %v1186_v51 = vld [vmem:[#allocation2 + $0x88] sm:$0xff]  ;;  %v1007_v17 = vld [vmem:[#allocation2 + $0x80] sm:$0xff] }
 0x113   : > { %1179 = vst [vmem:[#allocation2 + $0x58] sm:$0xff] %v1178_v32  ;;  %1206 = vst [vmem:[#allocation2 + $0xe8] sm:$0xff] %v1205_v34  ;;  %v1202_v38 = vsel %vm6469_vm10, %v1140_v26, %v1201_v22  ;;  %v904_v39 = vshrl.u32 %v845_v28, 16  ;;  %v907_v40 = vshll.u32 %v845_v28, 16  ;;  %v835_v41 = vmax.f32 %v794_v60, 0.0  ;;  %v1028_v26 = vld [vmem:[#allocation2 + $0xf0] sm:$0xff] }
 0x114   : > { %1203 = vst [vmem:[#allocation2 + $0xd8] sm:$0xff] %v1202_v38  ;;  %v844_v42 = vpack.c.bf16 %v819_v35, %v818_v49  ;;  %v853_v43 = vpack.c.bf16 %v837_v36, %v836_v58  ;;  %v1011_v44 = vsel %vm6480_vm11, %v6476_v30, %v1010_v12  ;;  %v996_v45 = vsel %vm6480_vm11, %v6510_v21, %v995_v31  ;;  %v1019_v21 = vld [vmem:[#allocation2 + $0xc0] sm:$0xff] }
 0x115   : > { %v906_v46 = vrot.slane %v904_v39, 7  ;;  %v1129_v48 = vrot.slane %v907_v40, 1  ;;  %v852_v50 = vpack.c.bf16 %v835_v41, %v834_v62  ;;  %1064 = vrot.lane.b32.xlu1 %v845_v28, %s6172_s23  ;;  %1012 = vst [vmem:[#allocation2 + $0x90] sm:$0xff] %v1011_v44  ;;  %997 = vst [vmem:[#allocation2 + $0x40] sm:$0xff] %v996_v45  ;;  %v1017_v49 = vsel %vm6480_vm11, %v6515_v27, %v1016_v37  ;;  %v992_v62 = vld [vmem:[#allocation2 + $0x30] sm:$0xff]  ;;  %v1210_v27 = vld [vmem:[#allocation2 + $0x108] sm:$0xff] }
 0x116   : > { %v897_v18 = vshrl.u32 %v844_v42, 16  ;;  %v900_v54 = vshll.u32 %v844_v42, 16  ;;  %v960_v55 = vshrl.u32 %v853_v43, 16  ;;  %v963_v30 = vshll.u32 %v853_v43, 16  ;;  %1062 = vrot.lane.b32.xlu0 %v844_v42, %s6172_s23  ;;  %1018 = vst [vmem:[#allocation2 + $0xb0] sm:$0xff] %v1017_v49  ;;  %v1031_v28 = vld [vmem:[#allocation2 + $0x100] sm:$0xff] }
 0x117   : > { %v909_v58 = vor.u32 %v907_v40, %v906_v46  ;;  %v1130_v60 = vor.u32 %v1129_v48, %v904_v39  ;;  %v953_v47 = vshrl.u32 %v852_v50, 16  ;;  %v956_v52 = vshll.u32 %v852_v50, 16 }
 0x118   : > { %v899_v56 = vrot.slane %v897_v18, 7  ;;  %v1127_v63 = vrot.slane %v900_v54, 1  ;;  %v962_v0 = vrot.slane %v960_v55, 7  ;;  %v1145_v1 = vrot.slane %v963_v30, 1 }
 0x119   : > { %v1187_v3 = vsel %vm6469_vm10, %v1130_v60, %v1186_v51  ;;  %v955_v53 = vrot.slane %v953_v47, 7  ;;  %v1143_v57 = vrot.slane %v956_v52, 1  ;;  %1080 = vrot.lane.b32.xlu1 %v853_v43, %s6172_s23  ;;  %v1020_v4 = vsel %vm6480_vm11, %v6512_v23, %v1019_v21 }
 0x11a   : > { %1188 = vst [vmem:[#allocation2 + $0x88] sm:$0xff] %v1187_v3  ;;  %v902_v8 = vor.u32 %v900_v54, %v899_v56  ;;  %v1128_v10 = vor.u32 %v1127_v63, %v897_v18  ;;  %v965_v11 = vor.u32 %v963_v30, %v962_v0  ;;  %v1146_v13 = vor.u32 %v1145_v1, %v960_v55 }
 0x11b   : > { %1078 = vrot.lane.b32.xlu0 %v852_v50, %s6172_s23  ;;  %1021 = vst [vmem:[#allocation2 + $0xc0] sm:$0xff] %v1020_v4  ;;  %v958_v20 = vor.u32 %v956_v52, %v955_v53  ;;  %v1144_v22 = vor.u32 %v1143_v57, %v953_v47  ;;  %v993_v24 = vsel %vm6480_vm11, %v6517_v29, %v992_v62 }
 0x11c   : > { %v999_v23 = vsel %vm6480_vm11, %v6549_v16, %v998_v2  ;;  %v1184_v12 = vsel %vm6469_vm10, %v1128_v10, %v1183_v61  ;;  %v1211_v31 = vsel %vm6469_vm10, %v1146_v13, %v1210_v27  ;;  %994 = vst [vmem:[#allocation2 + $0x30] sm:$0xff] %v993_v24  ;;  %v1002_v32 = vsel %vm6480_vm11, %v6547_v9, %v1001_v5 }
 0x11d   : > { %1000 = vst [vmem:[#allocation2 + $0x50] sm:$0xff] %v999_v23  ;;  %v1023_v29 = vsel %vm6480_vm11, %v6556_v25, %v1022_v6  ;;  %1185 = vst [vmem:[#allocation2 + $0x78] sm:$0xff] %v1184_v12  ;;  %v1208_v16 = vsel %vm6469_vm10, %v1144_v22, %v1207_v59  ;;  %v1026_v34 = vsel %vm6480_vm11, %v6551_v19, %v1025_v14 }
 0x11e   : > { %1212 = vst [vmem:[#allocation2 + $0x108] sm:$0xff] %v1211_v31  ;;  %1003 = vst [vmem:[#allocation2 + $0x60] sm:$0xff] %v1002_v32  ;;  %v1005_v35 = vsel %vm6480_vm11, %v902_v8, %v1004_v15  ;;  %v1008_v9 = vsel %vm6480_vm11, %v909_v58, %v1007_v17  ;;  %v1029_v25 = vsel %vm6480_vm11, %v958_v20, %v1028_v26 }
 0x11f   : > { %1024 = vst [vmem:[#allocation2 + $0xd0] sm:$0xff] %v1023_v29  ;;  %1209 = vst [vmem:[#allocation2 + $0xf8] sm:$0xff] %v1208_v16  ;;  %v1032_v36 = vsel %vm6480_vm11, %v965_v11, %v1031_v28 }
 0x120   : > { %1027 = vst [vmem:[#allocation2 + $0xe0] sm:$0xff] %v1026_v34  ;;  %1006 = vst [vmem:[#allocation2 + $0x70] sm:$0xff] %v1005_v35 }
 0x121   : > { %1009 = vst [vmem:[#allocation2 + $0x80] sm:$0xff] %v1008_v9  ;;  %1030 = vst [vmem:[#allocation2 + $0xf0] sm:$0xff] %v1029_v25 }
 0x122   : > { %1033 = vst [vmem:[#allocation2 + $0x100] sm:$0xff] %v1032_v36 }
 0x167   : > { %v1053_v19 = vpop.permute.xlu0 %1052 }
 0x168   : > { %1100 = vst.msk [vmem:[#allocation2 + $0x20] sm:$0xff] %vm1098_vm12, %v1053_v19  ;;  %v1069_v37 = vpop.permute.xlu1 %1068 }
 0x169   : > { %1108 = vst.msk [vmem:[#allocation2 + $0xa0] sm:$0xff] %vm1098_vm12, %v1069_v37 }
 0x16b   : > { %v1051_v38 = vpop.permute.xlu0 %1050 }
 0x16c   : > { %1099 = vst.msk [vmem:[#allocation2 + $0x10] sm:$0xff] %vm1098_vm12, %v1051_v38 }
 0x16f   : > { %v1067_v39 = vpop.permute.xlu0 %1066 }
 0x170   : > { %1107 = vst.msk [vmem:[#allocation2 + $0x90] sm:$0xff] %vm1098_vm12, %v1067_v39 }
 0x173   : > { %v1057_v40 = vpop.permute.xlu1 %1056 }
 0x174   : > { %1102 = vst.msk [vmem:[#allocation2 + $0x40] sm:$0xff] %vm1098_vm12, %v1057_v40  ;;  %v1071_v41 = vpop.permute.xlu0 %1070 }
 0x175   : > { %1109 = vst.msk [vmem:[#allocation2 + $0xb0] sm:$0xff] %vm1098_vm12, %v1071_v41 }
 0x177   : > { %v1073_v42 = vpop.permute.xlu1 %1072 }
 0x178   : > { %1110 = vst.msk [vmem:[#allocation2 + $0xc0] sm:$0xff] %vm1098_vm12, %v1073_v42 }
 0x17b   : > { %v1055_v43 = vpop.permute.xlu1 %1054 }
 0x17c   : > { %1101 = vst.msk [vmem:[#allocation2 + $0x30] sm:$0xff] %vm1098_vm12, %v1055_v43 }
 0x17e   : > { %v1059_v44 = vpop.permute.xlu0 %1058 }
 0x17f   : > { %1103 = vst.msk [vmem:[#allocation2 + $0x50] sm:$0xff] %vm1098_vm12, %v1059_v44  ;;  %v1061_v45 = vpop.permute.xlu1 %1060 }
 0x180   : > { %1104 = vst.msk [vmem:[#allocation2 + $0x60] sm:$0xff] %vm1098_vm12, %v1061_v45 }
 0x182   : > { %v1075_v46 = vpop.permute.xlu0 %1074 }
 0x183   : > { %1111 = vst.msk [vmem:[#allocation2 + $0xd0] sm:$0xff] %vm1098_vm12, %v1075_v46  ;;  %v1077_v48 = vpop.permute.xlu1 %1076 }
 0x184   : > { %1112 = vst.msk [vmem:[#allocation2 + $0xe0] sm:$0xff] %vm1098_vm12, %v1077_v48 }
 0x187   : > { %v1065_v50 = vpop.permute.xlu1 %1064 }
 0x188   : > { %v1063_v49 = vpop.permute.xlu0 %1062  ;;  %1106 = vst.msk [vmem:[#allocation2 + $0x80] sm:$0xff] %vm1098_vm12, %v1065_v50 }
 0x189   : > { %1105 = vst.msk [vmem:[#allocation2 + $0x70] sm:$0xff] %vm1098_vm12, %v1063_v49 }
 0x18b   : > { %v1081_v51 = vpop.permute.xlu1 %1080 }
 0x18c   : > { %1114 = vst.msk [vmem:[#allocation2 + $0x100] sm:$0xff] %vm1098_vm12, %v1081_v51 }
 0x18d   : > { %v1079_v18 = vpop.permute.xlu0 %1078 }
 0x18e   : > { %1113 = vst.msk [vmem:[#allocation2 + $0xf0] sm:$0xff] %vm1098_vm12, %v1079_v18 }
 0x18f LB: >> { %v6636_v54 = vld [vmem:[#allocation2 + $0x18] sm:$0xff]  ;;  %v6173_v55 = vmov 0   ;;  %s5646_s6 = smul.u32 576, %s6169_s26  ;;  %v6671_v27 = vld [vmem:[#allocation2 + $0x10] sm:$0xff]  ;;  %v6674_v3 = vld [vmem:[#allocation2 + $0x28] sm:$0xff]  ;;  %s6174_s10 = smov 64   ;;  %s6169_s26 = sphi %s6631_s26, %s1218_s26  }
 0x190   : >> { %1458 = vmatprep.subr.bf16.mxu0 %v6173_v55  ;;  %5376 = vmatprep.mubr.msk.bf16.mxu0 %vm245_vm1, %v6636_v54  ;;  %v6682_v57 = vld [vmem:[#allocation2 + $0x20] sm:$0xff]  ;;  %v6685_v4 = vld [vmem:[#allocation2 + $0x38] sm:$0xff]  ;;  %v6693_v6 = vld [vmem:[#allocation2 + $0x30] sm:$0xff]  ;;  %s1218_s26 = sadd.s32 1, %s6169_s26  }
 0x191   : >> { %2914 = vmatprep.subr.bf16.mxu1 %v6173_v55  ;;  %s6646_s9 = scalar_lea.vmem %s8125_s3, %s5646_s6  ;;  %v6696_v10 = vld [vmem:[#allocation2 + $0x48] sm:$0xff]  ;;  %v6704_v13 = vld [vmem:[#allocation2 + $0x40] sm:$0xff]  ;;  %v6707_v15 = vld [vmem:[#allocation2 + $0x58] sm:$0xff]  ;;  %p1215_p11 = scmp.ge.s32.totalorder %s1218_s26, 9  }
 0x192   : >> { %v6027_v30 = vld [vmem:[%s6646_s9 + $0x60] sm:$0xff]   ;;  %v6028_v21 = vld [vmem:[%s6646_s9 + $0x68] sm:$0xff]   ;;  %v6029_v58 = vld [vmem:[%s6646_s9 + $0x70] sm:$0xff]   ;;  %vm5013_vm13 = vcmask (%p1215_p11), 130112   ;;  %vm5150_vm14 = vcmask (%p1215_p11), 1041409   ;;  %vm5152_vm15 = vcmask (%p1215_p11), 1042434  }
 0x193   : >> { %1459 = vmatpush1.bf16.msra.mxu0 %v6027_v30  ;;  %v6030_v60 = vld [vmem:[%s6646_s9 + $0x78] sm:$0xff]   ;;  %v6031_v61 = vld [vmem:[%s6646_s9 + $0x80] sm:$0xff]   ;;  %v6032_v47 = vld [vmem:[%s6646_s9 + $0x88] sm:$0xff]   ;;  %vm5156_vm2 = vcmask (%p1215_p11), 1044484   ;;  %vm5158_vm3 = vcmask (%p1215_p11), 1045509   ;;  %vm5160_vm4 = vcmask (%p1215_p11), 1046534  }
 0x194   : >> { %1460 = vmatprep.subr.bf16.mxu0 %v6173_v55  ;;  %v6033_v52 = vld [vmem:[%s6646_s9 + $0x90] sm:$0xff]   ;;  %v6034_v62 = vld [vmem:[%s6646_s9 + $0x98] sm:$0xff]   ;;  %v6035_v56 = vld [vmem:[%s6646_s9 + $0xa0] sm:$0xff]   ;;  %vm5162_vm5 = vcmask (%p1215_p11), 1047559   ;;  %s5647_s23 = sshll.u32 (%p1215_p11), %s6229_s22, 8  ;;  %s5191_s26 = sshll.u32 (%p1215_p11), %s6629_s25, 4  ;;  %s8075_s26 = int_to_ptr.vmem [resolvable:$true] %s5191_s26 }
 0x195   : >> { %v6036_v63 = vld [vmem:[%s6646_s9 + $0xa8] sm:$0xff]   ;;  %v6037_v0 = vld [vmem:[%s6646_s9 + $0xb0] sm:$0xff]   ;;  %v6038_v1 = vld [vmem:[%s6646_s9 + $0xb8] sm:$0xff]   ;;  %s8073_s8 = scalar_lea.hbm (%p1215_p11), %s8127_s5, %s5647_s23  ;;  %s8081_s22 = scalar_lea.sflag (%p1215_p11), [#allocation4], %s230_s30 }
 0x196   : >> { %v6039_v2 = vld [vmem:[%s6646_s9] sm:$0xff]   ;;  %v6040_v53 = vld [vmem:[%s6646_s9 + $0x8] sm:$0xff]   ;;  %v6041_v59 = vld [vmem:[%s6646_s9 + $0x10] sm:$0xff]  }
 0x197   : >> { %1461 = vmatpush1.bf16.msra.mxu0 %v6028_v21  ;;  %v6042_v5 = vld [vmem:[%s6646_s9 + $0x18] sm:$0xff]   ;;  %v6043_v8 = vld [vmem:[%s6646_s9 + $0x20] sm:$0xff]   ;;  %v6044_v11 = vld [vmem:[%s6646_s9 + $0x28] sm:$0xff]  }
 0x198   : >> { %1462 = vmatprep.subr.bf16.mxu0 %v6173_v55  ;;  %v6045_v14 = vld [vmem:[%s6646_s9 + $0x30] sm:$0xff]   ;;  %v6046_v17 = vld [vmem:[%s6646_s9 + $0x38] sm:$0xff]   ;;  %v6047_v22 = vld [vmem:[%s6646_s9 + $0x40] sm:$0xff]  }
 0x199   : >> { %v6715_v20 = vld [vmem:[#allocation2 + $0x50] sm:$0xff]  ;;  %v6718_v24 = vld [vmem:[#allocation2 + $0x68] sm:$0xff]  ;;  %v6726_v26 = vld [vmem:[#allocation2 + $0x60] sm:$0xff] }
 0x19a   : >> { %v6048_v23 = vld [vmem:[%s6646_s9 + $0x48] sm:$0xff]   ;;  %v6049_v28 = vld [vmem:[%s6646_s9 + $0x50] sm:$0xff]   ;;  %v6729_v12 = vld [vmem:[#allocation2 + $0x78] sm:$0xff] }
 0x19b   : >> { %1463 = vmatpush1.bf16.msra.mxu0 %v6029_v58  ;;  %v6050_v31 = vld [vmem:[%s6646_s9 + $0x58] sm:$0xff]   ;;  %v6737_v32 = vld [vmem:[#allocation2 + $0x70] sm:$0xff]  ;;  %v6739_v29 = vld [vmem:[#allocation2 + $0x88] sm:$0xff] }
 0x19c   : >> { %1464 = vmatprep.subr.bf16.mxu0 %v6173_v55  ;;  %v6745_v16 = vld [vmem:[#allocation2 + $0x80] sm:$0xff]  ;;  %v6747_v34 = vld [vmem:[#allocation2 + $0x98] sm:$0xff]  ;;  %v6752_v35 = vld [vmem:[#allocation2 + $0x90] sm:$0xff] }
 0x19d   : >> { %v6754_v9 = vld [vmem:[#allocation2 + $0xa8] sm:$0xff]  ;;  %v6759_v25 = vld [vmem:[#allocation2 + $0xa0] sm:$0xff]  ;;  %v6761_v36 = vld [vmem:[#allocation2 + $0xb8] sm:$0xff] }
 0x19e   : >> { %v6766_v19 = vld [vmem:[#allocation2 + $0xb0] sm:$0xff]  ;;  %v6768_v37 = vld [vmem:[#allocation2 + $0xc8] sm:$0xff]  ;;  %v6773_v38 = vld [vmem:[#allocation2 + $0xc0] sm:$0xff] }
 0x19f   : >> { %1465 = vmatpush1.bf16.msra.mxu0 %v6030_v60  ;;  %v6775_v39 = vld [vmem:[#allocation2 + $0xd8] sm:$0xff]  ;;  %v6780_v40 = vld [vmem:[#allocation2 + $0xd0] sm:$0xff]  ;;  %v6782_v41 = vld [vmem:[#allocation2 + $0xe8] sm:$0xff] }
 0x1a0   : >> { %1466 = vmatprep.subr.bf16.mxu0 %v6173_v55  ;;  %v6787_v42 = vld [vmem:[#allocation2 + $0xe0] sm:$0xff]  ;;  %v6789_v43 = vld [vmem:[#allocation2 + $0xf8] sm:$0xff]  ;;  %v6794_v44 = vld [vmem:[#allocation2 + $0xf0] sm:$0xff] }
 0x1a1   : >> { %v6796_v45 = vld [vmem:[#allocation2 + $0x108] sm:$0xff]  ;;  %v6801_v46 = vld [vmem:[#allocation2 + $0x100] sm:$0xff]  ;;  %v6053_v18 = vld [vmem:[%s6646_s9 + $0xd0] sm:$0xff]  }
 0x1a2   : >> { %v1221_v48 = vld [vmem:[#allocation2 + $0x8] sm:$0xff]  ;;  %v1220_v50 = vld [vmem:[#allocation2] sm:$0xff]  ;;  %v6054_v30 = vld [vmem:[%s6646_s9 + $0xd8] sm:$0xff]  }
 0x1a3   : >> { %1467 = vmatpush1.bf16.msra.mxu0 %v6031_v61  ;;  %v6051_v49 = vld [vmem:[%s6646_s9 + $0xc0] sm:$0xff]   ;;  %v6052_v51 = vld [vmem:[%s6646_s9 + $0xc8] sm:$0xff]   ;;  %v6057_v58 = vld [vmem:[%s6646_s9 + $0xf0] sm:$0xff]  }
 0x1a4   : >> { %1468 = vmatprep.subr.bf16.mxu0 %v6173_v55  ;;  %v6056_v21 = vld [vmem:[%s6646_s9 + $0xe8] sm:$0xff]   ;;  %v6058_v60 = vld [vmem:[%s6646_s9 + $0xf8] sm:$0xff]   ;;  %v6059_v61 = vld [vmem:[%s6646_s9 + $0x100] sm:$0xff]  }
 0x1a7   : >> { %1469 = vmatpush1.bf16.msra.mxu0 %v6032_v47  ;;  %v6060_v47 = vld [vmem:[%s6646_s9 + $0x108] sm:$0xff]  }
 0x1a8   : >> { %1470 = vmatprep.subr.bf16.mxu0 %v6173_v55 }
 0x1ab   : >> { %1471 = vmatpush1.bf16.msra.mxu0 %v6033_v52  ;;  %v6061_v52 = vld [vmem:[%s6646_s9 + $0x110] sm:$0xff]  }
 0x1ac   : >> { %1472 = vmatprep.subr.bf16.mxu0 %v6173_v55 }
 0x1af   : >> { %1473 = vmatpush1.bf16.msra.mxu0 %v6034_v62  ;;  %v6062_v62 = vld [vmem:[%s6646_s9 + $0x118] sm:$0xff]  }
 0x1b0   : >> { %1474 = vmatprep.subr.bf16.mxu0 %v6173_v55 }
 0x1b3   : >> { %1475 = vmatpush1.bf16.msra.mxu0 %v6035_v56  ;;  %v1932_v56 = vld [vmem:[#allocation2 + $0x118] sm:$0xff] }
 0x1b4   : >> { %1476 = vmatprep.subr.bf16.mxu0 %v6173_v55 }
 0x1b7   : >> { %1477 = vmatpush1.bf16.msra.mxu0 %v6036_v63  ;;  %v1931_v63 = vld [vmem:[#allocation2 + $0x110] sm:$0xff] }
 0x1b8   : >> { %1478 = vmatprep.subr.bf16.mxu0 %v6173_v55 }
 0x1bb   : >> { %1479 = vmatpush1.bf16.msra.mxu0 %v6037_v0  ;;  %v6063_v0 = vld [vmem:[%s6646_s9 + $0x180] sm:$0xff]  }
 0x1bc   : >> { %1480 = vmatprep.subr.bf16.mxu0 %v6173_v55  ;;  %2915 = vmatpush1.bf16.msra.mxu1 %v6063_v0  ;;  %v2632_v0 = vld [vmem:[#allocation2 + $0x158] sm:$0xff] }
 0x1bd   : >> { %2916 = vmatprep.subr.bf16.mxu1 %v6173_v55 }
 0x1bf   : >> { %1481 = vmatpush1.bf16.msra.mxu0 %v6038_v1  ;;  %v6064_v1 = vld [vmem:[%s6646_s9 + $0x188] sm:$0xff]  }
 0x1c0   : >> { %1739 = vmatprep.subr.bf16.mxu0 %v6173_v55  ;;  %2917 = vmatpush1.bf16.msra.mxu1 %v6064_v1 }
 0x1c1   : >> { %2918 = vmatprep.subr.bf16.mxu1 %v6173_v55 }
 0x1c2   : >> { %1491 = vmatmul.mubr.bf16.vlgmr.msra.gmra.mrb[0].mxu0 %v6671_v27 }
 0x1c3   : >> { %1740 = vmatpush1.bf16.msra.mxu0 %v6039_v2  ;;  %5377 = vmatprep.mubr.msk.bf16.mxu0 %vm245_vm1, %v6674_v3  ;;  %v6066_v2 = vld [vmem:[%s6646_s9 + $0x198] sm:$0xff]  }
 0x1c4   : >> { %1741 = vmatprep.subr.bf16.mxu0 %v6173_v55 }
 0x1c7   : >> { %1742 = vmatpush1.bf16.msra.mxu0 %v6040_v53  ;;  %v6068_v53 = vld [vmem:[%s6646_s9 + $0x1a8] sm:$0xff]  }
 0x1c8   : >> { %1743 = vmatprep.subr.bf16.mxu0 %v6173_v55 }
 0x1ca   : >> { %1499 = vmatmul.mubr.bf16.gmra.mrb[4].mxu0 %v6682_v57 }
 0x1cb   : >> { %5378 = vmatprep.mubr.msk.bf16.mxu0 %vm245_vm1, %v6685_v4  ;;  %1744 = vmatpush1.bf16.msra.mxu0 %v6041_v59  ;;  %v6070_v59 = vld [vmem:[%s6646_s9 + $0x1b8] sm:$0xff]  }
 0x1cc   : >> { %1745 = vmatprep.subr.bf16.mxu0 %v6173_v55 }
 0x1cf   : >> { %1746 = vmatpush1.bf16.msra.mxu0 %v6042_v5  ;;  %v6072_v5 = vld [vmem:[%s6646_s9 + $0x1c8] sm:$0xff]  }
 0x1d0   : >> { %1747 = vmatprep.subr.bf16.mxu0 %v6173_v55 }
 0x1d2   : >> { %1507 = vmatmul.mubr.bf16.gmra.mrb[8].mxu0 %v6693_v6 }
 0x1d3   : >> { %5379 = vmatprep.mubr.msk.bf16.mxu0 %vm245_vm1, %v6696_v10  ;;  %1748 = vmatpush1.bf16.msra.mxu0 %v6043_v8  ;;  %v6074_v8 = vld [vmem:[%s6646_s9 + $0x1d8] sm:$0xff]  }
 0x1d4   : >> { %1749 = vmatprep.subr.bf16.mxu0 %v6173_v55 }
 0x1d7   : >> { %1750 = vmatpush1.bf16.msra.mxu0 %v6044_v11 }
 0x1d8   : >> { %1751 = vmatprep.subr.bf16.mxu0 %v6173_v55 }
 0x1da   : >> { %1515 = vmatmul.mubr.bf16.gmra.mrb[12].mxu0 %v6704_v13 }
 0x1db   : >> { %5380 = vmatprep.mubr.msk.bf16.mxu0 %vm245_vm1, %v6707_v15  ;;  %1752 = vmatpush1.bf16.msra.mxu0 %v6045_v14 }
 0x1dc   : >> { %1753 = vmatprep.subr.bf16.mxu0 %v6173_v55 }
 0x1df   : >> { %1754 = vmatpush1.bf16.msra.mxu0 %v6046_v17 }
 0x1e0   : >> { %1755 = vmatprep.subr.bf16.mxu0 %v6173_v55 }
 0x1e2   : >> { %1523 = vmatmul.mubr.bf16.gmra.mrb[16].mxu0 %v6715_v20 }
 0x1e3   : >> { %5381 = vmatprep.mubr.msk.bf16.mxu0 %vm245_vm1, %v6718_v24  ;;  %1756 = vmatpush1.bf16.msra.mxu0 %v6047_v22 }
 0x1e4   : >> { %1757 = vmatprep.subr.bf16.mxu0 %v6173_v55 }
 0x1e7   : >> { %1758 = vmatpush1.bf16.msra.mxu0 %v6048_v23 }
 0x1e8   : >> { %1759 = vmatprep.subr.bf16.mxu0 %v6173_v55 }
 0x1ea   : >> { %1531 = vmatmul.mubr.bf16.gmra.mrb[20].mxu0 %v6726_v26 }
 0x1eb   : >> { %5382 = vmatprep.mubr.msk.bf16.mxu0 %vm245_vm1, %v6729_v12  ;;  %1760 = vmatpush1.bf16.msra.mxu0 %v6049_v28 }
 0x1ec   : >> { %1761 = vmatprep.subr.bf16.mxu0 %v6173_v55 }
 0x1ef   : >> { %1762 = vmatpush1.bf16.msra.mxu0 %v6050_v31  ;;  %v2626_v31 = vld [vmem:[#allocation2 + $0x138] sm:$0xff] }
 0x1f0   : >> { %2080 = vmatprep.subr.bf16.mxu0 %v6173_v55 }
 0x1f2   : >> { %1539 = vmatmul.mubr.bf16.gmra.mrb[24].mxu0 %v6737_v32 }
 0x1f3   : >> { %5383 = vmatprep.mubr.msk.bf16.mxu0 %vm245_vm1, %v6739_v29 }
 0x1fa   : >> { %1547 = vmatmul.mubr.bf16.gmra.mrb[28].mxu0 %v6745_v16 }
 0x1fb   : >> { %5384 = vmatprep.mubr.msk.bf16.mxu0 %vm245_vm1, %v6747_v34 }
 0x202   : >> { %1555 = vmatmul.mubr.bf16.gmra.mrb[32].mxu0 %v6752_v35 }
 0x203   : >> { %5385 = vmatprep.mubr.msk.bf16.mxu0 %vm245_vm1, %v6754_v9 }
 0x20a   : >> { %1563 = vmatmul.mubr.bf16.gmra.mrb[36].mxu0 %v6759_v25 }
 0x20b   : >> { %5386 = vmatprep.mubr.msk.bf16.mxu0 %vm245_vm1, %v6761_v36 }
 0x212   : >> { %1571 = vmatmul.mubr.bf16.gmra.mrb[40].mxu0 %v6766_v19 }
 0x213   : >> { %5387 = vmatprep.mubr.msk.bf16.mxu0 %vm245_vm1, %v6768_v37 }
 0x21a   : >> { %1579 = vmatmul.mubr.bf16.gmra.mrb[44].mxu0 %v6773_v38 }
 0x21b   : >> { %5388 = vmatprep.mubr.msk.bf16.mxu0 %vm245_vm1, %v6775_v39 }
 0x222   : >> { %1587 = vmatmul.mubr.bf16.gmra.mrb[48].mxu0 %v6780_v40 }
 0x223   : >> { %5389 = vmatprep.mubr.msk.bf16.mxu0 %vm245_vm1, %v6782_v41 }
 0x22a   : >> { %1595 = vmatmul.mubr.bf16.gmra.mrb[52].mxu0 %v6787_v42 }
 0x22b   : >> { %5390 = vmatprep.mubr.msk.bf16.mxu0 %vm245_vm1, %v6789_v43 }
 0x232   : >> { %1603 = vmatmul.mubr.bf16.gmra.mrb[56].mxu0 %v6794_v44 }
 0x233   : >> { %5391 = vmatprep.mubr.msk.bf16.mxu0 %vm245_vm1, %v6796_v45 }
 0x23a   : >> { %1611 = vmatmul.mubr.bf16.gmra.mrb[60].mxu0 %v6801_v46 }
 0x23b   : >> { %5404 = vmatprep.mubr.msk.bf16.mxu0 %vm245_vm1, %v1221_v48 }
 0x242   : >> { %1772 = vmatmul.mubr.bf16.vlgmr.msra.gmra.mrb[0].mxu0 %v1220_v50 }
 0x243   : >> { %2081 = vmatpush1.bf16.msra.mxu0 %v6051_v49  ;;  %5405 = vmatprep.mubr.msk.bf16.mxu0 %vm245_vm1, %v6636_v54  ;;  %v6055_v54 = vld [vmem:[%s6646_s9 + $0xe0] sm:$0xff]  }
 0x244   : >> { %2082 = vmatprep.subr.bf16.mxu0 %v6173_v55 }
 0x247   : >> { %2083 = vmatpush1.bf16.msra.mxu0 %v6052_v51 }
 0x248   : >> { %2084 = vmatprep.subr.bf16.mxu0 %v6173_v55 }
 0x24a   : >> { %1780 = vmatmul.mubr.bf16.gmra.mrb[4].mxu0 %v6671_v27  ;;  %v6065_v27 = vld [vmem:[%s6646_s9 + $0x190] sm:$0xff]  }
 0x24b   : >> { %5406 = vmatprep.mubr.msk.bf16.mxu0 %vm245_vm1, %v6674_v3  ;;  %2085 = vmatpush1.bf16.msra.mxu0 %v6053_v18 }
 0x24c   : >> { %2086 = vmatprep.subr.bf16.mxu0 %v6173_v55  ;;  %2919 = vmatpush1.bf16.msra.mxu1 %v6065_v27 }
 0x24d   : >> { %2920 = vmatprep.subr.bf16.mxu1 %v6173_v55 }
 0x24f   : >> { %2087 = vmatpush1.bf16.msra.mxu0 %v6054_v30 }
 0x250   : >> { %2088 = vmatprep.subr.bf16.mxu0 %v6173_v55  ;;  %2921 = vmatpush1.bf16.msra.mxu1 %v6066_v2 }
 0x251   : >> { %2922 = vmatprep.subr.bf16.mxu1 %v6173_v55 }
 0x252   : >> { %1788 = vmatmul.mubr.bf16.gmra.mrb[8].mxu0 %v6682_v57 }
 0x253   : >> { %5407 = vmatprep.mubr.msk.bf16.mxu0 %vm245_vm1, %v6685_v4  ;;  %2089 = vmatpush1.bf16.msra.mxu0 %v6055_v54 }
 0x254   : >> { %2090 = vmatprep.subr.bf16.mxu0 %v6173_v55 }
 0x257   : >> { %2091 = vmatpush1.bf16.msra.mxu0 %v6056_v21 }
 0x258   : >> { %2092 = vmatprep.subr.bf16.mxu0 %v6173_v55 }
 0x25a   : >> { %1796 = vmatmul.mubr.bf16.gmra.mrb[12].mxu0 %v6693_v6 }
 0x25b   : >> { %5408 = vmatprep.mubr.msk.bf16.mxu0 %vm245_vm1, %v6696_v10  ;;  %2093 = vmatpush1.bf16.msra.mxu0 %v6057_v58 }
 0x25c   : >> { %2094 = vmatprep.subr.bf16.mxu0 %v6173_v55 }
 0x25f   : >> { %2095 = vmatpush1.bf16.msra.mxu0 %v6058_v60 }
 0x260   : >> { %2096 = vmatprep.subr.bf16.mxu0 %v6173_v55 }
 0x262   : >> { %1804 = vmatmul.mubr.bf16.gmra.mrb[16].mxu0 %v6704_v13 }
 0x263   : >> { %5409 = vmatprep.mubr.msk.bf16.mxu0 %vm245_vm1, %v6707_v15  ;;  %2097 = vmatpush1.bf16.msra.mxu0 %v6059_v61 }
 0x264   : >> { %2098 = vmatprep.subr.bf16.mxu0 %v6173_v55 }
 0x267   : >> { %2099 = vmatpush1.bf16.msra.mxu0 %v6060_v47 }
 0x268   : >> { %2100 = vmatprep.subr.bf16.mxu0 %v6173_v55 }
 0x26a   : >> { %1812 = vmatmul.mubr.bf16.gmra.mrb[20].mxu0 %v6715_v20 }
 0x26b   : >> { %5410 = vmatprep.mubr.msk.bf16.mxu0 %vm245_vm1, %v6718_v24  ;;  %2101 = vmatpush1.bf16.msra.mxu0 %v6061_v52 }
 0x26c   : >> { %2102 = vmatprep.subr.bf16.mxu0 %v6173_v55 }
 0x26f   : >> { %2103 = vmatpush1.bf16.msra.mxu0 %v6062_v62 }
 0x272   : >> { %1820 = vmatmul.mubr.bf16.gmra.mrb[24].mxu0 %v6726_v26 }
 0x273   : >> { %5411 = vmatprep.mubr.msk.bf16.mxu0 %vm245_vm1, %v6729_v12 }
 0x27a   : >> { %1828 = vmatmul.mubr.bf16.gmra.mrb[28].mxu0 %v6737_v32 }
 0x27b   : >> { %5412 = vmatprep.mubr.msk.bf16.mxu0 %vm245_vm1, %v6739_v29 }
 0x282   : >> { %1836 = vmatmul.mubr.bf16.gmra.mrb[32].mxu0 %v6745_v16 }
 0x283   : >> { %5413 = vmatprep.mubr.msk.bf16.mxu0 %vm245_vm1, %v6747_v34 }
 0x28a   : >> { %1844 = vmatmul.mubr.bf16.gmra.mrb[36].mxu0 %v6752_v35 }
 0x28b   : >> { %5414 = vmatprep.mubr.msk.bf16.mxu0 %vm245_vm1, %v6754_v9 }
 0x292   : >> { %1852 = vmatmul.mubr.bf16.gmra.mrb[40].mxu0 %v6759_v25 }
 0x293   : >> { %5415 = vmatprep.mubr.msk.bf16.mxu0 %vm245_vm1, %v6761_v36 }
 0x29a   : >> { %1860 = vmatmul.mubr.bf16.gmra.mrb[44].mxu0 %v6766_v19 }
 0x29b   : >> { %5416 = vmatprep.mubr.msk.bf16.mxu0 %vm245_vm1, %v6768_v37 }
 0x2a2   : >> { %1868 = vmatmul.mubr.bf16.gmra.mrb[48].mxu0 %v6773_v38 }
 0x2a3   : >> { %5417 = vmatprep.mubr.msk.bf16.mxu0 %vm245_vm1, %v6775_v39 }
 0x2aa   : >> { %1876 = vmatmul.mubr.bf16.gmra.mrb[52].mxu0 %v6780_v40 }
 0x2ab   : >> { %5418 = vmatprep.mubr.msk.bf16.mxu0 %vm245_vm1, %v6782_v41 }
 0x2b2   : >> { %1884 = vmatmul.mubr.bf16.gmra.mrb[56].mxu0 %v6787_v42 }
 0x2b3   : >> { %5419 = vmatprep.mubr.msk.bf16.mxu0 %vm245_vm1, %v6789_v43 }
 0x2ba   : >> { %1892 = vmatmul.mubr.bf16.gmra.mrb[60].mxu0 %v6794_v44 }
 0x2bb   : >> { %5457 = vmatprep.mubr.msk.bf16.mxu0 %vm245_vm1, %v6674_v3  ;;  %v6067_v3 = vld [vmem:[%s6646_s9 + $0x1a0] sm:$0xff]  }
 0x2bc   : >> { %2923 = vmatpush1.bf16.msra.mxu1 %v6067_v3 }
 0x2bd   : >> { %2924 = vmatprep.subr.bf16.mxu1 %v6173_v55 }
 0x2c0   : >> { %2925 = vmatpush1.bf16.msra.mxu1 %v6068_v53 }
 0x2c1   : >> { %2926 = vmatprep.subr.bf16.mxu1 %v6173_v55 }
 0x2c2   : >> { %2113 = vmatmul.mubr.bf16.vlgmr.msra.gmra.mrb[0].mxu0 %v6682_v57  ;;  %v6069_v57 = vld [vmem:[%s6646_s9 + $0x1b0] sm:$0xff]  }
 0x2c3   : >> { %5458 = vmatprep.mubr.msk.bf16.mxu0 %vm245_vm1, %v6685_v4  ;;  %v6071_v4 = vld [vmem:[%s6646_s9 + $0x1c0] sm:$0xff]  }
 0x2c4   : >> { %2927 = vmatpush1.bf16.msra.mxu1 %v6069_v57 }
 0x2c5   : >> { %2928 = vmatprep.subr.bf16.mxu1 %v6173_v55 }
 0x2c8   : >> { %2929 = vmatpush1.bf16.msra.mxu1 %v6070_v59 }
 0x2c9   : >> { %2930 = vmatprep.subr.bf16.mxu1 %v6173_v55 }
 0x2ca   : >> { %2121 = vmatmul.mubr.bf16.gmra.mrb[4].mxu0 %v6693_v6  ;;  %v6073_v6 = vld [vmem:[%s6646_s9 + $0x1d0] sm:$0xff]  }
 0x2cb   : >> { %5459 = vmatprep.mubr.msk.bf16.mxu0 %vm245_vm1, %v6696_v10 }
 0x2cc   : >> { %2931 = vmatpush1.bf16.msra.mxu1 %v6071_v4 }
 0x2cd   : >> { %2932 = vmatprep.subr.bf16.mxu1 %v6173_v55 }
 0x2d0   : >> { %2933 = vmatpush1.bf16.msra.mxu1 %v6072_v5 }
 0x2d1   : >> { %2934 = vmatprep.subr.bf16.mxu1 %v6173_v55 }
 0x2d2   : >> { %2129 = vmatmul.mubr.bf16.gmra.mrb[8].mxu0 %v6704_v13 }
 0x2d3   : >> { %5460 = vmatprep.mubr.msk.bf16.mxu0 %vm245_vm1, %v6707_v15 }
 0x2d4   : >> { %2935 = vmatpush1.bf16.msra.mxu1 %v6073_v6 }
 0x2d5   : >> { %2936 = vmatprep.subr.bf16.mxu1 %v6173_v55 }
 0x2d8   : >> { %2937 = vmatpush1.bf16.msra.mxu1 %v6074_v8 }
 0x2d9   : >> { %3195 = vmatprep.subr.bf16.mxu1 %v6173_v55 }
 0x2da   : >> { %2137 = vmatmul.mubr.bf16.gmra.mrb[12].mxu0 %v6715_v20 }
 0x2db   : >> { %5461 = vmatprep.mubr.msk.bf16.mxu0 %vm245_vm1, %v6718_v24 }
 0x2e2   : >> { %2145 = vmatmul.mubr.bf16.gmra.mrb[16].mxu0 %v6726_v26 }
 0x2e3   : >> { %5462 = vmatprep.mubr.msk.bf16.mxu0 %vm245_vm1, %v6729_v12 }
 0x2ea   : >> { %2153 = vmatmul.mubr.bf16.gmra.mrb[20].mxu0 %v6737_v32 }
 0x2eb   : >> { %5463 = vmatprep.mubr.msk.bf16.mxu0 %vm245_vm1, %v6739_v29  ;;  %v2450_v29 = vld [vmem:[#allocation2 + $0x130] sm:$0xff] }
 0x2f2   : >> { %2161 = vmatmul.mubr.bf16.gmra.mrb[24].mxu0 %v6745_v16 }
 0x2f3   : >> { %5464 = vmatprep.mubr.msk.bf16.mxu0 %vm245_vm1, %v6747_v34 }
 0x2fa   : >> { %2169 = vmatmul.mubr.bf16.gmra.mrb[28].mxu0 %v6752_v35 }
 0x2fb   : >> { %5465 = vmatprep.mubr.msk.bf16.mxu0 %vm245_vm1, %v6754_v9 }
 0x302   : >> { %2177 = vmatmul.mubr.bf16.gmra.mrb[32].mxu0 %v6759_v25 }
 0x303   : >> { %5466 = vmatprep.mubr.msk.bf16.mxu0 %vm245_vm1, %v6761_v36 }
 0x30a   : >> { %2185 = vmatmul.mubr.bf16.gmra.mrb[36].mxu0 %v6766_v19 }
 0x30b   : >> { %5467 = vmatprep.mubr.msk.bf16.mxu0 %vm245_vm1, %v6768_v37 }
 0x312   : >> { %2193 = vmatmul.mubr.bf16.gmra.mrb[40].mxu0 %v6773_v38 }
 0x313   : >> { %5468 = vmatprep.mubr.msk.bf16.mxu0 %vm245_vm1, %v6775_v39 }
 0x31a   : >> { %2201 = vmatmul.mubr.bf16.gmra.mrb[44].mxu0 %v6780_v40 }
 0x31b   : >> { %5469 = vmatprep.mubr.msk.bf16.mxu0 %vm245_vm1, %v6782_v41 }
 0x322   : >> { %2209 = vmatmul.mubr.bf16.gmra.mrb[48].mxu0 %v6787_v42 }
 0x323   : >> { %5470 = vmatprep.mubr.msk.bf16.mxu0 %vm245_vm1, %v6789_v43 }
 0x32a   : >> { %2217 = vmatmul.mubr.bf16.gmra.mrb[52].mxu0 %v6794_v44 }
 0x32b   : >> { %5471 = vmatprep.mubr.msk.bf16.mxu0 %vm245_vm1, %v6796_v45  ;;  %v2453_v45 = vld [vmem:[#allocation2 + $0x140] sm:$0xff] }
 0x332   : >> { %2225 = vmatmul.mubr.bf16.gmra.mrb[56].mxu0 %v6801_v46  ;;  %v2629_v46 = vld [vmem:[#allocation2 + $0x148] sm:$0xff] }
 0x333   : >> { %5472 = vmatprep.mubr.msk.bf16.mxu0 %vm245_vm1, %v1932_v56 }
 0x33a   : >> { %2233 = vmatmul.mubr.bf16.gmra.mrb[60].mxu0 %v1931_v63  ;;  %v2456_v63 = vld [vmem:[#allocation2 + $0x150] sm:$0xff] }
 0x395   : >> { %v2114_v10 = vpop.f32.mrb[0].mxu0 }
 0x396   : >> { %v2116_v11 = vpop.f32.mrb[1].mxu0  ;;  %v2273_v14 = vmax.f32 %v2114_v10, 0.0 }
 0x397   : >> { %v2117_v13 = vpop.f32.mrb[2].mxu0 }
 0x398   : >> { %v2274_v15 = vmax.f32 %v2117_v13, 0.0  ;;  %v2119_v17 = vpop.f32.mrb[3].mxu0 }
 0x399   : >> { %v2635_v17 = vld [vmem:[#allocation2 + $0x168] sm:$0xff] }
 0x39a   : >> { %v2305_v20 = vpack.c.bf16 %v2274_v15, %v2273_v14  ;;  %v2459_v15 = vld [vmem:[#allocation2 + $0x160] sm:$0xff] }
 0x39c   : >> { %v2322_v22 = vshrl.u32 %v2305_v20, 16  ;;  %v2325_v24 = vshll.u32 %v2305_v20, 16  ;;  %2514 = vrot.lane.b32.xlu0 %v2305_v20, %s6174_s10 }
 0x39d   : >> { %v2122_v23 = vpop.f32.mrb[4].mxu0 }
 0x39e   : >> { %v2578_v26 = vrot.slane %v2325_v24, 1  ;;  %v2124_v28 = vpop.f32.mrb[5].mxu0  ;;  %v2324_v12 = vrot.slane %v2322_v22, 7  ;;  %v2275_v34 = vmax.f32 %v2122_v23, 0.0 }
 0x39f   : >> { %v2125_v32 = vpop.f32.mrb[6].mxu0 }
 0x3a0   : >> { %v2579_v16 = vor.u32 %v2578_v26, %v2322_v22  ;;  %v2276_v35 = vmax.f32 %v2125_v32, 0.0  ;;  %v2127_v9 = vpop.f32.mrb[7].mxu0  ;;  %v2327_v25 = vor.u32 %v2325_v24, %v2324_v12 }
 0x3a2   : >> { %v2627_v36 = vsel %vm6469_vm10, %v2579_v16, %v2626_v31  ;;  %v2306_v19 = vpack.c.bf16 %v2276_v35, %v2275_v34  ;;  %v2451_v37 = vsel %vm6480_vm11, %v2327_v25, %v2450_v29 }
 0x3a3   : >> { %2628 = vst [vmem:[#allocation2 + $0x138] sm:$0xff] %v2627_v36  ;;  %5538 = vmatprep.mubr.msk.bf16.mxu1 %vm245_vm1, %v2627_v36  ;;  %2452 = vst [vmem:[#allocation2 + $0x130] sm:$0xff] %v2451_v37  ;;  %v2462_v36 = vld [vmem:[#allocation2 + $0x170] sm:$0xff] }
 0x3a4   : >> { %v2329_v38 = vshrl.u32 %v2306_v19, 16  ;;  %2516 = vrot.lane.b32.xlu0 %v2306_v19, %s6174_s10  ;;  %v2332_v39 = vshll.u32 %v2306_v19, 16  ;;  %v2638_v19 = vld [vmem:[#allocation2 + $0x178] sm:$0xff] }
 0x3a5   : >> { %v2130_v40 = vpop.f32.mrb[8].mxu0 }
 0x3a6   : >> { %v2132_v41 = vpop.f32.mrb[9].mxu0  ;;  %v2331_v42 = vrot.slane %v2329_v38, 7  ;;  %v2580_v43 = vrot.slane %v2332_v39, 1  ;;  %v2277_v48 = vmax.f32 %v2130_v40, 0.0 }
 0x3a7   : >> { %v2133_v44 = vpop.f32.mrb[10].mxu0 }
 0x3a8   : >> { %v2278_v50 = vmax.f32 %v2133_v44, 0.0  ;;  %v2135_v49 = vpop.f32.mrb[11].mxu0  ;;  %v2334_v51 = vor.u32 %v2332_v39, %v2331_v42  ;;  %v2581_v18 = vor.u32 %v2580_v43, %v2329_v38 }
 0x3aa   : >> { %v2307_v30 = vpack.c.bf16 %v2278_v50, %v2277_v48  ;;  %v2454_v54 = vsel %vm6480_vm11, %v2334_v51, %v2453_v45  ;;  %v6954_v21 = vsel %vm6469_vm10, %v2581_v18, %v2629_v46 }
 0x3ab   : >> { %2455 = vst [vmem:[#allocation2 + $0x140] sm:$0xff] %v2454_v54  ;;  %2631 = vst [vmem:[#allocation2 + $0x148] sm:$0xff] %v6954_v21  ;;  %v2641_v54 = vld [vmem:[#allocation2 + $0x188] sm:$0xff] }
 0x3ac   : >> { %v2336_v58 = vshrl.u32 %v2307_v30, 16  ;;  %2518 = vrot.lane.b32.xlu1 %v2307_v30, %s6174_s10  ;;  %v2339_v60 = vshll.u32 %v2307_v30, 16  ;;  %v2465_v30 = vld [vmem:[#allocation2 + $0x180] sm:$0xff] }
 0x3ad   : >> { %v2138_v61 = vpop.f32.mrb[12].mxu0 }
 0x3ae   : >> { %v2140_v47 = vpop.f32.mrb[13].mxu0  ;;  %v2338_v52 = vrot.slane %v2336_v58, 7  ;;  %v2582_v62 = vrot.slane %v2339_v60, 1  ;;  %v2279_v1 = vmax.f32 %v2138_v61, 0.0 }
 0x3af   : >> { %v2141_v56 = vpop.f32.mrb[14].mxu0 }
 0x3b0   : >> { %v2280_v27 = vmax.f32 %v2141_v56, 0.0  ;;  %v2143_v2 = vpop.f32.mrb[15].mxu0  ;;  %v2341_v3 = vor.u32 %v2339_v60, %v2338_v52  ;;  %v2583_v53 = vor.u32 %v2582_v62, %v2336_v58 }
 0x3b2   : >> { %v2308_v57 = vpack.c.bf16 %v2280_v27, %v2279_v1  ;;  %v2457_v59 = vsel %vm6480_vm11, %v2341_v3, %v2456_v63  ;;  %v6962_v4 = vsel %vm6469_vm10, %v2583_v53, %v2632_v0 }
 0x3b3   : >> { %2458 = vst [vmem:[#allocation2 + $0x150] sm:$0xff] %v2457_v59  ;;  %2634 = vst [vmem:[#allocation2 + $0x158] sm:$0xff] %v6962_v4  ;;  %v2468_v59 = vld [vmem:[#allocation2 + $0x190] sm:$0xff] }
 0x3b4   : >> { %v2343_v5 = vshrl.u32 %v2308_v57, 16  ;;  %2520 = vrot.lane.b32.xlu1 %v2308_v57, %s6174_s10  ;;  %v2346_v6 = vshll.u32 %v2308_v57, 16 }
 0x3b5   : >> { %v2146_v8 = vpop.f32.mrb[16].mxu0 }
 0x3b6   : >> { %v2148_v10 = vpop.f32.mrb[17].mxu0  ;;  %v2345_v11 = vrot.slane %v2343_v5, 7  ;;  %v2584_v13 = vrot.slane %v2346_v6, 1  ;;  %v2281_v20 = vmax.f32 %v2146_v8, 0.0 }
 0x3b7   : >> { %v2149_v14 = vpop.f32.mrb[18].mxu0 }
 0x3b8   : >> { %v2282_v22 = vmax.f32 %v2149_v14, 0.0  ;;  %v2151_v24 = vpop.f32.mrb[19].mxu0  ;;  %v2348_v23 = vor.u32 %v2346_v6, %v2345_v11  ;;  %v2585_v26 = vor.u32 %v2584_v13, %v2343_v5  ;;  %v2644_v5 = vld [vmem:[#allocation2 + $0x198] sm:$0xff] }
 0x3ba   : >> { %v2309_v28 = vpack.c.bf16 %v2282_v22, %v2281_v20  ;;  %v2460_v12 = vsel %vm6480_vm11, %v2348_v23, %v2459_v15  ;;  %v6970_v31 = vsel %vm6469_vm10, %v2585_v26, %v2635_v17 }
 0x3bb   : >> { %2461 = vst [vmem:[#allocation2 + $0x160] sm:$0xff] %v2460_v12  ;;  %2637 = vst [vmem:[#allocation2 + $0x168] sm:$0xff] %v6970_v31 }
 0x3bc   : >> { %v2350_v32 = vshrl.u32 %v2309_v28, 16  ;;  %2522 = vrot.lane.b32.xlu0 %v2309_v28, %s6174_s10  ;;  %v2353_v29 = vshll.u32 %v2309_v28, 16 }
 0x3bd   : >> { %v2154_v16 = vpop.f32.mrb[20].mxu0 }
 0x3be   : >> { %v2156_v34 = vpop.f32.mrb[21].mxu0  ;;  %v2352_v35 = vrot.slane %v2350_v32, 7  ;;  %v2586_v9 = vrot.slane %v2353_v29, 1  ;;  %v2283_v37 = vmax.f32 %v2154_v16, 0.0 }
 0x3bf   : >> { %v2157_v25 = vpop.f32.mrb[22].mxu0 }
 0x3c0   : >> { %v2284_v38 = vmax.f32 %v2157_v25, 0.0  ;;  %v2159_v39 = vpop.f32.mrb[23].mxu0  ;;  %v2355_v40 = vor.u32 %v2353_v29, %v2352_v35  ;;  %v2587_v41 = vor.u32 %v2586_v9, %v2350_v32  ;;  %v2471_v32 = vld [vmem:[#allocation2 + $0x1a0] sm:$0xff]  ;;  %v2647_v29 = vld [vmem:[#allocation2 + $0x1a8] sm:$0xff] }
 0x3c2   : >> { %v2310_v42 = vpack.c.bf16 %v2284_v38, %v2283_v37  ;;  %v2463_v43 = vsel %vm6480_vm11, %v2355_v40, %v2462_v36  ;;  %v6978_v44 = vsel %vm6469_vm10, %v2587_v41, %v2638_v19 }
 0x3c3   : >> { %2464 = vst [vmem:[#allocation2 + $0x170] sm:$0xff] %v2463_v43  ;;  %2640 = vst [vmem:[#allocation2 + $0x178] sm:$0xff] %v6978_v44 }
 0x3c4   : >> { %v2357_v45 = vshrl.u32 %v2310_v42, 16  ;;  %2524 = vrot.lane.b32.xlu1 %v2310_v42, %s6174_s10  ;;  %v2360_v46 = vshll.u32 %v2310_v42, 16 }
 0x3c5   : >> { %v2162_v48 = vpop.f32.mrb[24].mxu0 }
 0x3c6   : >> { %v2164_v50 = vpop.f32.mrb[25].mxu0  ;;  %v2359_v49 = vrot.slane %v2357_v45, 7  ;;  %v2588_v51 = vrot.slane %v2360_v46, 1  ;;  %v2285_v58 = vmax.f32 %v2162_v48, 0.0  ;;  %v2650_v48 = vld [vmem:[#allocation2 + $0x1b8] sm:$0xff] }
 0x3c7   : >> { %v2165_v18 = vpop.f32.mrb[26].mxu0 }
 0x3c8   : >> { %v2286_v60 = vmax.f32 %v2165_v18, 0.0  ;;  %v2167_v61 = vpop.f32.mrb[27].mxu0  ;;  %v2362_v47 = vor.u32 %v2360_v46, %v2359_v49  ;;  %v2589_v52 = vor.u32 %v2588_v51, %v2357_v45  ;;  %v2474_v46 = vld [vmem:[#allocation2 + $0x1b0] sm:$0xff] }
 0x3ca   : >> { %v2311_v62 = vpack.c.bf16 %v2286_v60, %v2285_v58  ;;  %v2466_v56 = vsel %vm6480_vm11, %v2362_v47, %v2465_v30  ;;  %v6986_v63 = vsel %vm6469_vm10, %v2589_v52, %v2641_v54 }
 0x3cb   : >> { %2467 = vst [vmem:[#allocation2 + $0x180] sm:$0xff] %v2466_v56  ;;  %2643 = vst [vmem:[#allocation2 + $0x188] sm:$0xff] %v6986_v63 }
 0x3cc   : >> { %v2364_v0 = vshrl.u32 %v2311_v62, 16  ;;  %2526 = vrot.lane.b32.xlu0 %v2311_v62, %s6174_s10  ;;  %v2367_v1 = vshll.u32 %v2311_v62, 16 }
 0x3cd   : >> { %v2170_v27 = vpop.f32.mrb[28].mxu0 }
 0x3ce   : >> { %v2172_v2 = vpop.f32.mrb[29].mxu0  ;;  %v2366_v3 = vrot.slane %v2364_v0, 7  ;;  %v2590_v53 = vrot.slane %v2367_v1, 1  ;;  %v2287_v6 = vmax.f32 %v2170_v27, 0.0  ;;  %v2477_v27 = vld [vmem:[#allocation2 + $0x1c0] sm:$0xff] }
 0x3cf   : >> { %v2173_v57 = vpop.f32.mrb[30].mxu0  ;;  %v2653_v2 = vld [vmem:[#allocation2 + $0x1c8] sm:$0xff] }
 0x3d0   : >> { %v2288_v8 = vmax.f32 %v2173_v57, 0.0  ;;  %v2175_v10 = vpop.f32.mrb[31].mxu0  ;;  %v2369_v11 = vor.u32 %v2367_v1, %v2366_v3  ;;  %v2591_v13 = vor.u32 %v2590_v53, %v2364_v0 }
 0x3d2   : >> { %v2312_v14 = vpack.c.bf16 %v2288_v8, %v2287_v6  ;;  %v2469_v15 = vsel %vm6480_vm11, %v2369_v11, %v2468_v59  ;;  %v6994_v17 = vsel %vm6469_vm10, %v2591_v13, %v2644_v5 }
 0x3d3   : >> { %2470 = vst [vmem:[#allocation2 + $0x190] sm:$0xff] %v2469_v15  ;;  %2646 = vst [vmem:[#allocation2 + $0x198] sm:$0xff] %v6994_v17 }
 0x3d4   : >> { %v2371_v20 = vshrl.u32 %v2312_v14, 16  ;;  %2528 = vrot.lane.b32.xlu1 %v2312_v14, %s6174_s10  ;;  %v2374_v22 = vshll.u32 %v2312_v14, 16 }
 0x3d5   : >> { %v2178_v24 = vpop.f32.mrb[32].mxu0 }
 0x3d6   : >> { %v2180_v23 = vpop.f32.mrb[33].mxu0  ;;  %v2373_v26 = vrot.slane %v2371_v20, 7  ;;  %v2592_v28 = vrot.slane %v2374_v22, 1  ;;  %v2289_v16 = vmax.f32 %v2178_v24, 0.0 }
 0x3d7   : >> { %v2181_v12 = vpop.f32.mrb[34].mxu0  ;;  %v2480_v23 = vld [vmem:[#allocation2 + $0x1d0] sm:$0xff] }
 0x3d8   : >> { %v2290_v34 = vmax.f32 %v2181_v12, 0.0  ;;  %v2183_v35 = vpop.f32.mrb[35].mxu0  ;;  %v2376_v9 = vor.u32 %v2374_v22, %v2373_v26  ;;  %v2593_v25 = vor.u32 %v2592_v28, %v2371_v20  ;;  %v2656_v26 = vld [vmem:[#allocation2 + $0x1d8] sm:$0xff] }
 0x3da   : >> { %v2313_v36 = vpack.c.bf16 %v2290_v34, %v2289_v16  ;;  %v2472_v19 = vsel %vm6480_vm11, %v2376_v9, %v2471_v32  ;;  %v7002_v37 = vsel %vm6469_vm10, %v2593_v25, %v2647_v29 }
 0x3db   : >> { %2473 = vst [vmem:[#allocation2 + $0x1a0] sm:$0xff] %v2472_v19  ;;  %2649 = vst [vmem:[#allocation2 + $0x1a8] sm:$0xff] %v7002_v37 }
 0x3dc   : >> { %v2378_v38 = vshrl.u32 %v2313_v36, 16  ;;  %2530 = vrot.lane.b32.xlu0 %v2313_v36, %s6174_s10  ;;  %v2381_v39 = vshll.u32 %v2313_v36, 16 }
 0x3dd   : >> { %v2186_v40 = vpop.f32.mrb[36].mxu0 }
 0x3de   : >> { %v2188_v41 = vpop.f32.mrb[37].mxu0  ;;  %v2380_v42 = vrot.slane %v2378_v38, 7  ;;  %v2594_v43 = vrot.slane %v2381_v39, 1  ;;  %v2291_v50 = vmax.f32 %v2186_v40, 0.0 }
 0x3df   : >> { %v2189_v45 = vpop.f32.mrb[38].mxu0 }
 0x3e0   : >> { %v2292_v49 = vmax.f32 %v2189_v45, 0.0  ;;  %v2191_v51 = vpop.f32.mrb[39].mxu0  ;;  %v2383_v18 = vor.u32 %v2381_v39, %v2380_v42  ;;  %v2595_v30 = vor.u32 %v2594_v43, %v2378_v38  ;;  %v2483_v42 = vld [vmem:[#allocation2 + $0x1e0] sm:$0xff]  ;;  %v2659_v43 = vld [vmem:[#allocation2 + $0x1e8] sm:$0xff] }
 0x3e2   : >> { %v2314_v54 = vpack.c.bf16 %v2292_v49, %v2291_v50  ;;  %v2475_v58 = vsel %vm6480_vm11, %v2383_v18, %v2474_v46  ;;  %v7010_v60 = vsel %vm6469_vm10, %v2595_v30, %v2650_v48 }
 0x3e3   : >> { %2476 = vst [vmem:[#allocation2 + $0x1b0] sm:$0xff] %v2475_v58  ;;  %2652 = vst [vmem:[#allocation2 + $0x1b8] sm:$0xff] %v7010_v60 }
 0x3e4   : >> { %v2385_v61 = vshrl.u32 %v2314_v54, 16  ;;  %2532 = vrot.lane.b32.xlu1 %v2314_v54, %s6174_s10  ;;  %v2388_v47 = vshll.u32 %v2314_v54, 16 }
 0x3e5   : >> { %v2194_v52 = vpop.f32.mrb[40].mxu0 }
 0x3e6   : >> { %v2196_v62 = vpop.f32.mrb[41].mxu0  ;;  %v2387_v56 = vrot.slane %v2385_v61, 7  ;;  %v2596_v0 = vrot.slane %v2388_v47, 1  ;;  %v2293_v3 = vmax.f32 %v2194_v52, 0.0 }
 0x3e7   : >> { %v2197_v1 = vpop.f32.mrb[42].mxu0 }
 0x3e8   : >> { %v2294_v53 = vmax.f32 %v2197_v1, 0.0  ;;  %v2199_v57 = vpop.f32.mrb[43].mxu0  ;;  %v2390_v59 = vor.u32 %v2388_v47, %v2387_v56  ;;  %v2597_v5 = vor.u32 %v2596_v0, %v2385_v61  ;;  %v2486_v0 = vld [vmem:[#allocation2 + $0x1f0] sm:$0xff]  ;;  %v2662_v1 = vld [vmem:[#allocation2 + $0x1f8] sm:$0xff] }
 0x3ea   : >> { %v2315_v6 = vpack.c.bf16 %v2294_v53, %v2293_v3  ;;  %v2478_v8 = vsel %vm6480_vm11, %v2390_v59, %v2477_v27  ;;  %v7018_v10 = vsel %vm6469_vm10, %v2597_v5, %v2653_v2 }
 0x3eb   : >> { %2479 = vst [vmem:[#allocation2 + $0x1c0] sm:$0xff] %v2478_v8  ;;  %2655 = vst [vmem:[#allocation2 + $0x1c8] sm:$0xff] %v7018_v10 }
 0x3ec   : >> { %v2392_v11 = vshrl.u32 %v2315_v6, 16  ;;  %2534 = vrot.lane.b32.xlu0 %v2315_v6, %s6174_s10  ;;  %v2395_v13 = vshll.u32 %v2315_v6, 16 }
 0x3ed   : >> { %v2202_v14 = vpop.f32.mrb[44].mxu0 }
 0x3ee   : >> { %v2204_v15 = vpop.f32.mrb[45].mxu0  ;;  %v2394_v20 = vrot.slane %v2392_v11, 7  ;;  %v2598_v22 = vrot.slane %v2395_v13, 1  ;;  %v2295_v28 = vmax.f32 %v2202_v14, 0.0 }
 0x3ef   : >> { %v2205_v24 = vpop.f32.mrb[46].mxu0 }
 0x3f0   : >> { %v2296_v12 = vmax.f32 %v2205_v24, 0.0  ;;  %v2207_v32 = vpop.f32.mrb[47].mxu0  ;;  %v2397_v29 = vor.u32 %v2395_v13, %v2394_v20  ;;  %v2599_v16 = vor.u32 %v2598_v22, %v2392_v11  ;;  %v2489_v24 = vld [vmem:[#allocation2 + $0x200] sm:$0xff] }
 0x3f2   : >> { %v2316_v34 = vpack.c.bf16 %v2296_v12, %v2295_v28  ;;  %v2481_v35 = vsel %vm6480_vm11, %v2397_v29, %v2480_v23  ;;  %v7026_v9 = vsel %vm6469_vm10, %v2599_v16, %v2656_v26  ;;  %v2665_v23 = vld [vmem:[#allocation2 + $0x208] sm:$0xff] }
 0x3f3   : >> { %2482 = vst [vmem:[#allocation2 + $0x1d0] sm:$0xff] %v2481_v35  ;;  %2658 = vst [vmem:[#allocation2 + $0x1d8] sm:$0xff] %v7026_v9 }
 0x3f4   : >> { %v2399_v25 = vshrl.u32 %v2316_v34, 16  ;;  %2536 = vrot.lane.b32.xlu1 %v2316_v34, %s6174_s10  ;;  %v2402_v36 = vshll.u32 %v2316_v34, 16 }
 0x3f5   : >> { %v2210_v19 = vpop.f32.mrb[48].mxu0 }
 0x3f6   : >> { %v2212_v38 = vpop.f32.mrb[49].mxu0  ;;  %v2401_v39 = vrot.slane %v2399_v25, 7  ;;  %v2600_v40 = vrot.slane %v2402_v36, 1  ;;  %v2297_v45 = vmax.f32 %v2210_v19, 0.0 }
 0x3f7   : >> { %v2213_v41 = vpop.f32.mrb[50].mxu0 }
 0x3f8   : >> { %v2298_v46 = vmax.f32 %v2213_v41, 0.0  ;;  %v2215_v48 = vpop.f32.mrb[51].mxu0  ;;  %v2404_v50 = vor.u32 %v2402_v36, %v2401_v39  ;;  %v2601_v49 = vor.u32 %v2600_v40, %v2399_v25 }
 0x3fa   : >> { %v2317_v51 = vpack.c.bf16 %v2298_v46, %v2297_v45  ;;  %v2484_v18 = vsel %vm6480_vm11, %v2404_v50, %v2483_v42  ;;  %v7034_v30 = vsel %vm6469_vm10, %v2601_v49, %v2659_v43  ;;  %v2492_v43 = vld [vmem:[#allocation2 + $0x210] sm:$0xff]  ;;  %v2668_v45 = vld [vmem:[#allocation2 + $0x218] sm:$0xff] }
 0x3fb   : >> { %2485 = vst [vmem:[#allocation2 + $0x1e0] sm:$0xff] %v2484_v18  ;;  %2661 = vst [vmem:[#allocation2 + $0x1e8] sm:$0xff] %v7034_v30 }
 0x3fc   : >> { %v2406_v54 = vshrl.u32 %v2317_v51, 16  ;;  %2538 = vrot.lane.b32.xlu0 %v2317_v51, %s6174_s10  ;;  %v2409_v58 = vshll.u32 %v2317_v51, 16 }
 0x3fd   : >> { %v2218_v61 = vpop.f32.mrb[52].mxu0 }
 0x3fe   : >> { %v2220_v47 = vpop.f32.mrb[53].mxu0  ;;  %v2408_v52 = vrot.slane %v2406_v54, 7  ;;  %v2602_v62 = vrot.slane %v2409_v58, 1  ;;  %v2299_v27 = vmax.f32 %v2218_v61, 0.0 }
 0x3ff   : >> { %v2221_v56 = vpop.f32.mrb[54].mxu0  ;;  %v6075_v47 = vld [vmem:[%s6646_s9 + $0x120] sm:$0xff]  }
 0x400   : >> { %v2300_v2 = vmax.f32 %v2221_v56, 0.0  ;;  %v2223_v3 = vpop.f32.mrb[55].mxu0  ;;  %v2411_v53 = vor.u32 %v2409_v58, %v2408_v52  ;;  %v2603_v57 = vor.u32 %v2602_v62, %v2406_v54 }
 0x401   : >> { %v6076_v3 = vld [vmem:[%s6646_s9 + $0x128] sm:$0xff]  }
 0x402   : >> { %v2318_v59 = vpack.c.bf16 %v2300_v2, %v2299_v27  ;;  %v2487_v5 = vsel %vm6480_vm11, %v2411_v53, %v2486_v0  ;;  %v7042_v6 = vsel %vm6469_vm10, %v2603_v57, %v2662_v1  ;;  %v2495_v27 = vld [vmem:[#allocation2 + $0x220] sm:$0xff]  ;;  %v2671_v2 = vld [vmem:[#allocation2 + $0x228] sm:$0xff] }
 0x403   : >> { %2488 = vst [vmem:[#allocation2 + $0x1f0] sm:$0xff] %v2487_v5  ;;  %2664 = vst [vmem:[#allocation2 + $0x1f8] sm:$0xff] %v7042_v6 }
 0x404   : >> { %v2413_v8 = vshrl.u32 %v2318_v59, 16  ;;  %2540 = vrot.lane.b32.xlu1 %v2318_v59, %s6174_s10  ;;  %v2416_v11 = vshll.u32 %v2318_v59, 16 }
 0x405   : >> { %v2226_v13 = vpop.f32.mrb[56].mxu0 }
 0x406   : >> { %v2228_v14 = vpop.f32.mrb[57].mxu0  ;;  %v2415_v15 = vrot.slane %v2413_v8, 7  ;;  %v2604_v20 = vrot.slane %v2416_v11, 1  ;;  %v2301_v26 = vmax.f32 %v2226_v13, 0.0 }
 0x407   : >> { %v2229_v22 = vpop.f32.mrb[58].mxu0  ;;  %v6078_v14 = vld [vmem:[%s6646_s9 + $0x138] sm:$0xff]  }
 0x408   : >> { %v2302_v28 = vmax.f32 %v2229_v22, 0.0  ;;  %v2231_v12 = vpop.f32.mrb[59].mxu0  ;;  %v2418_v32 = vor.u32 %v2416_v11, %v2415_v15  ;;  %v2605_v29 = vor.u32 %v2604_v20, %v2413_v8  ;;  %v6077_v8 = vld [vmem:[%s6646_s9 + $0x130] sm:$0xff]   ;;  %v6079_v15 = vld [vmem:[%s6646_s9 + $0x140] sm:$0xff]  }
 0x409   : >> { %v6082_v12 = vld [vmem:[%s6646_s9 + $0x158] sm:$0xff]  }
 0x40a   : >> { %v2319_v16 = vpack.c.bf16 %v2302_v28, %v2301_v26  ;;  %v2490_v34 = vsel %vm6480_vm11, %v2418_v32, %v2489_v24  ;;  %v7050_v35 = vsel %vm6469_vm10, %v2605_v29, %v2665_v23  ;;  %v6080_v24 = vld [vmem:[%s6646_s9 + $0x148] sm:$0xff]   ;;  %v6081_v23 = vld [vmem:[%s6646_s9 + $0x150] sm:$0xff]   ;;  %v6083_v32 = vld [vmem:[%s6646_s9 + $0x160] sm:$0xff]  }
 0x40b   : >> { %2491 = vst [vmem:[#allocation2 + $0x200] sm:$0xff] %v2490_v34  ;;  %2667 = vst [vmem:[#allocation2 + $0x208] sm:$0xff] %v7050_v35  ;;  %v6084_v34 = vld [vmem:[%s6646_s9 + $0x168] sm:$0xff]  }
 0x40c   : >> { %v2420_v25 = vshrl.u32 %v2319_v16, 16  ;;  %2542 = vrot.lane.b32.xlu0 %v2319_v16, %s6174_s10  ;;  %v2423_v36 = vshll.u32 %v2319_v16, 16 }
 0x40d   : >> { %v2234_v19 = vpop.f32.mrb[60].mxu0 }
 0x40e   : >> { %v2515_v38 = vpop.permute.xlu0 %2514  ;;  %v2236_v39 = vpop.f32.mrb[61].mxu0  ;;  %v2422_v40 = vrot.slane %v2420_v25, 7  ;;  %v2606_v41 = vrot.slane %v2423_v36, 1  ;;  %v2303_v46 = vmax.f32 %v2234_v19, 0.0 }
 0x40f   : >> { %2562 = vst.msk [vmem:[#allocation2 + $0x130] sm:$0xff] %vm1098_vm12, %v2515_v38  ;;  %v2237_v42 = vpop.f32.mrb[62].mxu0  ;;  %v6086_v38 = vld [vmem:[%s6646_s9 + $0x178] sm:$0xff]  }
 0x410   : >> { %v2304_v48 = vmax.f32 %v2237_v42, 0.0  ;;  %v2239_v50 = vpop.f32.mrb[63].mxu0  ;;  %v2425_v49 = vor.u32 %v2423_v36, %v2422_v40  ;;  %v2607_v51 = vor.u32 %v2606_v41, %v2420_v25  ;;  %v6085_v25 = vld [vmem:[%s6646_s9 + $0x170] sm:$0xff]  }
 0x412   : >> { %v2320_v18 = vpack.c.bf16 %v2304_v48, %v2303_v46  ;;  %v2493_v54 = vsel %vm6480_vm11, %v2425_v49, %v2492_v43  ;;  %v7059_v58 = vsel %vm6469_vm10, %v2607_v51, %v2668_v45 }
 0x413   : >> { %2494 = vst [vmem:[#allocation2 + $0x210] sm:$0xff] %v2493_v54  ;;  %2670 = vst [vmem:[#allocation2 + $0x218] sm:$0xff] %v7059_v58 }
 0x414   : >> { %v2427_v61 = vshrl.u32 %v2320_v18, 16  ;;  %2544 = vrot.lane.b32.xlu1 %v2320_v18, %s6174_s10  ;;  %v2430_v52 = vshll.u32 %v2320_v18, 16 }
 0x416   : >> { %v2517_v62 = vpop.permute.xlu0 %2516  ;;  %v7064_v56 = vld [vmem:[#allocation2 + $0x130] sm:$0xff]  ;;  %v2429_v0 = vrot.slane %v2427_v61, 7  ;;  %v2608_v1 = vrot.slane %v2430_v52, 1 }
 0x417   : >> { %2563 = vst.msk [vmem:[#allocation2 + $0x140] sm:$0xff] %vm1098_vm12, %v2517_v62  ;;  %2947 = vmatmul.mubr.bf16.vlgmr.msra.gmra.mrb[0].mxu1 %v7064_v56 }
 0x418   : >> { %5539 = vmatprep.mubr.msk.bf16.mxu1 %vm245_vm1, %v6954_v21  ;;  %3196 = vmatpush1.bf16.msra.mxu1 %v6075_v47  ;;  %v2432_v53 = vor.u32 %v2430_v52, %v2429_v0  ;;  %v2609_v57 = vor.u32 %v2608_v1, %v2427_v61  ;;  %v2677_v1 = vld [vmem:[#allocation2 + $0x128] sm:$0xff] }
 0x419   : >> { %3197 = vmatprep.subr.bf16.mxu1 %v6173_v55 }
 0x41a   : >> { %v2496_v59 = vsel %vm6480_vm11, %v2432_v53, %v2495_v27  ;;  %v7076_v5 = vsel %vm6469_vm10, %v2609_v57, %v2671_v2  ;;  %v2676_v2 = vld [vmem:[#allocation2 + $0x120] sm:$0xff]  ;;  %v2679_v53 = vld [vmem:[#allocation2 + $0x138] sm:$0xff]  ;;  %v6088_v57 = vld [vmem:[%s6646_s9 + $0x1e8] sm:$0xff]  }
 0x41b   : >> { %2497 = vst [vmem:[#allocation2 + $0x220] sm:$0xff] %v2496_v59  ;;  %2673 = vst [vmem:[#allocation2 + $0x228] sm:$0xff] %v7076_v5  ;;  %v6089_v59 = vld [vmem:[%s6646_s9 + $0x1f0] sm:$0xff]  }
 0x41c   : >> { %3198 = vmatpush1.bf16.msra.mxu1 %v6076_v3  ;;  %v6087_v3 = vld [vmem:[%s6646_s9 + $0x1e0] sm:$0xff]  }
 0x41d   : >> { %3199 = vmatprep.subr.bf16.mxu1 %v6173_v55 }
 0x41e   : >> { %v2519_v11 = vpop.permute.xlu1 %2518  ;;  %v7081_v13 = vld [vmem:[#allocation2 + $0x140] sm:$0xff] }
 0x41f   : >> { %2564 = vst.msk [vmem:[#allocation2 + $0x150] sm:$0xff] %vm1098_vm12, %v2519_v11  ;;  %2955 = vmatmul.mubr.bf16.gmra.mrb[4].mxu1 %v7081_v13  ;;  %v6091_v11 = vld [vmem:[%s6646_s9 + $0x200] sm:$0xff]  }
 0x420   : >> { %5540 = vmatprep.mubr.msk.bf16.mxu1 %vm245_vm1, %v6962_v4  ;;  %3200 = vmatpush1.bf16.msra.mxu1 %v6077_v8  ;;  %v6090_v8 = vld [vmem:[%s6646_s9 + $0x1f8] sm:$0xff]  }
 0x421   : >> { %3201 = vmatprep.subr.bf16.mxu1 %v6173_v55 }
 0x424   : >> { %3202 = vmatpush1.bf16.msra.mxu1 %v6078_v14  ;;  %v6093_v14 = vld [vmem:[%s6646_s9 + $0x210] sm:$0xff]  }
 0x425   : >> { %3203 = vmatprep.subr.bf16.mxu1 %v6173_v55 }
 0x426   : >> { %v2521_v20 = vpop.permute.xlu1 %2520  ;;  %v7091_v22 = vld [vmem:[#allocation2 + $0x150] sm:$0xff] }
 0x427   : >> { %2565 = vst.msk [vmem:[#allocation2 + $0x160] sm:$0xff] %vm1098_vm12, %v2521_v20  ;;  %2963 = vmatmul.mubr.bf16.gmra.mrb[8].mxu1 %v7091_v22  ;;  %v6095_v20 = vld [vmem:[%s6646_s9 + $0x220] sm:$0xff]  }
 0x428   : >> { %5541 = vmatprep.mubr.msk.bf16.mxu1 %vm245_vm1, %v6970_v31  ;;  %3204 = vmatpush1.bf16.msra.mxu1 %v6079_v15  ;;  %v6094_v15 = vld [vmem:[%s6646_s9 + $0x218] sm:$0xff]  }
 0x429   : >> { %3205 = vmatprep.subr.bf16.mxu1 %v6173_v55 }
 0x42c   : >> { %3206 = vmatpush1.bf16.msra.mxu1 %v6080_v24  ;;  %v6096_v24 = vld [vmem:[%s6646_s9 + $0x228] sm:$0xff]  }
 0x42d   : >> { %3207 = vmatprep.subr.bf16.mxu1 %v6173_v55 }
 0x42e   : >> { %v2523_v26 = vpop.permute.xlu0 %2522  ;;  %v7101_v28 = vld [vmem:[#allocation2 + $0x160] sm:$0xff] }
 0x42f   : >> { %2566 = vst.msk [vmem:[#allocation2 + $0x170] sm:$0xff] %vm1098_vm12, %v2523_v26  ;;  %2971 = vmatmul.mubr.bf16.gmra.mrb[12].mxu1 %v7101_v28  ;;  %v6098_v26 = vld [vmem:[%s6646_s9 + $0x238] sm:$0xff]  }
 0x430   : >> { %5542 = vmatprep.mubr.msk.bf16.mxu1 %vm245_vm1, %v6978_v44  ;;  %3208 = vmatpush1.bf16.msra.mxu1 %v6081_v23  ;;  %v6097_v23 = vld [vmem:[%s6646_s9 + $0x230] sm:$0xff]  }
 0x431   : >> { %3209 = vmatprep.subr.bf16.mxu1 %v6173_v55 }
 0x434   : >> { %3210 = vmatpush1.bf16.msra.mxu1 %v6082_v12 }
 0x435   : >> { %3211 = vmatprep.subr.bf16.mxu1 %v6173_v55 }
 0x436   : >> { %v2525_v29 = vpop.permute.xlu1 %2524  ;;  %v7111_v16 = vld [vmem:[#allocation2 + $0x170] sm:$0xff] }
 0x437   : >> { %2567 = vst.msk [vmem:[#allocation2 + $0x180] sm:$0xff] %vm1098_vm12, %v2525_v29  ;;  %2979 = vmatmul.mubr.bf16.gmra.mrb[16].mxu1 %v7111_v16 }
 0x438   : >> { %5543 = vmatprep.mubr.msk.bf16.mxu1 %vm245_vm1, %v6986_v63  ;;  %3212 = vmatpush1.bf16.msra.mxu1 %v6083_v32 }
 0x439   : >> { %3213 = vmatprep.subr.bf16.mxu1 %v6173_v55 }
 0x43c   : >> { %3214 = vmatpush1.bf16.msra.mxu1 %v6084_v34 }
 0x43d   : >> { %3215 = vmatprep.subr.bf16.mxu1 %v6173_v55 }
 0x43e   : >> { %v2527_v36 = vpop.permute.xlu0 %2526  ;;  %v7121_v19 = vld [vmem:[#allocation2 + $0x180] sm:$0xff] }
 0x43f   : >> { %2568 = vst.msk [vmem:[#allocation2 + $0x190] sm:$0xff] %vm1098_vm12, %v2527_v36  ;;  %2987 = vmatmul.mubr.bf16.gmra.mrb[20].mxu1 %v7121_v19 }
 0x440   : >> { %5544 = vmatprep.mubr.msk.bf16.mxu1 %vm245_vm1, %v6994_v17  ;;  %3216 = vmatpush1.bf16.msra.mxu1 %v6085_v25 }
 0x441   : >> { %3217 = vmatprep.subr.bf16.mxu1 %v6173_v55 }
 0x444   : >> { %3218 = vmatpush1.bf16.msra.mxu1 %v6086_v38 }
 0x445   : >> { %3536 = vmatprep.subr.bf16.mxu1 %v6173_v55 }
 0x446   : >> { %v2529_v39 = vpop.permute.xlu1 %2528  ;;  %v7130_v40 = vld [vmem:[#allocation2 + $0x190] sm:$0xff] }
 0x447   : >> { %2569 = vst.msk [vmem:[#allocation2 + $0x1a0] sm:$0xff] %vm1098_vm12, %v2529_v39  ;;  %2995 = vmatmul.mubr.bf16.gmra.mrb[24].mxu1 %v7130_v40 }
 0x448   : >> { %5545 = vmatprep.mubr.msk.bf16.mxu1 %vm245_vm1, %v7002_v37 }
 0x44e   : >> { %v2531_v41 = vpop.permute.xlu0 %2530  ;;  %v7136_v42 = vld [vmem:[#allocation2 + $0x1a0] sm:$0xff] }
 0x44f   : >> { %2570 = vst.msk [vmem:[#allocation2 + $0x1b0] sm:$0xff] %vm1098_vm12, %v2531_v41  ;;  %3003 = vmatmul.mubr.bf16.gmra.mrb[28].mxu1 %v7136_v42 }
 0x450   : >> { %5546 = vmatprep.mubr.msk.bf16.mxu1 %vm245_vm1, %v7010_v60 }
 0x456   : >> { %v2533_v43 = vpop.permute.xlu1 %2532  ;;  %v7142_v45 = vld [vmem:[#allocation2 + $0x1b0] sm:$0xff] }
 0x457   : >> { %2571 = vst.msk [vmem:[#allocation2 + $0x1c0] sm:$0xff] %vm1098_vm12, %v2533_v43  ;;  %3011 = vmatmul.mubr.bf16.gmra.mrb[32].mxu1 %v7142_v45  ;;  %v4084_v43 = vld [vmem:[#allocation2 + $0x28] sm:$0xff] }
 0x458   : >> { %5547 = vmatprep.mubr.msk.bf16.mxu1 %vm245_vm1, %v7018_v10 }
 0x45e   : >> { %v2535_v46 = vpop.permute.xlu0 %2534  ;;  %v7148_v48 = vld [vmem:[#allocation2 + $0x1c0] sm:$0xff] }
 0x45f   : >> { %2572 = vst.msk [vmem:[#allocation2 + $0x1d0] sm:$0xff] %vm1098_vm12, %v2535_v46  ;;  %3019 = vmatmul.mubr.bf16.gmra.mrb[36].mxu1 %v7148_v48  ;;  %v3908_v46 = vld [vmem:[#allocation2 + $0x20] sm:$0xff] }
 0x460   : >> { %5548 = vmatprep.mubr.msk.bf16.mxu1 %vm245_vm1, %v7026_v9 }
 0x466   : >> { %v2537_v50 = vpop.permute.xlu1 %2536  ;;  %v7154_v49 = vld [vmem:[#allocation2 + $0x1d0] sm:$0xff] }
 0x467   : >> { %2573 = vst.msk [vmem:[#allocation2 + $0x1e0] sm:$0xff] %vm1098_vm12, %v2537_v50  ;;  %3027 = vmatmul.mubr.bf16.gmra.mrb[40].mxu1 %v7154_v49 }
 0x468   : >> { %5549 = vmatprep.mubr.msk.bf16.mxu1 %vm245_vm1, %v7034_v30 }
 0x46e   : >> { %v2539_v51 = vpop.permute.xlu0 %2538  ;;  %v7160_v18 = vld [vmem:[#allocation2 + $0x1e0] sm:$0xff] }
 0x46f   : >> { %2574 = vst.msk [vmem:[#allocation2 + $0x1f0] sm:$0xff] %vm1098_vm12, %v2539_v51  ;;  %3035 = vmatmul.mubr.bf16.gmra.mrb[44].mxu1 %v7160_v18 }
 0x470   : >> { %5550 = vmatprep.mubr.msk.bf16.mxu1 %vm245_vm1, %v7042_v6 }
 0x476   : >> { %v2541_v54 = vpop.permute.xlu1 %2540  ;;  %v7166_v61 = vld [vmem:[#allocation2 + $0x1f0] sm:$0xff] }
 0x477   : >> { %2575 = vst.msk [vmem:[#allocation2 + $0x200] sm:$0xff] %vm1098_vm12, %v2541_v54  ;;  %3043 = vmatmul.mubr.bf16.gmra.mrb[48].mxu1 %v7166_v61 }
 0x478   : >> { %5551 = vmatprep.mubr.msk.bf16.mxu1 %vm245_vm1, %v7050_v35 }
 0x47e   : >> { %v2543_v47 = vpop.permute.xlu0 %2542  ;;  %v7172_v52 = vld [vmem:[#allocation2 + $0x200] sm:$0xff] }
 0x47f   : >> { %2576 = vst.msk [vmem:[#allocation2 + $0x210] sm:$0xff] %vm1098_vm12, %v2543_v47  ;;  %3051 = vmatmul.mubr.bf16.gmra.mrb[52].mxu1 %v7172_v52 }
 0x480   : >> { %5552 = vmatprep.mubr.msk.bf16.mxu1 %vm245_vm1, %v7059_v58 }
 0x486   : >> { %v2545_v62 = vpop.permute.xlu1 %2544  ;;  %v7178_v0 = vld [vmem:[#allocation2 + $0x210] sm:$0xff] }
 0x487   : >> { %2577 = vst.msk [vmem:[#allocation2 + $0x220] sm:$0xff] %vm1098_vm12, %v2545_v62  ;;  %3059 = vmatmul.mubr.bf16.gmra.mrb[56].mxu1 %v7178_v0 }
 0x488   : >> { %5553 = vmatprep.mubr.msk.bf16.mxu1 %vm245_vm1, %v7076_v5 }
 0x48e   : >> { %v7184_v27 = vld [vmem:[#allocation2 + $0x220] sm:$0xff] }
 0x48f   : >> { %3067 = vmatmul.mubr.bf16.gmra.mrb[60].mxu1 %v7184_v27 }
 0x490   : >> { %5566 = vmatprep.mubr.msk.bf16.mxu1 %vm245_vm1, %v2677_v1 }
 0x497   : >> { %3228 = vmatmul.mubr.bf16.vlgmr.msra.gmra.mrb[0].mxu1 %v2676_v2 }
 0x498   : >> { %5567 = vmatprep.mubr.msk.bf16.mxu1 %vm245_vm1, %v2679_v53  ;;  %3537 = vmatpush1.bf16.msra.mxu1 %v6087_v3  ;;  %v4087_v3 = vld [vmem:[#allocation2 + $0x38] sm:$0xff] }
 0x499   : >> { %3538 = vmatprep.subr.bf16.mxu1 %v6173_v55 }
 0x49c   : >> { %3539 = vmatpush1.bf16.msra.mxu1 %v6088_v57  ;;  %v3911_v57 = vld [vmem:[#allocation2 + $0x30] sm:$0xff] }
 0x49d   : >> { %3540 = vmatprep.subr.bf16.mxu1 %v6173_v55 }
 0x49f   : >> { %3236 = vmatmul.mubr.bf16.gmra.mrb[4].mxu1 %v7064_v56  ;;  %v6092_v56 = vld [vmem:[%s6646_s9 + $0x208] sm:$0xff]   ;;  %s6175_s9 = smov (%p1215_p11), [#allocation3]  }
 0x4a0   : >> { %5568 = vmatprep.mubr.msk.bf16.mxu1 %vm245_vm1, %v6954_v21  ;;  %3541 = vmatpush1.bf16.msra.mxu1 %v6089_v59 }
 0x4a1   : >> { %3542 = vmatprep.subr.bf16.mxu1 %v6173_v55 }
 0x4a4   : >> { %3543 = vmatpush1.bf16.msra.mxu1 %v6090_v8 }
 0x4a5   : >> { %3544 = vmatprep.subr.bf16.mxu1 %v6173_v55 }
 0x4a7   : >> { %3244 = vmatmul.mubr.bf16.gmra.mrb[8].mxu1 %v7081_v13 }
 0x4a8   : >> { %5569 = vmatprep.mubr.msk.bf16.mxu1 %vm245_vm1, %v6962_v4  ;;  %3545 = vmatpush1.bf16.msra.mxu1 %v6091_v11 }
 0x4a9   : >> { %3546 = vmatprep.subr.bf16.mxu1 %v6173_v55 }
 0x4ac   : >> { %3547 = vmatpush1.bf16.msra.mxu1 %v6092_v56 }
 0x4ad   : >> { %3548 = vmatprep.subr.bf16.mxu1 %v6173_v55 }
 0x4af   : >> { %3252 = vmatmul.mubr.bf16.gmra.mrb[12].mxu1 %v7091_v22 }
 0x4b0   : >> { %5570 = vmatprep.mubr.msk.bf16.mxu1 %vm245_vm1, %v6970_v31  ;;  %3549 = vmatpush1.bf16.msra.mxu1 %v6093_v14 }
 0x4b1   : >> { %3550 = vmatprep.subr.bf16.mxu1 %v6173_v55 }
 0x4b4   : >> { %3551 = vmatpush1.bf16.msra.mxu1 %v6094_v15 }
 0x4b5   : >> { %3552 = vmatprep.subr.bf16.mxu1 %v6173_v55 }
 0x4b7   : >> { %3260 = vmatmul.mubr.bf16.gmra.mrb[16].mxu1 %v7101_v28 }
 0x4b8   : >> { %5571 = vmatprep.mubr.msk.bf16.mxu1 %vm245_vm1, %v6978_v44  ;;  %3553 = vmatpush1.bf16.msra.mxu1 %v6095_v20 }
 0x4b9   : >> { %3554 = vmatprep.subr.bf16.mxu1 %v6173_v55 }
 0x4bc   : >> { %3555 = vmatpush1.bf16.msra.mxu1 %v6096_v24 }
 0x4bd   : >> { %3556 = vmatprep.subr.bf16.mxu1 %v6173_v55 }
 0x4bf   : >> { %3268 = vmatmul.mubr.bf16.gmra.mrb[20].mxu1 %v7111_v16 }
 0x4c0   : >> { %5572 = vmatprep.mubr.msk.bf16.mxu1 %vm245_vm1, %v6986_v63  ;;  %3557 = vmatpush1.bf16.msra.mxu1 %v6097_v23 }
 0x4c1   : >> { %3558 = vmatprep.subr.bf16.mxu1 %v6173_v55  ;;  %v3388_v55 = vld [vmem:[#allocation2 + $0x238] sm:$0xff] }
 0x4c4   : >> { %3559 = vmatpush1.bf16.msra.mxu1 %v6098_v26 }
 0x4c7   : >> { %3276 = vmatmul.mubr.bf16.gmra.mrb[24].mxu1 %v7121_v19 }
 0x4c8   : >> { %5573 = vmatprep.mubr.msk.bf16.mxu1 %vm245_vm1, %v6994_v17 }
 0x4cf   : >> { %3284 = vmatmul.mubr.bf16.gmra.mrb[28].mxu1 %v7130_v40 }
 0x4d0   : >> { %5574 = vmatprep.mubr.msk.bf16.mxu1 %vm245_vm1, %v7002_v37 }
 0x4d7   : >> { %3292 = vmatmul.mubr.bf16.gmra.mrb[32].mxu1 %v7136_v42 }
 0x4d8   : >> { %5575 = vmatprep.mubr.msk.bf16.mxu1 %vm245_vm1, %v7010_v60 }
 0x4df   : >> { %3300 = vmatmul.mubr.bf16.gmra.mrb[36].mxu1 %v7142_v45 }
 0x4e0   : >> { %5576 = vmatprep.mubr.msk.bf16.mxu1 %vm245_vm1, %v7018_v10 }
 0x4e7   : >> { %3308 = vmatmul.mubr.bf16.gmra.mrb[40].mxu1 %v7148_v48 }
 0x4e8   : >> { %5577 = vmatprep.mubr.msk.bf16.mxu1 %vm245_vm1, %v7026_v9 }
 0x4ef   : >> { %3316 = vmatmul.mubr.bf16.gmra.mrb[44].mxu1 %v7154_v49 }
 0x4f0   : >> { %5578 = vmatprep.mubr.msk.bf16.mxu1 %vm245_vm1, %v7034_v30 }
 0x4f7   : >> { %3324 = vmatmul.mubr.bf16.gmra.mrb[48].mxu1 %v7160_v18 }
 0x4f8   : >> { %5579 = vmatprep.mubr.msk.bf16.mxu1 %vm245_vm1, %v7042_v6 }
 0x4ff   : >> { %3332 = vmatmul.mubr.bf16.gmra.mrb[52].mxu1 %v7166_v61 }
 0x500   : >> { %5580 = vmatprep.mubr.msk.bf16.mxu1 %vm245_vm1, %v7050_v35 }
 0x507   : >> { %3340 = vmatmul.mubr.bf16.gmra.mrb[56].mxu1 %v7172_v52 }
 0x508   : >> { %5581 = vmatprep.mubr.msk.bf16.mxu1 %vm245_vm1, %v7059_v58 }
 0x50f   : >> { %3348 = vmatmul.mubr.bf16.gmra.mrb[60].mxu1 %v7178_v0 }
 0x510   : >> { %5621 = vmatprep.mubr.msk.bf16.mxu1 %vm245_vm1, %v6954_v21  ;;  %v3387_v21 = vld [vmem:[#allocation2 + $0x230] sm:$0xff] }
 0x517   : >> { %3569 = vmatmul.mubr.bf16.vlgmr.msra.gmra.mrb[0].mxu1 %v7081_v13 }
 0x518   : >> { %5622 = vmatprep.mubr.msk.bf16.mxu1 %vm245_vm1, %v6962_v4 }
 0x51f   : >> { %3577 = vmatmul.mubr.bf16.gmra.mrb[4].mxu1 %v7091_v22  ;;  %v3905_v22 = vld [vmem:[#allocation2 + $0x10] sm:$0xff] }
 0x520   : >> { %5623 = vmatprep.mubr.msk.bf16.mxu1 %vm245_vm1, %v6970_v31 }
 0x527   : >> { %3585 = vmatmul.mubr.bf16.gmra.mrb[8].mxu1 %v7101_v28 }
 0x528   : >> { %5624 = vmatprep.mubr.msk.bf16.mxu1 %vm245_vm1, %v6978_v44 }
 0x52f   : >> { %3593 = vmatmul.mubr.bf16.gmra.mrb[12].mxu1 %v7111_v16 }
 0x530   : >> { %5625 = vmatprep.mubr.msk.bf16.mxu1 %vm245_vm1, %v6986_v63 }
 0x537   : >> { %3601 = vmatmul.mubr.bf16.gmra.mrb[16].mxu1 %v7121_v19 }
 0x538   : >> { %5626 = vmatprep.mubr.msk.bf16.mxu1 %vm245_vm1, %v6994_v17 }
 0x53f   : >> { %3609 = vmatmul.mubr.bf16.gmra.mrb[20].mxu1 %v7130_v40 }
 0x540   : >> { %5627 = vmatprep.mubr.msk.bf16.mxu1 %vm245_vm1, %v7002_v37 }
 0x547   : >> { %3617 = vmatmul.mubr.bf16.gmra.mrb[24].mxu1 %v7136_v42 }
 0x548   : >> { %5628 = vmatprep.mubr.msk.bf16.mxu1 %vm245_vm1, %v7010_v60 }
 0x54f   : >> { %3625 = vmatmul.mubr.bf16.gmra.mrb[28].mxu1 %v7142_v45 }
 0x550   : >> { %5629 = vmatprep.mubr.msk.bf16.mxu1 %vm245_vm1, %v7018_v10 }
 0x557   : >> { %3633 = vmatmul.mubr.bf16.gmra.mrb[32].mxu1 %v7148_v48 }
 0x558   : >> { %5630 = vmatprep.mubr.msk.bf16.mxu1 %vm245_vm1, %v7026_v9 }
 0x55f   : >> { %3641 = vmatmul.mubr.bf16.gmra.mrb[36].mxu1 %v7154_v49 }
 0x560   : >> { %5631 = vmatprep.mubr.msk.bf16.mxu1 %vm245_vm1, %v7034_v30 }
 0x567   : >> { %3649 = vmatmul.mubr.bf16.gmra.mrb[40].mxu1 %v7160_v18 }
 0x568   : >> { %5632 = vmatprep.mubr.msk.bf16.mxu1 %vm245_vm1, %v7042_v6 }
 0x56f   : >> { %3657 = vmatmul.mubr.bf16.gmra.mrb[44].mxu1 %v7166_v61 }
 0x570   : >> { %5633 = vmatprep.mubr.msk.bf16.mxu1 %vm245_vm1, %v7050_v35 }
 0x577   : >> { %3665 = vmatmul.mubr.bf16.gmra.mrb[48].mxu1 %v7172_v52 }
 0x578   : >> { %5634 = vmatprep.mubr.msk.bf16.mxu1 %vm245_vm1, %v7059_v58 }
 0x57f   : >> { %3673 = vmatmul.mubr.bf16.gmra.mrb[52].mxu1 %v7178_v0 }
 0x580   : >> { %5635 = vmatprep.mubr.msk.bf16.mxu1 %vm245_vm1, %v7076_v5  ;;  %v4081_v5 = vld [vmem:[#allocation2 + $0x18] sm:$0xff] }
 0x587   : >> { %3681 = vmatmul.mubr.bf16.gmra.mrb[56].mxu1 %v7184_v27 }
 0x588   : >> { %5636 = vmatprep.mubr.msk.bf16.mxu1 %vm245_vm1, %v3388_v55 }
 0x58f   : >> { %3689 = vmatmul.mubr.bf16.gmra.mrb[60].mxu1 %v3387_v21 }
 0x5ea   : >> { %v3570_v4 = vpop.f32.mrb[0].mxu1 }
 0x5eb   : >> { %v3572_v31 = vpop.f32.mrb[1].mxu1  ;;  %v3729_v63 = vmax.f32 %v3570_v4, 0.0 }
 0x5ec   : >> { %v3573_v44 = vpop.f32.mrb[2].mxu1 }
 0x5ed   : >> { %v3730_v17 = vmax.f32 %v3573_v44, 0.0  ;;  %v3575_v37 = vpop.f32.mrb[3].mxu1  ;;  %v4090_v44 = vld [vmem:[#allocation2 + $0x48] sm:$0xff] }
 0x5ef   : >> { %v3761_v60 = vpack.c.bf16 %v3730_v17, %v3729_v63  ;;  %v3914_v17 = vld [vmem:[#allocation2 + $0x40] sm:$0xff] }
 0x5f1   : >> { %v3778_v10 = vshrl.u32 %v3761_v60, 16  ;;  %v3781_v9 = vshll.u32 %v3761_v60, 16  ;;  %3969 = vrot.lane.b32.xlu0 %v3761_v60, %s6174_s10 }
 0x5f2   : >> { %v3578_v30 = vpop.f32.mrb[4].mxu1 }
 0x5f3   : >> { %v3780_v6 = vrot.slane %v3778_v10, 7  ;;  %v4033_v35 = vrot.slane %v3781_v9, 1  ;;  %v3580_v58 = vpop.f32.mrb[5].mxu1  ;;  %v3731_v12 = vmax.f32 %v3578_v30, 0.0 }
 0x5f4   : >> { %v3581_v13 = vpop.f32.mrb[6].mxu1 }
 0x5f5   : >> { %v4034_v28 = vor.u32 %v4033_v35, %v3778_v10  ;;  %v3732_v32 = vmax.f32 %v3581_v13, 0.0  ;;  %v3583_v29 = vpop.f32.mrb[7].mxu1  ;;  %v3783_v16 = vor.u32 %v3781_v9, %v3780_v6 }
 0x5f6   : >> { %v4093_v29 = vld [vmem:[#allocation2 + $0x58] sm:$0xff] }
 0x5f7   : >> { %v4082_v34 = vsel %vm6469_vm10, %v4034_v28, %v4081_v5  ;;  %v3762_v25 = vpack.c.bf16 %v3732_v32, %v3731_v12  ;;  %v3906_v36 = vsel %vm6480_vm11, %v3783_v16, %v3905_v22 }
 0x5f8   : >> { %4083 = vst [vmem:[#allocation2 + $0x18] sm:$0xff] %v4082_v34  ;;  %3907 = vst [vmem:[#allocation2 + $0x10] sm:$0xff] %v3906_v36  ;;  %v3917_v34 = vld [vmem:[#allocation2 + $0x50] sm:$0xff] }
 0x5f9   : >> { %v3785_v19 = vshrl.u32 %v3762_v25, 16  ;;  %v3788_v38 = vshll.u32 %v3762_v25, 16  ;;  %3971 = vrot.lane.b32.xlu1 %v3762_v25, %s6174_s10 }
 0x5fa   : >> { %v3586_v39 = vpop.f32.mrb[8].mxu1 }
 0x5fb   : >> { %v3787_v40 = vrot.slane %v3785_v19, 7  ;;  %v4035_v41 = vrot.slane %v3788_v38, 1  ;;  %v3588_v42 = vpop.f32.mrb[9].mxu1  ;;  %v3733_v49 = vmax.f32 %v3586_v39, 0.0 }
 0x5fc   : >> { %v3589_v45 = vpop.f32.mrb[10].mxu1 }
 0x5fd   : >> { %v3790_v48 = vor.u32 %v3788_v38, %v3787_v40  ;;  %v4036_v50 = vor.u32 %v4035_v41, %v3785_v19  ;;  %v3734_v51 = vmax.f32 %v3589_v45, 0.0  ;;  %v3591_v18 = vpop.f32.mrb[11].mxu1 }
 0x5ff   : >> { %v4085_v54 = vsel %vm6469_vm10, %v4036_v50, %v4084_v43  ;;  %v3763_v61 = vpack.c.bf16 %v3734_v51, %v3733_v49  ;;  %v3909_v47 = vsel %vm6480_vm11, %v3790_v48, %v3908_v46  ;;  %v4096_v51 = vld [vmem:[#allocation2 + $0x68] sm:$0xff] }
 0x600   : >> { %4086 = vst [vmem:[#allocation2 + $0x28] sm:$0xff] %v4085_v54  ;;  %3910 = vst [vmem:[#allocation2 + $0x20] sm:$0xff] %v3909_v47  ;;  %v3920_v54 = vld [vmem:[#allocation2 + $0x60] sm:$0xff] }
 0x601   : >> { %v3792_v52 = vshrl.u32 %v3763_v61, 16  ;;  %v3795_v62 = vshll.u32 %v3763_v61, 16  ;;  %3973 = vrot.lane.b32.xlu0 %v3763_v61, %s6174_s10 }
 0x602   : >> { %v3594_v0 = vpop.f32.mrb[12].mxu1 }
 0x603   : >> { %v3794_v1 = vrot.slane %v3792_v52, 7  ;;  %v4037_v27 = vrot.slane %v3795_v62, 1  ;;  %v3596_v2 = vpop.f32.mrb[13].mxu1  ;;  %v3735_v11 = vmax.f32 %v3594_v0, 0.0 }
 0x604   : >> { %v3597_v53 = vpop.f32.mrb[14].mxu1 }
 0x605   : >> { %v3797_v59 = vor.u32 %v3795_v62, %v3794_v1  ;;  %v4038_v8 = vor.u32 %v4037_v27, %v3792_v52  ;;  %v3736_v56 = vmax.f32 %v3597_v53, 0.0  ;;  %v3599_v14 = vpop.f32.mrb[15].mxu1 }
 0x607   : >> { %v4088_v15 = vsel %vm6469_vm10, %v4038_v8, %v4087_v3  ;;  %v3764_v20 = vpack.c.bf16 %v3736_v56, %v3735_v11  ;;  %v3912_v24 = vsel %vm6480_vm11, %v3797_v59, %v3911_v57  ;;  %v4099_v56 = vld [vmem:[#allocation2 + $0x78] sm:$0xff] }
 0x608   : >> { %4089 = vst [vmem:[#allocation2 + $0x38] sm:$0xff] %v4088_v15  ;;  %3913 = vst [vmem:[#allocation2 + $0x30] sm:$0xff] %v3912_v24  ;;  %v3923_v15 = vld [vmem:[#allocation2 + $0x70] sm:$0xff] }
 0x609   : >> { %v3799_v23 = vshrl.u32 %v3764_v20, 16  ;;  %v3802_v26 = vshll.u32 %v3764_v20, 16  ;;  %3975 = vrot.lane.b32.xlu1 %v3764_v20, %s6174_s10 }
 0x60a   : >> { %v3602_v55 = vpop.f32.mrb[16].mxu1 }
 0x60b   : >> { %v3801_v21 = vrot.slane %v3799_v23, 7  ;;  %v4039_v4 = vrot.slane %v3802_v26, 1  ;;  %v3604_v31 = vpop.f32.mrb[17].mxu1  ;;  %v3737_v10 = vmax.f32 %v3602_v55, 0.0 }
 0x60c   : >> { %v3605_v63 = vpop.f32.mrb[18].mxu1 }
 0x60d   : >> { %v3804_v37 = vor.u32 %v3802_v26, %v3801_v21  ;;  %v4040_v60 = vor.u32 %v4039_v4, %v3799_v23  ;;  %v3738_v9 = vmax.f32 %v3605_v63, 0.0  ;;  %v3607_v30 = vpop.f32.mrb[19].mxu1 }
 0x60f   : >> { %v4091_v6 = vsel %vm6469_vm10, %v4040_v60, %v4090_v44  ;;  %v3765_v35 = vpack.c.bf16 %v3738_v9, %v3737_v10  ;;  %v3915_v58 = vsel %vm6480_vm11, %v3804_v37, %v3914_v17  ;;  %v4102_v9 = vld [vmem:[#allocation2 + $0x88] sm:$0xff] }
 0x610   : >> { %4092 = vst [vmem:[#allocation2 + $0x48] sm:$0xff] %v4091_v6  ;;  %3916 = vst [vmem:[#allocation2 + $0x40] sm:$0xff] %v3915_v58  ;;  %v3926_v6 = vld [vmem:[#allocation2 + $0x80] sm:$0xff] }
 0x611   : >> { %v3806_v5 = vshrl.u32 %v3765_v35, 16  ;;  %v3809_v13 = vshll.u32 %v3765_v35, 16  ;;  %3977 = vrot.lane.b32.xlu0 %v3765_v35, %s6174_s10 }
 0x612   : >> { %v3610_v22 = vpop.f32.mrb[20].mxu1 }
 0x613   : >> { %v3808_v28 = vrot.slane %v3806_v5, 7  ;;  %v4041_v12 = vrot.slane %v3809_v13, 1  ;;  %v3612_v32 = vpop.f32.mrb[21].mxu1  ;;  %v3739_v19 = vmax.f32 %v3610_v22, 0.0 }
 0x614   : >> { %v3613_v16 = vpop.f32.mrb[22].mxu1 }
 0x615   : >> { %v3811_v25 = vor.u32 %v3809_v13, %v3808_v28  ;;  %v4042_v36 = vor.u32 %v4041_v12, %v3806_v5  ;;  %v3740_v38 = vmax.f32 %v3613_v16, 0.0  ;;  %v3615_v39 = vpop.f32.mrb[23].mxu1 }
 0x617   : >> { %v4094_v40 = vsel %vm6469_vm10, %v4042_v36, %v4093_v29  ;;  %v3766_v41 = vpack.c.bf16 %v3740_v38, %v3739_v19  ;;  %v3918_v42 = vsel %vm6480_vm11, %v3811_v25, %v3917_v34  ;;  %v4105_v38 = vld [vmem:[#allocation2 + $0x98] sm:$0xff] }
 0x618   : >> { %4095 = vst [vmem:[#allocation2 + $0x58] sm:$0xff] %v4094_v40  ;;  %3919 = vst [vmem:[#allocation2 + $0x50] sm:$0xff] %v3918_v42  ;;  %v3929_v40 = vld [vmem:[#allocation2 + $0x90] sm:$0xff] }
 0x619   : >> { %v3813_v43 = vshrl.u32 %v3766_v41, 16  ;;  %v3816_v45 = vshll.u32 %v3766_v41, 16  ;;  %3979 = vrot.lane.b32.xlu1 %v3766_v41, %s6174_s10 }
 0x61a   : >> { %v3618_v46 = vpop.f32.mrb[24].mxu1 }
 0x61b   : >> { %v3815_v48 = vrot.slane %v3813_v43, 7  ;;  %v4043_v50 = vrot.slane %v3816_v45, 1  ;;  %v3620_v49 = vpop.f32.mrb[25].mxu1  ;;  %v3741_v52 = vmax.f32 %v3618_v46, 0.0 }
 0x61c   : >> { %v3621_v18 = vpop.f32.mrb[26].mxu1 }
 0x61d   : >> { %v3818_v61 = vor.u32 %v3816_v45, %v3815_v48  ;;  %v4044_v47 = vor.u32 %v4043_v50, %v3813_v43  ;;  %v3742_v62 = vmax.f32 %v3621_v18, 0.0  ;;  %v3623_v0 = vpop.f32.mrb[27].mxu1 }
 0x61f   : >> { %v4097_v1 = vsel %vm6469_vm10, %v4044_v47, %v4096_v51  ;;  %v3767_v27 = vpack.c.bf16 %v3742_v62, %v3741_v52  ;;  %v3921_v2 = vsel %vm6480_vm11, %v3818_v61, %v3920_v54  ;;  %v4108_v62 = vld [vmem:[#allocation2 + $0xa8] sm:$0xff] }
 0x620   : >> { %4098 = vst [vmem:[#allocation2 + $0x68] sm:$0xff] %v4097_v1  ;;  %3922 = vst [vmem:[#allocation2 + $0x60] sm:$0xff] %v3921_v2  ;;  %v3932_v1 = vld [vmem:[#allocation2 + $0xa0] sm:$0xff] }
 0x621   : >> { %v3820_v3 = vshrl.u32 %v3767_v27, 16  ;;  %v3823_v53 = vshll.u32 %v3767_v27, 16  ;;  %3981 = vrot.lane.b32.xlu0 %v3767_v27, %s6174_s10 }
 0x622   : >> { %v3626_v57 = vpop.f32.mrb[28].mxu1 }
 0x623   : >> { %v3822_v59 = vrot.slane %v3820_v3, 7  ;;  %v4045_v8 = vrot.slane %v3823_v53, 1  ;;  %v3628_v11 = vpop.f32.mrb[29].mxu1  ;;  %v3743_v23 = vmax.f32 %v3626_v57, 0.0 }
 0x624   : >> { %v3629_v14 = vpop.f32.mrb[30].mxu1 }
 0x625   : >> { %v3825_v20 = vor.u32 %v3823_v53, %v3822_v59  ;;  %v4046_v24 = vor.u32 %v4045_v8, %v3820_v3  ;;  %v3744_v26 = vmax.f32 %v3629_v14, 0.0  ;;  %v3631_v55 = vpop.f32.mrb[31].mxu1 }
 0x627   : >> { %v4100_v21 = vsel %vm6469_vm10, %v4046_v24, %v4099_v56  ;;  %v3768_v4 = vpack.c.bf16 %v3744_v26, %v3743_v23  ;;  %v3924_v31 = vsel %vm6480_vm11, %v3825_v20, %v3923_v15  ;;  %v4111_v26 = vld [vmem:[#allocation2 + $0xb8] sm:$0xff] }
 0x628   : >> { %4101 = vst [vmem:[#allocation2 + $0x78] sm:$0xff] %v4100_v21  ;;  %3925 = vst [vmem:[#allocation2 + $0x70] sm:$0xff] %v3924_v31  ;;  %v3935_v21 = vld [vmem:[#allocation2 + $0xb0] sm:$0xff] }
 0x629   : >> { %v3827_v44 = vshrl.u32 %v3768_v4, 16  ;;  %v3830_v63 = vshll.u32 %v3768_v4, 16  ;;  %3983 = vrot.lane.b32.xlu1 %v3768_v4, %s6174_s10 }
 0x62a   : >> { %v3634_v17 = vpop.f32.mrb[32].mxu1 }
 0x62b   : >> { %v3829_v37 = vrot.slane %v3827_v44, 7  ;;  %v4047_v60 = vrot.slane %v3830_v63, 1  ;;  %v3636_v10 = vpop.f32.mrb[33].mxu1  ;;  %v3745_v5 = vmax.f32 %v3634_v17, 0.0 }
 0x62c   : >> { %v3637_v30 = vpop.f32.mrb[34].mxu1 }
 0x62d   : >> { %v3832_v35 = vor.u32 %v3830_v63, %v3829_v37  ;;  %v4048_v58 = vor.u32 %v4047_v60, %v3827_v44  ;;  %v3746_v13 = vmax.f32 %v3637_v30, 0.0  ;;  %v3639_v22 = vpop.f32.mrb[35].mxu1 }
 0x62f   : >> { %v4103_v28 = vsel %vm6469_vm10, %v4048_v58, %v4102_v9  ;;  %v3769_v12 = vpack.c.bf16 %v3746_v13, %v3745_v5  ;;  %v3927_v32 = vsel %vm6480_vm11, %v3832_v35, %v3926_v6  ;;  %v4114_v13 = vld [vmem:[#allocation2 + $0xc8] sm:$0xff] }
 0x630   : >> { %4104 = vst [vmem:[#allocation2 + $0x88] sm:$0xff] %v4103_v28  ;;  %3928 = vst [vmem:[#allocation2 + $0x80] sm:$0xff] %v3927_v32  ;;  %v3938_v28 = vld [vmem:[#allocation2 + $0xc0] sm:$0xff] }
 0x631   : >> { %v3834_v29 = vshrl.u32 %v3769_v12, 16  ;;  %v3837_v16 = vshll.u32 %v3769_v12, 16  ;;  %3985 = vrot.lane.b32.xlu0 %v3769_v12, %s6174_s10 }
 0x632   : >> { %v3642_v34 = vpop.f32.mrb[36].mxu1 }
 0x633   : >> { %v3836_v25 = vrot.slane %v3834_v29, 7  ;;  %v4049_v36 = vrot.slane %v3837_v16, 1  ;;  %v3644_v19 = vpop.f32.mrb[37].mxu1  ;;  %v3747_v43 = vmax.f32 %v3642_v34, 0.0 }
 0x634   : >> { %v3645_v39 = vpop.f32.mrb[38].mxu1 }
 0x635   : >> { %v3839_v41 = vor.u32 %v3837_v16, %v3836_v25  ;;  %v4050_v42 = vor.u32 %v4049_v36, %v3834_v29  ;;  %v3748_v45 = vmax.f32 %v3645_v39, 0.0  ;;  %v3647_v46 = vpop.f32.mrb[39].mxu1 }
 0x637   : >> { %v4106_v48 = vsel %vm6469_vm10, %v4050_v42, %v4105_v38  ;;  %v3770_v50 = vpack.c.bf16 %v3748_v45, %v3747_v43  ;;  %v3930_v49 = vsel %vm6480_vm11, %v3839_v41, %v3929_v40  ;;  %v4117_v45 = vld [vmem:[#allocation2 + $0xd8] sm:$0xff] }
 0x638   : >> { %4107 = vst [vmem:[#allocation2 + $0x98] sm:$0xff] %v4106_v48  ;;  %3931 = vst [vmem:[#allocation2 + $0x90] sm:$0xff] %v3930_v49  ;;  %v3941_v48 = vld [vmem:[#allocation2 + $0xd0] sm:$0xff] }
 0x639   : >> { %v3841_v51 = vshrl.u32 %v3770_v50, 16  ;;  %v3844_v18 = vshll.u32 %v3770_v50, 16  ;;  %3987 = vrot.lane.b32.xlu1 %v3770_v50, %s6174_s10 }
 0x63a   : >> { %v3650_v54 = vpop.f32.mrb[40].mxu1 }
 0x63b   : >> { %v3843_v61 = vrot.slane %v3841_v51, 7  ;;  %v4051_v47 = vrot.slane %v3844_v18, 1  ;;  %v3652_v52 = vpop.f32.mrb[41].mxu1  ;;  %v3749_v3 = vmax.f32 %v3650_v54, 0.0 }
 0x63c   : >> { %v3653_v0 = vpop.f32.mrb[42].mxu1 }
 0x63d   : >> { %v3846_v27 = vor.u32 %v3844_v18, %v3843_v61  ;;  %v4052_v2 = vor.u32 %v4051_v47, %v3841_v51  ;;  %v3750_v53 = vmax.f32 %v3653_v0, 0.0  ;;  %v3655_v57 = vpop.f32.mrb[43].mxu1 }
 0x63f   : >> { %v4109_v59 = vsel %vm6469_vm10, %v4052_v2, %v4108_v62  ;;  %v3771_v8 = vpack.c.bf16 %v3750_v53, %v3749_v3  ;;  %v3933_v11 = vsel %vm6480_vm11, %v3846_v27, %v3932_v1  ;;  %v4120_v53 = vld [vmem:[#allocation2 + $0xe8] sm:$0xff] }
 0x640   : >> { %4110 = vst [vmem:[#allocation2 + $0xa8] sm:$0xff] %v4109_v59  ;;  %3934 = vst [vmem:[#allocation2 + $0xa0] sm:$0xff] %v3933_v11  ;;  %v3944_v59 = vld [vmem:[#allocation2 + $0xe0] sm:$0xff] }
 0x641   : >> { %v3848_v56 = vshrl.u32 %v3771_v8, 16  ;;  %v3851_v14 = vshll.u32 %v3771_v8, 16  ;;  %3989 = vrot.lane.b32.xlu0 %v3771_v8, %s6174_s10 }
 0x642   : >> { %v3658_v15 = vpop.f32.mrb[44].mxu1 }
 0x643   : >> { %v3850_v20 = vrot.slane %v3848_v56, 7  ;;  %v4053_v24 = vrot.slane %v3851_v14, 1  ;;  %v3660_v23 = vpop.f32.mrb[45].mxu1  ;;  %v3751_v44 = vmax.f32 %v3658_v15, 0.0 }
 0x644   : >> { %v3661_v55 = vpop.f32.mrb[46].mxu1 }
 0x645   : >> { %v3853_v4 = vor.u32 %v3851_v14, %v3850_v20  ;;  %v4054_v31 = vor.u32 %v4053_v24, %v3848_v56  ;;  %v3752_v63 = vmax.f32 %v3661_v55, 0.0  ;;  %v3663_v17 = vpop.f32.mrb[47].mxu1 }
 0x646   : >> { %v4123_v17 = vld [vmem:[#allocation2 + $0xf8] sm:$0xff] }
 0x647   : >> { %v4112_v37 = vsel %vm6469_vm10, %v4054_v31, %v4111_v26  ;;  %v3772_v60 = vpack.c.bf16 %v3752_v63, %v3751_v44  ;;  %v3936_v10 = vsel %vm6480_vm11, %v3853_v4, %v3935_v21 }
 0x648   : >> { %4113 = vst [vmem:[#allocation2 + $0xb8] sm:$0xff] %v4112_v37  ;;  %3937 = vst [vmem:[#allocation2 + $0xb0] sm:$0xff] %v3936_v10 }
 0x649   : >> { %v3855_v9 = vshrl.u32 %v3772_v60, 16  ;;  %v3858_v30 = vshll.u32 %v3772_v60, 16  ;;  %3991 = vrot.lane.b32.xlu1 %v3772_v60, %s6174_s10  ;;  %v3947_v60 = vld [vmem:[#allocation2 + $0xf0] sm:$0xff] }
 0x64a   : >> { %v3666_v6 = vpop.f32.mrb[48].mxu1 }
 0x64b   : >> { %v3857_v35 = vrot.slane %v3855_v9, 7  ;;  %v4055_v58 = vrot.slane %v3858_v30, 1  ;;  %v3668_v5 = vpop.f32.mrb[49].mxu1  ;;  %v3753_v29 = vmax.f32 %v3666_v6, 0.0 }
 0x64c   : >> { %v3669_v22 = vpop.f32.mrb[50].mxu1 }
 0x64d   : >> { %v3860_v12 = vor.u32 %v3858_v30, %v3857_v35  ;;  %v4056_v32 = vor.u32 %v4055_v58, %v3855_v9  ;;  %v3754_v16 = vmax.f32 %v3669_v22, 0.0  ;;  %v3671_v34 = vpop.f32.mrb[51].mxu1 }
 0x64e   : >> { %v3950_v34 = vld [vmem:[#allocation2 + $0x100] sm:$0xff] }
 0x64f   : >> { %v4115_v25 = vsel %vm6469_vm10, %v4056_v32, %v4114_v13  ;;  %v3773_v36 = vpack.c.bf16 %v3754_v16, %v3753_v29  ;;  %v3939_v19 = vsel %vm6480_vm11, %v3860_v12, %v3938_v28  ;;  %v4126_v16 = vld [vmem:[#allocation2 + $0x108] sm:$0xff] }
 0x650   : >> { %4116 = vst [vmem:[#allocation2 + $0xc8] sm:$0xff] %v4115_v25  ;;  %3940 = vst [vmem:[#allocation2 + $0xc0] sm:$0xff] %v3939_v19 }
 0x651   : >> { %v3862_v38 = vshrl.u32 %v3773_v36, 16  ;;  %v3865_v39 = vshll.u32 %v3773_v36, 16  ;;  %3993 = vrot.lane.b32.xlu0 %v3773_v36, %s6174_s10 }
 0x652   : >> { %v3674_v40 = vpop.f32.mrb[52].mxu1 }
 0x653   : >> { %v3864_v41 = vrot.slane %v3862_v38, 7  ;;  %v4057_v42 = vrot.slane %v3865_v39, 1  ;;  %v3676_v43 = vpop.f32.mrb[53].mxu1  ;;  %v3755_v51 = vmax.f32 %v3674_v40, 0.0 }
 0x654   : >> { %v3677_v46 = vpop.f32.mrb[54].mxu1 }
 0x655   : >> { %v3867_v50 = vor.u32 %v3865_v39, %v3864_v41  ;;  %v4058_v49 = vor.u32 %v4057_v42, %v3862_v38  ;;  %v3756_v18 = vmax.f32 %v3677_v46, 0.0  ;;  %v3679_v54 = vpop.f32.mrb[55].mxu1 }
 0x657   : >> { %v4118_v61 = vsel %vm6469_vm10, %v4058_v49, %v4117_v45  ;;  %v3774_v47 = vpack.c.bf16 %v3756_v18, %v3755_v51  ;;  %v3942_v52 = vsel %vm6480_vm11, %v3867_v50, %v3941_v48 }
 0x658   : >> { %4119 = vst [vmem:[#allocation2 + $0xd8] sm:$0xff] %v4118_v61  ;;  %3943 = vst [vmem:[#allocation2 + $0xd0] sm:$0xff] %v3942_v52  ;;  %v7402_v52 = vld [vmem:[#allocation2 + $0x18] sm:$0xff] (%p1215_p11) }
 0x659   : >> { %v3869_v62 = vshrl.u32 %v3774_v47, 16  ;;  %v3872_v0 = vshll.u32 %v3774_v47, 16  ;;  %3995 = vrot.lane.b32.xlu1 %v3774_v47, %s6174_s10  ;;  %v4168_v33 = vunpack.c.h.bf16 (%p1215_p11), %v7402_v52 }
 0x65a   : >> { %v3682_v1 = vpop.f32.mrb[56].mxu1 }
 0x65b   : >> { %v3871_v27 = vrot.slane %v3869_v62, 7  ;;  %v4059_v2 = vrot.slane %v3872_v0, 1  ;;  %v3684_v3 = vpop.f32.mrb[57].mxu1  ;;  %v3757_v56 = vmax.f32 %v3682_v1, 0.0  ;;  %v4166_v1 = vunpack.c.l.bf16 (%p1215_p11), %v7402_v52 }
 0x65c   : >> { %v3685_v57 = vpop.f32.mrb[58].mxu1  ;;  %v4368_v3 = vld [vmem:[#allocation2 + $0x28] sm:$0xff] (%p1215_p11) }
 0x65d   : >> { %v3874_v8 = vor.u32 %v3872_v0, %v3871_v27  ;;  %v4060_v11 = vor.u32 %v4059_v2, %v3869_v62  ;;  %v3758_v14 = vmax.f32 %v3685_v57, 0.0  ;;  %v3687_v15 = vpop.f32.mrb[59].mxu1  ;;  %v4227_v62 = vlaneseq (%p1215_p11)  ;;  %v4225_v27 = vld [vmem:[%s8126_s4] ss:$4 sm:$0x3] (%p1215_p11) }
 0x65f   : >> { %v4121_v20 = vsel %vm6469_vm10, %v4060_v11, %v4120_v53  ;;  %v3775_v24 = vpack.c.bf16 %v3758_v14, %v3757_v56  ;;  %v3945_v23 = vsel %vm6480_vm11, %v3874_v8, %v3944_v59  ;;  %v5637_v53 = vld [vmem:[%s8126_s4 + $0x1] ss:$4 sm:$0x3] (%p1215_p11)  ;;  %v7415_v57 = vshrl.u32 (%p1215_p11), %v4227_v62, 7  ;;  %v4606_v56 = vld [vmem:[#allocation2 + $0x38] sm:$0xff] (%p1215_p11) }
 0x660   : >> { %4122 = vst [vmem:[#allocation2 + $0xe8] sm:$0xff] %v4121_v20  ;;  %3946 = vst [vmem:[#allocation2 + $0xe0] sm:$0xff] %v3945_v23  ;;  %v7419_v8 = vunpack.c.l.bf16 (%p1215_p11), %v4368_v3  ;;  %v5638_v14 = vld [vmem:[%s8126_s4 + $0x2] ss:$4 sm:$0x3] (%p1215_p11) }
 0x661   : >> { %v3876_v26 = vshrl.u32 %v3775_v24, 16  ;;  %v3879_v55 = vshll.u32 %v3775_v24, 16  ;;  %3997 = vrot.lane.b32.xlu0 %v3775_v24, %s6174_s10  ;;  %v7428_v24 = vunpack.c.l.bf16 (%p1215_p11), %v4606_v56  ;;  %v4129_v23 = vld [vmem:[#allocation2] sm:$0xff] (%p1215_p11) }
 0x662   : >> { %v3690_v21 = vpop.f32.mrb[60].mxu1 }
 0x663   : >> { %v3878_v4 = vrot.slane %v3876_v26, 7  ;;  %v4061_v31 = vrot.slane %v3879_v55, 1  ;;  %v3970_v44 = vpop.permute.xlu0 %3969  ;;  %v3692_v63 = vpop.f32.mrb[61].mxu1  ;;  %v3759_v30 = vmax.f32 %v3690_v21, 0.0 }
 0x664   : >> { %4017 = vst.msk [vmem:[#allocation2 + $0x10] sm:$0xff] %vm1098_vm12, %v3970_v44  ;;  %v3693_v37 = vpop.f32.mrb[62].mxu1  ;;  %v4233_v44 = vsub.s32 (%p1215_p11), 1, %v7415_v57  ;;  %v4161_v63 = vunpack.c.l.bf16 (%p1215_p11), %v4129_v23 }
 0x665   : >> { %v3881_v10 = vor.u32 %v3879_v55, %v3878_v4  ;;  %v4062_v9 = vor.u32 %v4061_v31, %v3876_v26  ;;  %v3760_v6 = vmax.f32 %v3693_v37, 0.0  ;;  %v3695_v35 = vpop.f32.mrb[63].mxu1  ;;  %v4130_v26 = vld [vmem:[#allocation2 + $0x8] sm:$0xff] (%p1215_p11)  ;;  %v7430_v55 = vunpack.c.h.bf16 (%p1215_p11), %v4368_v3 }
 0x666   : > { %v4229_v31 = vsub.s32 (%p1215_p11), 0, %v7415_v57  ;;  %v7438_v37 = vld [vmem:[#allocation2 + $0x88] sm:$0xff] (%p1215_p11) }
 0x667   : >> { %v4124_v58 = vsel %vm6469_vm10, %v4062_v9, %v4123_v17  ;;  %v3776_v5 = vpack.c.bf16 %v3760_v6, %v3759_v30  ;;  %v3948_v13 = vsel %vm6480_vm11, %v3881_v10, %v3947_v60  ;;  %v4162_v17 = vunpack.c.l.bf16 (%p1215_p11), %v4130_v26 }
 0x668   : >> { %4125 = vst [vmem:[#allocation2 + $0xf8] sm:$0xff] %v4124_v58  ;;  %3949 = vst [vmem:[#allocation2 + $0xf0] sm:$0xff] %v3948_v13  ;;  %v7442_v10 = vunpack.c.h.bf16 (%p1215_p11), %v4606_v56  ;;  %v4163_v9 = vunpack.c.h.bf16 (%p1215_p11), %v4129_v23  ;;  %v4164_v30 = vunpack.c.h.bf16 (%p1215_p11), %v4130_v26  ;;  %v7445_v35 = vrot.slane (%p1215_p11), %v4225_v27, %v4229_v31 }
 0x669   : >> { %v3883_v22 = vshrl.u32 %v3776_v5, 16  ;;  %v3886_v28 = vshll.u32 %v3776_v5, 16  ;;  %3999 = vrot.lane.b32.xlu1 %v3776_v5, %s6174_s10  ;;  %v7447_v58 = vrot.slane (%p1215_p11), %v4225_v27, %v4233_v44  ;;  %v7449_v5 = vrot.slane (%p1215_p11), %v5637_v53, %v4229_v31  ;;  %s6103_s10 = sshll.u32 (%p1215_p11), %s6175_s9, 4  ;;  %s6104_s10 = int_to_ptr.vmem [resolvable:$false] %s6103_s10 }
 0x66a   : > { %v7451_v13 = vrot.slane (%p1215_p11), %v5637_v53, %v4233_v44  ;;  %s6105_s11 = scalar_lea.vmem (%p1215_p11), %s6104_s10, 512  ;;  %p6106_p1 = scmp.lt.s32.totalorder (%p1215_p11), %s8075_s26, %s6104_s10 }
 0x66b   : >> { %v3885_v12 = vrot.slane %v3883_v22, 7  ;;  %v4063_v32 = vrot.slane %v3886_v28, 1  ;;  %v3972_v29 = vpop.permute.xlu1 %3971  ;;  %v7400_v47 = vld [vmem:[#allocation2 + $0x10] sm:$0xff] (%p1215_p11)  ;;  %v4240_v26 = vmul.f32 (%p1215_p11), %v7447_v58, %v4164_v30 }
 0x66c   : >> { %4018 = vst.msk [vmem:[#allocation2 + $0x20] sm:$0xff] %vm1098_vm12, %v3972_v29  ;;  %v4165_v0 = vunpack.c.l.bf16 (%p1215_p11), %v7400_v47  ;;  %v4167_v7 = vunpack.c.h.bf16 (%p1215_p11), %v7400_v47  ;;  %v4620_v47 = vld [vmem:[#allocation2 + $0xa8] sm:$0xff] (%p1215_p11) }
 0x66d   : >> { %v4064_v25 = vor.u32 %v4063_v32, %v3883_v22  ;;  %v3888_v36 = vor.u32 %v3886_v28, %v3885_v12  ;;  %v7453_v22 = vrot.slane (%p1215_p11), %v5638_v14, %v4229_v31  ;;  %v7455_v28 = vrot.slane (%p1215_p11), %v5638_v14, %v4233_v44 }
 0x66e   : > { %v4196_v12 = vunpack.c.h.bf16 (%p1215_p11), %v7438_v37  ;;  %v4241_v29 = vmul.f32 (%p1215_p11), %v7445_v35, %v4165_v0  ;;  %v4476_v44 = vmul.f32 (%p1215_p11), %v7449_v5, %v4167_v7 }
 0x66f   : >> { %v4127_v19 = vsel %vm6469_vm10, %v4064_v25, %v4126_v16  ;;  %v3951_v38 = vsel %vm6480_vm11, %v3888_v36, %v3950_v34  ;;  %v4242_v16 = vmul.f32 (%p1215_p11), %v7447_v58, %v4166_v1  ;;  %v4479_v25 = vmul.f32 (%p1215_p11), %v7451_v13, %v7419_v8 }
 0x670   : >> { %4128 = vst [vmem:[#allocation2 + $0x108] sm:$0xff] %v4127_v19  ;;  %3952 = vst [vmem:[#allocation2 + $0x100] sm:$0xff] %v3951_v38  ;;  %v4717_v19 = vmul.f32 (%p1215_p11), %v7455_v28, %v7428_v24  ;;  %v4237_v38 = vmul.f32 (%p1215_p11), %v7445_v35, %v4161_v63  ;;  %v4719_v27 = vmul.f32 (%p1215_p11), %v7455_v28, %v7442_v10 }
 0x671   : > { %v4477_v63 = vmul.f32 (%p1215_p11), %v7451_v13, %v4168_v33 }
 0x673   : >> { %v3974_v39 = vpop.permute.xlu0 %3973  ;;  %v4367_v2 = vld [vmem:[#allocation2 + $0x20] sm:$0xff] (%p1215_p11) }
 0x674   : >> { %4019 = vst.msk [vmem:[#allocation2 + $0x30] sm:$0xff] %vm1098_vm12, %v3974_v39  ;;  %v7417_v59 = vunpack.c.l.bf16 (%p1215_p11), %v4367_v2  ;;  %v7424_v15 = vunpack.c.h.bf16 (%p1215_p11), %v4367_v2  ;;  %v4238_v39 = vmul.f32 (%p1215_p11), %v7447_v58, %v4162_v17 }
 0x676   : > { %v4478_v34 = vmul.f32 (%p1215_p11), %v7449_v5, %v7417_v59  ;;  %v4714_v17 = vmul.f32 (%p1215_p11), %v7453_v22, %v7424_v15 }
 0x67b   : >> { %v3976_v40 = vpop.permute.xlu1 %3975  ;;  %v4605_v11 = vld [vmem:[#allocation2 + $0x30] sm:$0xff] (%p1215_p11) }
 0x67c   : >> { %4020 = vst.msk [vmem:[#allocation2 + $0x40] sm:$0xff] %vm1098_vm12, %v3976_v40  ;;  %v7426_v20 = vunpack.c.l.bf16 (%p1215_p11), %v4605_v11  ;;  %v7432_v21 = vunpack.c.h.bf16 (%p1215_p11), %v4605_v11  ;;  %v4542_v40 = vadd.f32 (%p1215_p11), %v4478_v34, %v4241_v29  ;;  %v4239_v11 = vmul.f32 (%p1215_p11), %v7445_v35, %v4163_v9  ;;  %v7503_v29 = vld [vmem:[#allocation2 + $0x98] sm:$0xff] (%p1215_p11) }
 0x67e   : > { %v4716_v36 = vmul.f32 (%p1215_p11), %v7453_v22, %v7426_v20 }
 0x683   : >> { %v3978_v41 = vpop.permute.xlu0 %3977 }
 0x684   : >> { %4021 = vst.msk [vmem:[#allocation2 + $0x50] sm:$0xff] %vm1098_vm12, %v3978_v41  ;;  %v4543_v41 = vadd.f32 (%p1215_p11), %v4479_v25, %v4242_v16  ;;  %v4715_v25 = vmul.f32 (%p1215_p11), %v7455_v28, %v7430_v55 }
 0x68b   : >> { %v3980_v42 = vpop.permute.xlu1 %3979 }
 0x68c   : >> { %4022 = vst.msk [vmem:[#allocation2 + $0x60] sm:$0xff] %vm1098_vm12, %v3980_v42  ;;  %v4474_v42 = vmul.f32 (%p1215_p11), %v7449_v5, %v4165_v0  ;;  %v4481_v0 = vmul.f32 (%p1215_p11), %v7451_v13, %v7430_v55 }
 0x693   : >> { %v3982_v43 = vpop.permute.xlu0 %3981 }
 0x694   : >> { %4023 = vst.msk [vmem:[#allocation2 + $0x70] sm:$0xff] %vm1098_vm12, %v3982_v43  ;;  %v4475_v43 = vmul.f32 (%p1215_p11), %v7451_v13, %v4166_v1  ;;  %v4718_v1 = vmul.f32 (%p1215_p11), %v7453_v22, %v7432_v21 }
 0x69b   : >> { %v3984_v45 = vpop.permute.xlu1 %3983 }
 0x69c   : >> { %4024 = vst.msk [vmem:[#allocation2 + $0x80] sm:$0xff] %vm1098_vm12, %v3984_v45  ;;  %v4712_v45 = vmul.f32 (%p1215_p11), %v7453_v22, %v7417_v59 }
 0x6a3   : >> { %v3986_v46 = vpop.permute.xlu0 %3985  ;;  %v7434_v4 = vld [vmem:[#allocation2 + $0x80] sm:$0xff] (%p1215_p11) }
 0x6a4   : >> { %4025 = vst.msk [vmem:[#allocation2 + $0x90] sm:$0xff] %vm1098_vm12, %v3986_v46  ;;  %v4195_v6 = vunpack.c.h.bf16 (%p1215_p11), %v7434_v4  ;;  %v4713_v46 = vmul.f32 (%p1215_p11), %v7455_v28, %v7419_v8 }
 0x6a6   : > { %v4271_v52 = vmul.f32 (%p1215_p11), %v7445_v35, %v4195_v6 }
 0x6ab   : >> { %v3988_v48 = vpop.permute.xlu1 %3987  ;;  %v7440_v60 = vld [vmem:[#allocation2 + $0x90] sm:$0xff] (%p1215_p11) }
 0x6ac   : >> { %4026 = vst.msk [vmem:[#allocation2 + $0xa0] sm:$0xff] %vm1098_vm12, %v3988_v48  ;;  %v4431_v32 = vunpack.c.h.bf16 (%p1215_p11), %v7440_v60  ;;  %v4243_v48 = vmul.f32 (%p1215_p11), %v7445_v35, %v4167_v7  ;;  %v4541_v7 = vadd.f32 (%p1215_p11), %v4477_v63, %v4240_v26  ;;  %v7541_v26 = vunpack.c.l.bf16 (%p1215_p11), %v4620_v47 }
 0x6b3   : >> { %v3990_v50 = vpop.permute.xlu0 %3989  ;;  %v4619_v9 = vld [vmem:[#allocation2 + $0xa0] sm:$0xff] (%p1215_p11) }
 0x6b4   : >> { %4027 = vst.msk [vmem:[#allocation2 + $0xb0] sm:$0xff] %vm1098_vm12, %v3990_v50  ;;  %v4244_v50 = vmul.f32 (%p1215_p11), %v7447_v58, %v4168_v33  ;;  %v4272_v33 = vmul.f32 (%p1215_p11), %v7447_v58, %v4196_v12 }
 0x6b6   : > { %v4545_v23 = vadd.f32 (%p1215_p11), %v4481_v0, %v4244_v50 }
 0x6b8   : > { %v4783_v30 = vadd.f32 (%p1215_p11), %v4719_v27, %v4545_v23 }
 0x6bb   : >> { %v3992_v49 = vpop.permute.xlu1 %3991 }
 0x6bc   : >> { %4028 = vst.msk [vmem:[#allocation2 + $0xc0] sm:$0xff] %vm1098_vm12, %v3992_v49  ;;  %v4780_v49 = vadd.f32 (%p1215_p11), %v4716_v36, %v4542_v40  ;;  %v4540_v36 = vadd.f32 (%p1215_p11), %v4476_v44, %v4239_v11  ;;  %v7518_v40 = vunpack.c.h.bf16 (%p1215_p11), %v4619_v9 }
 0x6be   : > { %v4746_v50 = vmul.f32 (%p1215_p11), %v7453_v22, %v7518_v40 }
 0x6c3   : >> { %v3994_v51 = vpop.permute.xlu0 %3993 }
 0x6c4   : >> { %4029 = vst.msk [vmem:[#allocation2 + $0xd0] sm:$0xff] %vm1098_vm12, %v3994_v51  ;;  %v4781_v51 = vadd.f32 (%p1215_p11), %v4717_v19, %v4543_v41  ;;  %v4852_v19 = vsel (%p1215_p11), %vm245_vm1, %v4783_v30, 0.0  ;;  %v4745_v30 = vmul.f32 (%p1215_p11), %v7455_v28, %v7541_v26 }
 0x6c6   : > { %v4848_v2 = vsel (%p1215_p11), %vm245_vm1, %v4781_v51, 0.0 }
 0x6c7   : > { %v4849_v56 = vadd.f32 (%p1215_p11), %v4848_v2, %v4780_v49  ;;  %v4193_v49 = vunpack.c.l.bf16 (%p1215_p11), %v7434_v4 }
 0x6c9   : > { %4850 = vadd.xlane.f32.xlu1 (%p1215_p11), %v4849_v56  ;;  %v4269_v2 = vmul.f32 (%p1215_p11), %v7445_v35, %v4193_v49  ;;  %v7539_v56 = vunpack.c.l.bf16 (%p1215_p11), %v4619_v9  ;;  %v4512_v9 = vmul.f32 (%p1215_p11), %v7518_v40, %v7449_v5 }
 0x6cb   : >> { %v3996_v18 = vpop.permute.xlu1 %3995 }
 0x6cc   : >> { %4030 = vst.msk [vmem:[#allocation2 + $0xe0] sm:$0xff] %vm1098_vm12, %v3996_v18  ;;  %v4538_v18 = vadd.f32 (%p1215_p11), %v4474_v42, %v4237_v38  ;;  %v4432_v38 = vunpack.c.h.bf16 (%p1215_p11), %v7503_v29  ;;  %v4778_v42 = vadd.f32 (%p1215_p11), %v4714_v17, %v4540_v36 }
 0x6ce   : > { %v4776_v3 = vadd.f32 (%p1215_p11), %v4712_v45, %v4538_v18  ;;  %v7520_v45 = vunpack.c.h.bf16 (%p1215_p11), %v4620_v47  ;;  %v4276_v44 = vmul.f32 (%p1215_p11), %v4432_v38, %v7447_v58 }
 0x6d0   : > { %v4747_v18 = vmul.f32 (%p1215_p11), %v7455_v28, %v7520_v45 }
 0x6d3   : >> { %v3998_v54 = vpop.permute.xlu0 %3997 }
 0x6d4   : >> { %4031 = vst.msk [vmem:[#allocation2 + $0xf0] sm:$0xff] %vm1098_vm12, %v3998_v54  ;;  %v4539_v54 = vadd.f32 (%p1215_p11), %v4475_v43, %v4238_v39  ;;  %v4508_v39 = vmul.f32 (%p1215_p11), %v7449_v5, %v4431_v32  ;;  %v4779_v43 = vadd.f32 (%p1215_p11), %v4715_v25, %v4541_v7 }
 0x6d6   : > { %1217 = sbr.rel (!%p1215_p11) target bundleno = 399 (0x18f), region = 100  ;;  %v4777_v53 = vadd.f32 (%p1215_p11), %v4713_v46, %v4539_v54  ;;  %v4509_v46 = vmul.f32 (%p1215_p11), %v7451_v13, %v4432_v38  ;;  %v4844_v51 = vsel (%p1215_p11), %vm245_vm1, %v4779_v43, 0.0  ;;  %v4194_v54 = vunpack.c.l.bf16 (%p1215_p11), %v7438_v37 }
 0x6d7   : > { %v4845_v0 = vadd.f32 (%p1215_p11), %v4844_v51, %v4778_v42  ;;  %v4510_v42 = vmul.f32 (%p1215_p11), %v7539_v56, %v7449_v5  ;;  %v4511_v43 = vmul.f32 (%p1215_p11), %v7541_v26, %v7451_v13 }
 0x6d8   : > { %v4840_v31 = vsel (%p1215_p11), %vm245_vm1, %v4777_v53, 0.0  ;;  %v4430_v53 = vunpack.c.l.bf16 (%p1215_p11), %v7503_v29  ;;  %v4744_v29 = vmul.f32 (%p1215_p11), %v7453_v22, %v7539_v56 }
 0x6d9   : > { %v4841_v16 = vadd.f32 (%p1215_p11), %v4840_v31, %v4776_v3  ;;  %v4270_v3 = vmul.f32 (%p1215_p11), %v7447_v58, %v4194_v54  ;;  %v4275_v31 = vmul.f32 (%p1215_p11), %v4431_v32, %v7445_v35 }
 0x6da   : > { %v4507_v63 = vmul.f32 (%p1215_p11), %v7451_v13, %v4430_v53 }
 0x6db   : >> { %v4000_v61 = vpop.permute.xlu1 %3999  ;;  %4842 = vadd.xlane.f32.xlu0 (%p1215_p11), %v4841_v16  ;;  %v4622_v16 = vld [vmem:[#allocation2 + $0xb8] sm:$0xff] (%p1215_p11)  ;;  %v4576_v7 = vadd.f32 (%p1215_p11), %v4512_v9, %v4275_v31  ;;  %v4484_v31 = vmul.f32 (%p1215_p11), %v7432_v21, %v7449_v5 }
 0x6dc   : >> { %4032 = vst.msk [vmem:[#allocation2 + $0x100] sm:$0xff] %vm1098_vm12, %v4000_v61  ;;  %v4480_v61 = vmul.f32 (%p1215_p11), %v7449_v5, %v7424_v15  ;;  %v4571_v47 = vadd.f32 (%p1215_p11), %v4507_v63, %v4270_v3  ;;  %v7573_v51 = vunpack.c.l.bf16 (%p1215_p11), %v4622_v16 }
 0x6de   : > { %v4544_v14 = vadd.f32 %v4480_v61, %v4243_v48  ;;  %v4572_v48 = vadd.f32 %v4508_v39, %v4271_v52  ;;  %v4429_v61 = vunpack.c.l.bf16 %v7440_v60  ;;  %v4513_v60 = vmul.f32 %v7520_v45, %v7451_v13 }
 0x6df   : > { %4846 = vadd.xlane.f32.xlu0 %v4845_v0  ;;  %v4809_v39 = vadd.f32 %v4745_v30, %v4571_v47  ;;  %v4245_v47 = vmul.f32 %v7417_v59, %v7445_v35  ;;  %v4279_v59 = vmul.f32 %v7518_v40, %v7445_v35 }
 0x6e0   : > { %v4782_v34 = vadd.f32 %v4718_v1, %v4544_v14  ;;  %v4573_v1 = vadd.f32 %v4509_v46, %v4272_v33  ;;  %v4810_v27 = vadd.f32 %v4746_v50, %v4572_v48  ;;  %v4506_v11 = vmul.f32 %v7449_v5, %v4429_v61  ;;  %v4621_v14 = vld [vmem:[#allocation2 + $0xb0] sm:$0xff] }
 0x6e1   : > { %v7557_v32 = vunpack.c.h.bf16 %v4621_v14  ;;  %v4577_v52 = vadd.f32 %v4513_v60, %v4276_v44  ;;  %v7559_v33 = vunpack.c.h.bf16 %v4622_v16  ;;  %v4273_v38 = vmul.f32 %v4429_v61, %v7445_v35 }
 0x6e2   : > { %v4853_v41 = vadd.f32 %v4852_v19, %v4782_v34  ;;  %v4811_v23 = vadd.f32 %v4747_v18, %v4573_v1  ;;  %v4570_v17 = vadd.f32 %v4506_v11, %v4269_v2  ;;  %v7571_v50 = vunpack.c.l.bf16 %v4621_v14  ;;  %v4607_v18 = vld [vmem:[#allocation2 + $0x40] sm:$0xff]  ;;  %v4608_v2 = vld [vmem:[#allocation2 + $0x48] sm:$0xff] }
 0x6e3   : > { %v4750_v19 = vmul.f32 %v7453_v22, %v7557_v32  ;;  %v4751_v46 = vmul.f32 %v7455_v28, %v7559_v33  ;;  %v4904_v61 = vsel %vm245_vm1, %v4809_v39, 0.0  ;;  %v4574_v0 = vadd.f32 %v4510_v42, %v4273_v38 }
 0x6e4   : > { %4854 = vadd.xlane.f32.xlu1 %v4853_v41  ;;  %v4908_v34 = vsel %vm245_vm1, %v4811_v23, 0.0  ;;  %v4808_v36 = vadd.f32 %v4744_v29, %v4570_v17  ;;  %v4274_v41 = vmul.f32 %v4430_v53, %v7447_v58  ;;  %v4748_v11 = vmul.f32 %v7453_v22, %v7571_v50 }
 0x6e5   : > { %v4909_v25 = vadd.f32 %v4908_v34, %v4810_v27  ;;  %v4814_v48 = vadd.f32 %v4750_v19, %v4576_v7  ;;  %v4247_v27 = vmul.f32 %v7424_v15, %v7445_v35  ;;  %v4815_v53 = vadd.f32 %v4751_v46, %v4577_v52  ;;  %v4624_v46 = vld [vmem:[#allocation2 + $0xc8] sm:$0xff] }
 0x6e6   : > { %v4575_v1 = vadd.f32 %v4511_v43, %v4274_v41  ;;  %v4905_v3 = vadd.f32 %v4904_v61, %v4808_v36  ;;  %v4749_v14 = vmul.f32 %v7455_v28, %v7573_v51  ;;  %v4248_v23 = vmul.f32 %v7430_v55, %v7447_v58  ;;  %v4623_v43 = vld [vmem:[#allocation2 + $0xc0] sm:$0xff] }
 0x6e7   : > { %v4485_v44 = vmul.f32 %v7442_v10, %v7451_v13  ;;  %v7588_v63 = vunpack.c.h.bf16 %v4607_v18  ;;  %v4916_v15 = vsel %vm245_vm1, %v4815_v53, 0.0  ;;  %v4812_v17 = vadd.f32 %v4748_v11, %v4574_v0 }
 0x6e8   : > { %4910 = vadd.xlane.f32.xlu1 %v4909_v25  ;;  %4906 = vadd.xlane.f32.xlu0 %v4905_v3  ;;  %v4813_v29 = vadd.f32 %v4749_v14, %v4575_v1  ;;  %v7591_v9 = vunpack.c.h.bf16 %v4608_v2  ;;  %v4917_v16 = vadd.f32 %v4916_v15, %v4814_v48  ;;  %v4548_v34 = vadd.f32 %v4484_v31, %v4247_v27 }
 0x6e9   : > { %v4549_v30 = vadd.f32 %v4485_v44, %v4248_v23  ;;  %v4722_v55 = vmul.f32 %v7453_v22, %v7588_v63  ;;  %v4246_v36 = vmul.f32 %v7419_v8, %v7447_v58  ;;  %v4482_v19 = vmul.f32 %v7426_v20, %v7449_v5 }
 0x6ea   : > { %v4912_v60 = vsel %vm245_vm1, %v4813_v29, 0.0  ;;  %v4723_v25 = vmul.f32 %v7455_v28, %v7591_v9  ;;  %v4483_v38 = vmul.f32 %v7428_v24, %v7451_v13  ;;  %v7606_v41 = vunpack.c.l.bf16 %v4607_v18 }
 0x6eb   : > { %v4913_v7 = vadd.f32 %v4912_v60, %v4812_v17  ;;  %v4786_v52 = vadd.f32 %v4722_v55, %v4548_v34  ;;  %v7608_v42 = vunpack.c.l.bf16 %v4608_v2  ;;  %v4546_v8 = vadd.f32 %v4482_v19, %v4245_v47 }
 0x6ec   : > { %4918 = vadd.xlane.f32.xlu1 %v4917_v16  ;;  %v4787_v39 = vadd.f32 %v4723_v25, %v4549_v30  ;;  %v4547_v48 = vadd.f32 %v4483_v38, %v4246_v36  ;;  %v4280_v61 = vmul.f32 %v7520_v45, %v7447_v58  ;;  %v4516_v0 = vmul.f32 %v7557_v32, %v7449_v5  ;;  %v4609_v36 = vld [vmem:[#allocation2 + $0x50] sm:$0xff]  ;;  %v4610_v38 = vld [vmem:[#allocation2 + $0x58] sm:$0xff] }
 0x6ed   : > { %4914 = vadd.xlane.f32.xlu0 %v4913_v7  ;;  %v4720_v18 = vmul.f32 %v7453_v22, %v7606_v41  ;;  %v4721_v27 = vmul.f32 %v7455_v28, %v7608_v42  ;;  %v4517_v40 = vmul.f32 %v7559_v33, %v7451_v13  ;;  %v7623_v53 = vunpack.c.h.bf16 %v4623_v43 }
 0x6ee   : > { %v4860_v1 = vsel %vm245_vm1, %v4787_v39, 0.0  ;;  %v4580_v3 = vadd.f32 %v4516_v0, %v4279_v59  ;;  %v7625_v11 = vunpack.c.h.bf16 %v4624_v46  ;;  %v4277_v31 = vmul.f32 %v7539_v56, %v7445_v35 }
 0x6ef   : > { %v4861_v2 = vadd.f32 %v4860_v1, %v4786_v52  ;;  %v4784_v45 = vadd.f32 %v4720_v18, %v4546_v8  ;;  %v4785_v14 = vadd.f32 %v4721_v27, %v4547_v48  ;;  %v4581_v23 = vadd.f32 %v4517_v40, %v4280_v61 }
 0x6f0   : > { %v4754_v44 = vmul.f32 %v7453_v22, %v7623_v53  ;;  %v4755_v15 = vmul.f32 %v7455_v28, %v7625_v11  ;;  %v4278_v17 = vmul.f32 %v7541_v26, %v7447_v58  ;;  %v4514_v29 = vmul.f32 %v7571_v50, %v7449_v5 }
 0x6f1   : > { %4862 = vadd.xlane.f32.xlu1 %v4861_v2  ;;  %v4856_v16 = vsel %vm245_vm1, %v4785_v14, 0.0  ;;  %v4515_v34 = vmul.f32 %v7573_v51, %v7451_v13  ;;  %v7640_v30 = vunpack.c.l.bf16 %v4623_v43  ;;  %v7642_v56 = vunpack.c.l.bf16 %v4624_v46 }
 0x6f2   : > { %v4857_v55 = vadd.f32 %v4856_v16, %v4784_v45  ;;  %v4818_v60 = vadd.f32 %v4754_v44, %v4580_v3  ;;  %v4819_v25 = vadd.f32 %v4755_v15, %v4581_v23  ;;  %v4578_v47 = vadd.f32 %v4514_v29, %v4277_v31  ;;  %v4625_v31 = vld [vmem:[#allocation2 + $0xd0] sm:$0xff]  ;;  %v4626_v29 = vld [vmem:[#allocation2 + $0xd8] sm:$0xff] }
 0x6f3   : > { %v4579_v7 = vadd.f32 %v4515_v34, %v4278_v17  ;;  %v4752_v26 = vmul.f32 %v7453_v22, %v7640_v30  ;;  %v4753_v52 = vmul.f32 %v7455_v28, %v7642_v56  ;;  %v4251_v19 = vmul.f32 %v7432_v21, %v7445_v35 }
 0x6f4   : > { %4858 = vadd.xlane.f32.xlu0 %v4857_v55  ;;  %v4924_v39 = vsel %vm245_vm1, %v4819_v25, 0.0  ;;  %v4252_v59 = vmul.f32 %v7442_v10, %v7447_v58  ;;  %v4488_v43 = vmul.f32 %v7588_v63, %v7449_v5  ;;  %v4489_v46 = vmul.f32 %v7591_v9, %v7451_v13 }
 0x6f5   : > { %v4925_v8 = vadd.f32 %v4924_v39, %v4818_v60  ;;  %v4816_v48 = vadd.f32 %v4752_v26, %v4578_v47  ;;  %v4817_v61 = vadd.f32 %v4753_v52, %v4579_v7  ;;  %v7657_v0 = vunpack.c.h.bf16 %v4609_v36 }
 0x6f6   : > { %v4552_v1 = vadd.f32 %v4488_v43, %v4251_v19  ;;  %v4553_v21 = vadd.f32 %v4489_v46, %v4252_v59  ;;  %v7659_v18 = vunpack.c.h.bf16 %v4610_v38  ;;  %v4249_v27 = vmul.f32 %v7426_v20, %v7445_v35 }
 0x6f7   : > { %4926 = vadd.xlane.f32.xlu1 %v4925_v8  ;;  %v4920_v10 = vsel %vm245_vm1, %v4817_v61, 0.0  ;;  %v4726_v40 = vmul.f32 %v7453_v22, %v7657_v0  ;;  %v4250_v2 = vmul.f32 %v7428_v24, %v7447_v58  ;;  %v4486_v3 = vmul.f32 %v7606_v41, %v7449_v5 }
 0x6f8   : > { %v4921_v45 = vadd.f32 %v4920_v10, %v4816_v48  ;;  %v4727_v14 = vmul.f32 %v7455_v28, %v7659_v18  ;;  %v4487_v23 = vmul.f32 %v7608_v42, %v7451_v13  ;;  %v7674_v20 = vunpack.c.l.bf16 %v4609_v36 }
 0x6f9   : > { %v4790_v44 = vadd.f32 %v4726_v40, %v4552_v1  ;;  %v4550_v15 = vadd.f32 %v4486_v3, %v4249_v27  ;;  %v7676_v17 = vunpack.c.l.bf16 %v4610_v38  ;;  %v4283_v24 = vmul.f32 %v7557_v32, %v7445_v35  ;;  %v4611_v3 = vld [vmem:[#allocation2 + $0x60] sm:$0xff] }
 0x6fa   : > { %4922 = vadd.xlane.f32.xlu0 %v4921_v45  ;;  %v4791_v16 = vadd.f32 %v4727_v14, %v4553_v21  ;;  %v4551_v34 = vadd.f32 %v4487_v23, %v4250_v2  ;;  %v4724_v55 = vmul.f32 %v7453_v22, %v7674_v20  ;;  %v4284_v60 = vmul.f32 %v7559_v33, %v7447_v58 }
 0x6fb   : > { %v4725_v25 = vmul.f32 %v7455_v28, %v7676_v17  ;;  %v4520_v47 = vmul.f32 %v7623_v53, %v7449_v5  ;;  %v4521_v36 = vmul.f32 %v7625_v11, %v7451_v13  ;;  %v7690_v32 = vunpack.c.h.bf16 %v4625_v31 }
 0x6fc   : > { %v4868_v7 = vsel %vm245_vm1, %v4791_v16, 0.0  ;;  %v4788_v26 = vadd.f32 %v4724_v55, %v4550_v15  ;;  %v7693_v52 = vunpack.c.h.bf16 %v4626_v29  ;;  %v4281_v19 = vmul.f32 %v7571_v50, %v7445_v35 }
 0x6fd   : > { %v4869_v33 = vadd.f32 %v4868_v7, %v4790_v44  ;;  %v4789_v38 = vadd.f32 %v4725_v25, %v4551_v34  ;;  %v4584_v39 = vadd.f32 %v4520_v47, %v4283_v24  ;;  %v4585_v59 = vadd.f32 %v4521_v36, %v4284_v60  ;;  %v4612_v44 = vld [vmem:[#allocation2 + $0x68] sm:$0xff] }
 0x6fe   : > { %v4758_v43 = vmul.f32 %v7453_v22, %v7690_v32  ;;  %v4759_v46 = vmul.f32 %v7455_v28, %v7693_v52  ;;  %v4282_v8 = vmul.f32 %v7573_v51, %v7447_v58  ;;  %v4518_v48 = vmul.f32 %v7640_v30, %v7449_v5 }
 0x6ff   : > { %4870 = vadd.xlane.f32.xlu1 %v4869_v33  ;;  %v4864_v61 = vsel %vm245_vm1, %v4789_v38, 0.0  ;;  %v4519_v50 = vmul.f32 %v7642_v56, %v7451_v13  ;;  %v7708_v1 = vunpack.c.l.bf16 %v4625_v31  ;;  %v7710_v21 = vunpack.c.l.bf16 %v4626_v29 }
 0x700   : > { %v4865_v27 = vadd.f32 %v4864_v61, %v4788_v26  ;;  %v4822_v10 = vadd.f32 %v4758_v43, %v4584_v39  ;;  %v4823_v40 = vadd.f32 %v4759_v46, %v4585_v59  ;;  %v4582_v2 = vadd.f32 %v4518_v48, %v4281_v19  ;;  %v4627_v59 = vld [vmem:[#allocation2 + $0xe0] sm:$0xff]  ;;  %v4628_v48 = vld [vmem:[#allocation2 + $0xe8] sm:$0xff] }
 0x701   : > { %v4583_v45 = vadd.f32 %v4519_v50, %v4282_v8  ;;  %v4756_v51 = vmul.f32 %v7453_v22, %v7708_v1  ;;  %v4757_v14 = vmul.f32 %v7455_v28, %v7710_v21  ;;  %v4255_v23 = vmul.f32 %v7588_v63, %v7445_v35 }
 0x702   : > { %4866 = vadd.xlane.f32.xlu0 %v4865_v27  ;;  %v4932_v31 = vsel %vm245_vm1, %v4823_v40, 0.0  ;;  %v4256_v15 = vmul.f32 %v7591_v9, %v7447_v58  ;;  %v4492_v24 = vmul.f32 %v7657_v0, %v7449_v5  ;;  %v4493_v29 = vmul.f32 %v7659_v18, %v7451_v13 }
 0x703   : > { %v4933_v16 = vadd.f32 %v4932_v31, %v4822_v10  ;;  %v4820_v34 = vadd.f32 %v4756_v51, %v4582_v2  ;;  %v4821_v55 = vadd.f32 %v4757_v14, %v4583_v45  ;;  %v7725_v60 = vunpack.c.h.bf16 %v4611_v3 }
 0x704   : > { %v4556_v25 = vadd.f32 %v4492_v24, %v4255_v23  ;;  %v4557_v63 = vadd.f32 %v4493_v29, %v4256_v15  ;;  %v7727_v47 = vunpack.c.h.bf16 %v4612_v44  ;;  %v4253_v36 = vmul.f32 %v7606_v41, %v7445_v35 }
 0x705   : > { %4934 = vadd.xlane.f32.xlu1 %v4933_v16  ;;  %v4928_v9 = vsel %vm245_vm1, %v4821_v55, 0.0  ;;  %v4730_v7 = vmul.f32 %v7453_v22, %v7725_v60  ;;  %v4254_v26 = vmul.f32 %v7608_v42, %v7447_v58  ;;  %v4490_v19 = vmul.f32 %v7674_v20, %v7449_v5 }
 0x706   : > { %v4929_v33 = vadd.f32 %v4928_v9, %v4820_v34  ;;  %v4731_v38 = vmul.f32 %v7455_v28, %v7727_v47  ;;  %v4491_v39 = vmul.f32 %v7676_v17, %v7451_v13  ;;  %v7742_v41 = vunpack.c.l.bf16 %v4611_v3 }
 0x707   : > { %v4794_v43 = vadd.f32 %v4730_v7, %v4556_v25  ;;  %v4554_v46 = vadd.f32 %v4490_v19, %v4253_v36  ;;  %v7744_v8 = vunpack.c.l.bf16 %v4612_v44  ;;  %v4287_v42 = vmul.f32 %v7623_v53, %v7445_v35  ;;  %v4613_v19 = vld [vmem:[#allocation2 + $0x70] sm:$0xff] }
 0x708   : > { %4930 = vadd.xlane.f32.xlu0 %v4929_v33  ;;  %v4795_v61 = vadd.f32 %v4731_v38, %v4557_v63  ;;  %v4555_v50 = vadd.f32 %v4491_v39, %v4254_v26  ;;  %v4728_v27 = vmul.f32 %v7453_v22, %v7742_v41  ;;  %v4288_v10 = vmul.f32 %v7625_v11, %v7447_v58 }
 0x709   : > { %v4729_v40 = vmul.f32 %v7455_v28, %v7744_v8  ;;  %v4524_v2 = vmul.f32 %v7690_v32, %v7449_v5  ;;  %v4525_v3 = vmul.f32 %v7693_v52, %v7451_v13  ;;  %v7758_v53 = vunpack.c.h.bf16 %v4627_v59 }
 0x70a   : > { %v4876_v45 = vsel %vm245_vm1, %v4795_v61, 0.0  ;;  %v4792_v51 = vadd.f32 %v4728_v27, %v4554_v46  ;;  %v7761_v14 = vunpack.c.h.bf16 %v4628_v48  ;;  %v4285_v23 = vmul.f32 %v7640_v30, %v7445_v35 }
 0x70b   : > { %v4877_v11 = vadd.f32 %v4876_v45, %v4794_v43  ;;  %v4793_v44 = vadd.f32 %v4729_v40, %v4555_v50  ;;  %v4588_v31 = vadd.f32 %v4524_v2, %v4287_v42  ;;  %v4589_v15 = vadd.f32 %v4525_v3, %v4288_v10  ;;  %v4614_v43 = vld [vmem:[#allocation2 + $0x78] sm:$0xff] }
 0x70c   : > { %v4762_v24 = vmul.f32 %v7453_v22, %v7758_v53  ;;  %v4763_v29 = vmul.f32 %v7455_v28, %v7761_v14  ;;  %v4286_v16 = vmul.f32 %v7642_v56, %v7447_v58  ;;  %v4522_v34 = vmul.f32 %v7708_v1, %v7449_v5 }
 0x70d   : > { %4878 = vadd.xlane.f32.xlu1 %v4877_v11  ;;  %v4872_v55 = vsel %vm245_vm1, %v4793_v44, 0.0  ;;  %v4523_v30 = vmul.f32 %v7710_v21, %v7451_v13  ;;  %v7776_v25 = vunpack.c.l.bf16 %v4627_v59  ;;  %v7778_v63 = vunpack.c.l.bf16 %v4628_v48 }
 0x70e   : > { %v4873_v36 = vadd.f32 %v4872_v55, %v4792_v51  ;;  %v4826_v9 = vadd.f32 %v4762_v24, %v4588_v31  ;;  %v4827_v7 = vadd.f32 %v4763_v29, %v4589_v15  ;;  %v4586_v26 = vadd.f32 %v4522_v34, %v4285_v23  ;;  %v4629_v15 = vld [vmem:[#allocation2 + $0xf0] sm:$0xff]  ;;  %v4630_v34 = vld [vmem:[#allocation2 + $0xf8] sm:$0xff] }
 0x70f   : > { %v4587_v33 = vadd.f32 %v4523_v30, %v4286_v16  ;;  %v4760_v56 = vmul.f32 %v7453_v22, %v7776_v25  ;;  %v4761_v38 = vmul.f32 %v7455_v28, %v7778_v63  ;;  %v4259_v39 = vmul.f32 %v7657_v0, %v7445_v35 }
 0x710   : > { %4874 = vadd.xlane.f32.xlu0 %v4873_v36  ;;  %v4940_v59 = vsel %vm245_vm1, %v4827_v7, 0.0  ;;  %v4260_v46 = vmul.f32 %v7659_v18, %v7447_v58  ;;  %v4496_v42 = vmul.f32 %v7725_v60, %v7449_v5  ;;  %v4497_v48 = vmul.f32 %v7727_v47, %v7451_v13 }
 0x711   : > { %v4941_v61 = vadd.f32 %v4940_v59, %v4826_v9  ;;  %v4824_v50 = vadd.f32 %v4760_v56, %v4586_v26  ;;  %v4825_v27 = vadd.f32 %v4761_v38, %v4587_v33  ;;  %v7793_v10 = vunpack.c.h.bf16 %v4613_v19 }
 0x712   : > { %v4560_v40 = vadd.f32 %v4496_v42, %v4259_v39  ;;  %v4561_v0 = vadd.f32 %v4497_v48, %v4260_v46  ;;  %v7795_v2 = vunpack.c.h.bf16 %v4614_v43  ;;  %v4257_v3 = vmul.f32 %v7674_v20, %v7445_v35 }
 0x713   : > { %4942 = vadd.xlane.f32.xlu1 %v4941_v61  ;;  %v4936_v18 = vsel %vm245_vm1, %v4825_v27, 0.0  ;;  %v4734_v45 = vmul.f32 %v7453_v22, %v7793_v10  ;;  %v4258_v51 = vmul.f32 %v7676_v17, %v7447_v58  ;;  %v4494_v23 = vmul.f32 %v7742_v41, %v7449_v5 }
 0x714   : > { %v4937_v11 = vadd.f32 %v4936_v18, %v4824_v50  ;;  %v4735_v44 = vmul.f32 %v7455_v28, %v7795_v2  ;;  %v4495_v31 = vmul.f32 %v7744_v8, %v7451_v13  ;;  %v7810_v20 = vunpack.c.l.bf16 %v4613_v19 }
 0x715   : > { %v4798_v24 = vadd.f32 %v4734_v45, %v4560_v40  ;;  %v4558_v29 = vadd.f32 %v4494_v23, %v4257_v3  ;;  %v7812_v16 = vunpack.c.l.bf16 %v4614_v43  ;;  %v4291_v17 = vmul.f32 %v7690_v32, %v7445_v35 }
 0x716   : > { %4938 = vadd.xlane.f32.xlu0 %v4937_v11  ;;  %v4799_v55 = vadd.f32 %v4735_v44, %v4561_v0  ;;  %v4559_v30 = vadd.f32 %v4495_v31, %v4258_v51  ;;  %v4732_v36 = vmul.f32 %v7453_v22, %v7810_v20  ;;  %v4292_v9 = vmul.f32 %v7693_v52, %v7447_v58 }
 0x717   : > { %v4733_v7 = vmul.f32 %v7455_v28, %v7812_v16  ;;  %v4528_v26 = vmul.f32 %v7758_v53, %v7449_v5  ;;  %v4529_v19 = vmul.f32 %v7761_v14, %v7451_v13  ;;  %v7826_v32 = vunpack.c.h.bf16 %v4629_v15 }
 0x718   : > { %v4884_v33 = vsel %vm245_vm1, %v4799_v55, 0.0  ;;  %v4796_v56 = vadd.f32 %v4732_v36, %v4558_v29  ;;  %v7829_v38 = vunpack.c.h.bf16 %v4630_v34  ;;  %v4289_v39 = vmul.f32 %v7708_v1, %v7445_v35 }
 0x719   : > { %v4885_v52 = vadd.f32 %v4884_v33, %v4798_v24  ;;  %v4797_v43 = vadd.f32 %v4733_v7, %v4559_v30  ;;  %v4592_v59 = vadd.f32 %v4528_v26, %v4291_v17  ;;  %v4593_v46 = vadd.f32 %v4529_v19, %v4292_v9 }
 0x71a   : > { %v4766_v42 = vmul.f32 %v7453_v22, %v7826_v32  ;;  %v4767_v48 = vmul.f32 %v7455_v28, %v7829_v38  ;;  %v4290_v61 = vmul.f32 %v7710_v21, %v7447_v58  ;;  %v4526_v50 = vmul.f32 %v7776_v25, %v7449_v5 }
 0x71b   : > { %4886 = vadd.xlane.f32.xlu1 %v4885_v52  ;;  %v4880_v27 = vsel %vm245_vm1, %v4797_v43, 0.0  ;;  %v4527_v1 = vmul.f32 %v7778_v63, %v7451_v13  ;;  %v7844_v40 = vunpack.c.l.bf16 %v4629_v15  ;;  %v7846_v0 = vunpack.c.l.bf16 %v4630_v34 }
 0x71c   : > { %v4881_v3 = vadd.f32 %v4880_v27, %v4796_v56  ;;  %v4830_v18 = vadd.f32 %v4766_v42, %v4592_v59  ;;  %v4831_v45 = vadd.f32 %v4767_v48, %v4593_v46  ;;  %v4590_v51 = vadd.f32 %v4526_v50, %v4289_v39  ;;  %v7886_v46 = vld [vmem:[#allocation2 + $0x108] sm:$0xff] }
 0x71d   : > { %v4591_v23 = vadd.f32 %v4527_v1, %v4290_v61  ;;  %v4764_v21 = vmul.f32 %v7453_v22, %v7844_v40  ;;  %v4765_v11 = vmul.f32 %v7455_v28, %v7846_v0  ;;  %v4263_v44 = vmul.f32 %v7725_v60, %v7445_v35 }
 0x71e   : > { %4882 = vadd.xlane.f32.xlu0 %v4881_v3  ;;  %v4948_v31 = vsel %vm245_vm1, %v4831_v45, 0.0  ;;  %v4264_v15 = vmul.f32 %v7727_v47, %v7447_v58  ;;  %v4500_v24 = vmul.f32 %v7793_v10, %v7449_v5  ;;  %v4501_v29 = vmul.f32 %v7795_v2, %v7451_v13 }
 0x71f   : > { %v4949_v17 = vadd.f32 %v4948_v31, %v4830_v18  ;;  %v4828_v34 = vadd.f32 %v4764_v21, %v4590_v51  ;;  %v4829_v55 = vadd.f32 %v4765_v11, %v4591_v23  ;;  %v4738_v30 = vmul.f32 %v7453_v22, %v4195_v6  ;;  %v4380_v31 = vld [vmem:[#allocation2 + $0x88] sm:$0xff] }
 0x720   : > { %v4564_v60 = vadd.f32 %v4500_v24, %v4263_v44  ;;  %v4565_v36 = vadd.f32 %v4501_v29, %v4264_v15  ;;  %v4739_v9 = vmul.f32 %v7455_v28, %v4196_v12  ;;  %v4261_v47 = vmul.f32 %v7742_v41, %v7445_v35  ;;  %v7879_v41 = vld [vmem:[#allocation2 + $0x100] sm:$0xff]  ;;  %v4617_v15 = vld [vmem:[#allocation2 + $0x90] sm:$0xff] }
 0x721   : > { %4950 = vadd.xlane.f32.xlu1 %v4949_v17  ;;  %v4944_v7 = vsel %vm245_vm1, %v4829_v55, 0.0  ;;  %v4262_v26 = vmul.f32 %v7744_v8, %v7447_v58  ;;  %v4498_v19 = vmul.f32 %v7810_v20, %v7449_v5  ;;  %v4499_v6 = vmul.f32 %v7812_v16, %v7451_v13  ;;  %v4379_v44 = vld [vmem:[#allocation2 + $0x80] sm:$0xff] }
 0x722   : > { %v4945_v33 = vadd.f32 %v4944_v7, %v4828_v34  ;;  %v4802_v56 = vadd.f32 %v4738_v30, %v4564_v60  ;;  %v4803_v39 = vadd.f32 %v4739_v9, %v4565_v36  ;;  %v4736_v12 = vmul.f32 %v7453_v22, %v4193_v49  ;;  %v4618_v34 = vld [vmem:[#allocation2 + $0x98] sm:$0xff] }
 0x723   : > { %v4562_v52 = vadd.f32 %v4498_v19, %v4261_v47  ;;  %v4563_v43 = vadd.f32 %v4499_v6, %v4262_v26  ;;  %v4737_v8 = vmul.f32 %v7455_v28, %v4194_v54  ;;  %v4295_v59 = vmul.f32 %v7758_v53, %v7445_v35 }
 0x724   : > { %4946 = vadd.xlane.f32.xlu0 %v4945_v33  ;;  %v4892_v42 = vsel %vm245_vm1, %v4803_v39, 0.0  ;;  %v4296_v4 = vmul.f32 %v7761_v14, %v7447_v58  ;;  %v4532_v49 = vmul.f32 %v7826_v32, %v7449_v5  ;;  %v4533_v48 = vmul.f32 %v7829_v38, %v7451_v13 }
 0x725   : > { %v4893_v37 = vadd.f32 %v4892_v42, %v4802_v56  ;;  %v4800_v61 = vadd.f32 %v4736_v12, %v4562_v52  ;;  %v4801_v54 = vadd.f32 %v4737_v8, %v4563_v43  ;;  %v4693_v50 = vunpack.c.h.bf16 %v7879_v41 }
 0x726   : > { %v4596_v53 = vadd.f32 %v4532_v49, %v4295_v59  ;;  %v4597_v27 = vadd.f32 %v4533_v48, %v4296_v4  ;;  %v4694_v1 = vunpack.c.h.bf16 %v7886_v46  ;;  %v4293_v3 = vmul.f32 %v7776_v25, %v7445_v35 }
 0x727   : > { %4894 = vadd.xlane.f32.xlu1 %v4893_v37  ;;  %v4888_v14 = vsel %vm245_vm1, %v4801_v54, 0.0  ;;  %v4770_v18 = vmul.f32 %v7453_v22, %v4693_v50  ;;  %v4294_v45 = vmul.f32 %v7778_v63, %v7447_v58  ;;  %v4530_v51 = vmul.f32 %v7844_v40, %v7449_v5 }
 0x728   : > { %v4889_v23 = vadd.f32 %v4888_v14, %v4800_v61  ;;  %v4771_v21 = vmul.f32 %v7455_v28, %v4694_v1  ;;  %v4531_v25 = vmul.f32 %v7846_v0, %v7451_v13  ;;  %v4691_v11 = vunpack.c.l.bf16 %v7879_v41 }
 0x729   : > { %v4834_v24 = vadd.f32 %v4770_v18, %v4596_v53  ;;  %v4594_v29 = vadd.f32 %v4530_v51, %v4293_v3  ;;  %v4692_v63 = vunpack.c.l.bf16 %v7886_v46  ;;  %v4267_v17 = vmul.f32 %v7793_v10, %v7445_v35  ;;  %v4634_v18 = vld [vmem:[#allocation2 + $0x118] sm:$0xff] }
 0x72a   : > { %4890 = vadd.xlane.f32.xlu0 %v4889_v23  ;;  %v4835_v55 = vadd.f32 %v4771_v21, %v4597_v27  ;;  %v4595_v30 = vadd.f32 %v4531_v25, %v4294_v45  ;;  %v4768_v60 = vmul.f32 %v7453_v22, %v4691_v11  ;;  %v4268_v36 = vmul.f32 %v7795_v2, %v7447_v58 }
 0x72b   : > { %v4769_v9 = vmul.f32 %v7455_v28, %v4692_v63  ;;  %v4427_v47 = vunpack.c.h.bf16 %v4379_v44  ;;  %v4428_v7 = vunpack.c.h.bf16 %v4380_v31  ;;  %v4665_v26 = vunpack.c.h.bf16 %v4617_v15 }
 0x72c   : > { %v4956_v19 = vsel %vm245_vm1, %v4835_v55, 0.0  ;;  %v4832_v6 = vadd.f32 %v4768_v60, %v4594_v29  ;;  %v4666_v10 = vunpack.c.h.bf16 %v4618_v34  ;;  %v4265_v33 = vmul.f32 %v7810_v20, %v7445_v35 }
 0x72d   : > { %v4957_v56 = vadd.f32 %v4956_v19, %v4834_v24  ;;  %v4833_v39 = vadd.f32 %v4769_v9, %v4595_v30  ;;  %v4504_v12 = vmul.f32 %v7449_v5, %v4427_v47  ;;  %v4505_v52 = vmul.f32 %v7451_v13, %v4428_v7 }
 0x72e   : > { %v4742_v2 = vmul.f32 %v7453_v22, %v4665_v26  ;;  %v4743_v43 = vmul.f32 %v7455_v28, %v4666_v10  ;;  %v4266_v8 = vmul.f32 %v7812_v16, %v7447_v58  ;;  %v4425_v59 = vunpack.c.l.bf16 %v4379_v44  ;;  %v4633_v16 = vld [vmem:[#allocation2 + $0x110] sm:$0xff] }
 0x72f   : > { %4958 = vadd.xlane.f32.xlu1 %v4957_v56  ;;  %v4952_v42 = vsel %vm245_vm1, %v4833_v39, 0.0  ;;  %v4568_v4 = vadd.f32 %v4504_v12, %v4267_v17  ;;  %v4569_v49 = vadd.f32 %v4505_v52, %v4268_v36  ;;  %v4426_v20 = vunpack.c.l.bf16 %v4380_v31 }
 0x730   : > { %v4953_v48 = vadd.f32 %v4952_v42, %v4832_v6  ;;  %v4502_v37 = vmul.f32 %v7449_v5, %v4425_v59  ;;  %v4663_v61 = vunpack.c.l.bf16 %v4617_v15  ;;  %v4664_v54 = vunpack.c.l.bf16 %v4618_v34 }
 0x731   : > { %v4806_v53 = vadd.f32 %v4742_v2, %v4568_v4  ;;  %v4807_v27 = vadd.f32 %v4743_v43, %v4569_v49  ;;  %v4503_v3 = vmul.f32 %v7451_v13, %v4426_v20  ;;  %v4299_v14 = vmul.f32 %v7826_v32, %v7445_v35 }
 0x732   : > { %4954 = vadd.xlane.f32.xlu0 %v4953_v48  ;;  %v4566_v45 = vadd.f32 %v4502_v37, %v4265_v33  ;;  %v4740_v51 = vmul.f32 %v7453_v22, %v4663_v61  ;;  %v4741_v23 = vmul.f32 %v7455_v28, %v4664_v54  ;;  %v4300_v21 = vmul.f32 %v7829_v38, %v7447_v58 }
 0x733   : > { %v4900_v25 = vsel %vm245_vm1, %v4807_v27, 0.0  ;;  %v4567_v44 = vadd.f32 %v4503_v3, %v4266_v8  ;;  %v4536_v31 = vmul.f32 %v4693_v50, %v7449_v5  ;;  %v4537_v32 = vmul.f32 %v4694_v1, %v7451_v13 }
 0x734   : > { %v4901_v15 = vadd.f32 %v4900_v25, %v4806_v53  ;;  %v4804_v24 = vadd.f32 %v4740_v51, %v4566_v45  ;;  %v4697_v29 = vunpack.c.h.bf16 %v4633_v16  ;;  %v4698_v17 = vunpack.c.h.bf16 %v4634_v18 }
 0x735   : > { %v4805_v34 = vadd.f32 %v4741_v23, %v4567_v44  ;;  %v4600_v55 = vadd.f32 %v4536_v31, %v4299_v14  ;;  %v4601_v30 = vadd.f32 %v4537_v32, %v4300_v21  ;;  %v4297_v38 = vmul.f32 %v7844_v40, %v7445_v35 }
 0x736   : > { %4902 = vadd.xlane.f32.xlu1 %v4901_v15  ;;  %v4774_v60 = vmul.f32 %v7453_v22, %v4697_v29  ;;  %v4775_v36 = vmul.f32 %v7455_v28, %v4698_v17  ;;  %v4298_v50 = vmul.f32 %v7846_v0, %v7447_v58  ;;  %v4534_v46 = vmul.f32 %v4691_v11, %v7449_v5 }
 0x737   : > { %v4896_v1 = vsel %vm245_vm1, %v4805_v34, 0.0  ;;  %v4535_v9 = vmul.f32 %v4692_v63, %v7451_v13  ;;  %v4695_v47 = vunpack.c.l.bf16 %v4633_v16  ;;  %v4696_v7 = vunpack.c.l.bf16 %v4634_v18 }
 0x738   : > { %v4897_v26 = vadd.f32 %v4896_v1, %v4804_v24  ;;  %v4838_v35 = vadd.f32 %v4774_v60, %v4600_v55  ;;  %v4839_v40 = vadd.f32 %v4775_v36, %v4601_v30  ;;  %v4598_v19 = vadd.f32 %v4534_v46, %v4297_v38 }
 0x739   : > { %v4599_v6 = vadd.f32 %v4535_v9, %v4298_v50  ;;  %v4772_v10 = vmul.f32 %v7453_v22, %v4695_v47  ;;  %v4773_v33 = vmul.f32 %v7455_v28, %v4696_v7  ;;  %v5003_v14 = vand.u32 127, %v4227_v62 }
 0x73a   : > { %4898 = vadd.xlane.f32.xlu0 %v4897_v26  ;;  %v4964_v58 = vsel %vm245_vm1, %v4839_v40, 0.0 }
 0x73b   : > { %v4965_v0 = vadd.f32 %v4964_v58, %v4838_v35  ;;  %v4836_v5 = vadd.f32 %v4772_v10, %v4598_v19  ;;  %v4837_v41 = vadd.f32 %v4773_v33, %v4599_v6  ;;  %v5008_v18 = vadd.s32 4294967288, %v5003_v14 }
 0x73c   : > { %v7987_v21 = vsub.s32 %v5003_v14, %v7415_v57 }
 0x73d   : > { %4966 = vadd.xlane.f32.xlu1 %v4965_v0  ;;  %v4960_v13 = vsel %vm245_vm1, %v4837_v41, 0.0  ;;  %v7984_v51 = vsub.s32 %v5008_v18, %v7415_v57  ;;  %vm5154_vm1 = vcmask 1043459  }
 0x73e   : > { %v4961_v11 = vadd.f32 %v4960_v13, %v4836_v5 }
 0x740   : > { %4962 = vadd.xlane.f32.xlu0 %v4961_v11 }
 0x756   : > { %v4851_v63 = vpop.xlane.xlu1 %4850 }
 0x757   : > { %v5018_v62 = vrot.slane %v4851_v63, %v7987_v21 }
 0x768   : > { %v4843_v56 = vpop.xlane.xlu0 %4842 }
 0x769   : > { %v5007_v32 = vrot.slane %v4843_v56, %v7987_v21 }
 0x76c   : > { %v4847_v12 = vpop.xlane.xlu0 %4846 }
 0x76d   : > { %v5012_v44 = vrot.slane %v4847_v12, %v7984_v51 }
 0x76f   : > { %v5014_v17 = vsel %vm5013_vm13, %v5012_v44, %v5007_v32 }
 0x771   : > { %v4855_v39 = vpop.xlane.xlu1 %4854 }
 0x772   : > { %v5022_v25 = vrot.slane %v4855_v39, %v7984_v51 }
 0x774   : > { %v5023_v57 = vsel %vm5013_vm13, %v5022_v25, %v5018_v62 }
 0x775   : > { %v7962_v52 = vpop.xlane.xlu1 %4910  ;;  %v7964_v22 = vpop.xlane.xlu0 %4906  ;;  %v5151_v47 = vsel %vm5150_vm14, %v5023_v57, %v5014_v17 }
 0x776   : > { %v5085_v40 = vrot.slane %v7962_v52, %v7984_v51  ;;  %v5081_v19 = vrot.slane %v7964_v22, %v7987_v21 }
 0x779   : > { %v4919_v28 = vpop.xlane.xlu1 %4918 }
 0x77a   : > { %v4915_v2 = vpop.xlane.xlu0 %4914  ;;  %v5094_v34 = vrot.slane %v4919_v28, %v7984_v51 }
 0x77b   : > { %v5090_v55 = vrot.slane %v4915_v2, %v7987_v21 }
 0x77d   : > { %v5095_v6 = vsel %vm5013_vm13, %v5094_v34, %v5090_v55 }
 0x77e   : > { %v4863_v43 = vpop.xlane.xlu1 %4862 }
 0x77f   : > { %v5031_v24 = vrot.slane %v4863_v43, %v7984_v51 }
 0x781   : > { %v4859_v8 = vpop.xlane.xlu0 %4858 }
 0x782   : > { %v5027_v29 = vrot.slane %v4859_v8, %v7987_v21 }
 0x784   : > { %v7966_v59 = vpop.xlane.xlu1 %4926  ;;  %v5032_v46 = vsel %vm5013_vm13, %v5031_v24, %v5027_v29  ;;  %v4969_v24 = vld [vmem:[%s6274_s17 + $0x8] sm:$0xff] }
 0x785   : > { %v5153_v33 = vsel %vm5152_vm15, %v5032_v46, %v5151_v47  ;;  %v5103_v58 = vrot.slane %v7966_v59, %v7984_v51 }
 0x787   : > { %v7968_v42 = vpop.xlane.xlu0 %4922 }
 0x788   : > { %v5099_v0 = vrot.slane %v7968_v42, %v7987_v21 }
 0x78a   : > { %v5104_v59 = vsel %vm5013_vm13, %v5103_v58, %v5099_v0 }
 0x78c   : > { %v4871_v4 = vpop.xlane.xlu1 %4870 }
 0x78d   : > { %v5040_v30 = vrot.slane %v4871_v4, %v7984_v51 }
 0x78f   : > { %v4867_v49 = vpop.xlane.xlu0 %4866 }
 0x790   : > { %v5036_v38 = vrot.slane %v4867_v49, %v7987_v21 }
 0x792   : > { %v7970_v20 = vpop.xlane.xlu1 %4934  ;;  %v5041_v10 = vsel %vm5013_vm13, %v5040_v30, %v5036_v38 }
 0x793   : > { %v5112_v41 = vrot.slane %v7970_v20, %v7984_v51  ;;  %v5155_v56 = vsel %vm5154_vm1, %v5041_v10, %v5153_v33  ;;  %v4968_v20 = vld [vmem:[%s6274_s17] sm:$0xff]  ;;  %s6099_s17 = scalar_lea.vmem %s8075_s26, 256 }
 0x794   : > { %p6100_p12 = scmp.ne.s32.totalorder %s8075_s26, %s6099_s17  ;;  %p6107_p2 = scmp.lt.s32.totalorder %s6105_s11, %s6099_s17 }
 0x795   : > { %v7972_v48 = vpop.xlane.xlu0 %4930 }
 0x796   : > { %v5108_v13 = vrot.slane %v7972_v48, %v7987_v21  ;;  %v5086_v48 = vsel %vm5013_vm13, %v5085_v40, %v5081_v19  ;;  %p6101_p13 = pnand %p6100_p12, %p6246_p5  ;;  %p6108_p3 = por %p6107_p2, %p6106_p1 }
 0x798   : > { %p6102_p0 = pneg %p6101_p13 }
 0x79a   : > { %v4879_v37 = vpop.xlane.xlu1 %4878  ;;  %p6109_p4 = pnand %p6108_p3, %p6102_p0 }
 0x79b   : > { %v5049_v60 = vrot.slane %v4879_v37, %v7984_v51  ;;  %v5113_v37 = vsel %vm5013_vm13, %v5112_v41, %v5108_v13 }
 0x79d   : > { %v4875_v61 = vpop.xlane.xlu0 %4874 }
 0x79e   : > { %v5045_v36 = vrot.slane %v4875_v61, %v7987_v21 }
 0x7a0   : > { %v7974_v54 = vpop.xlane.xlu1 %4942  ;;  %v5050_v5 = vsel %vm5013_vm13, %v5049_v60, %v5045_v36 }
 0x7a1   : > { %v5121_v39 = vrot.slane %v7974_v54, %v7984_v51  ;;  %v5157_v28 = vsel %vm5156_vm2, %v5050_v5, %v5155_v56 }
 0x7a3   : > { %v7976_v53 = vpop.xlane.xlu0 %4938 }
 0x7a4   : > { %v5117_v12 = vrot.slane %v7976_v53, %v7987_v21 }
 0x7a8   : > { %v4887_v27 = vpop.xlane.xlu1 %4886 }
 0x7a9   : > { %v5058_v1 = vrot.slane %v4887_v27, %v7984_v51  ;;  %v5164_v27 = vsel %vm5150_vm14, %v5095_v6, %v5086_v48 }
 0x7ab   : > { %v4883_v3 = vpop.xlane.xlu0 %4882 }
 0x7ac   : > { %v5054_v9 = vrot.slane %v4883_v3, %v7987_v21  ;;  %v5122_v3 = vsel %vm5013_vm13, %v5121_v39, %v5117_v12 }
 0x7ae   : > { %v7979_v16 = vpop.xlane.xlu1 %4950  ;;  %v5059_v11 = vsel %vm5013_vm13, %v5058_v1, %v5054_v9 }
 0x7af   : > { %v5130_v2 = vrot.slane %v7979_v16, %v7984_v51  ;;  %v5159_v42 = vsel %vm5158_vm3, %v5059_v11, %v5157_v28  ;;  %v5165_v16 = vsel %vm5152_vm15, %v5104_v59, %v5164_v27 }
 0x7b0   : > { %v5166_v25 = vsel %vm5154_vm1, %v5113_v37, %v5165_v16 }
 0x7b1   : > { %v7981_v45 = vpop.xlane.xlu0 %4946  ;;  %v5167_v62 = vsel %vm5156_vm2, %v5122_v3, %v5166_v25 }
 0x7b2   : > { %v5126_v43 = vrot.slane %v7981_v45, %v7987_v21 }
 0x7b4   : > { %v4895_v23 = vpop.xlane.xlu1 %4894  ;;  %v5131_v18 = vsel %vm5013_vm13, %v5130_v2, %v5126_v43 }
 0x7b5   : > { %v5067_v7 = vrot.slane %v4895_v23, %v7984_v51 }
 0x7b7   : > { %v4891_v31 = vpop.xlane.xlu0 %4890 }
 0x7b8   : > { %v5063_v26 = vrot.slane %v4891_v31, %v7987_v21 }
 0x7ba   : > { %v5068_v52 = vsel %vm5013_vm13, %v5067_v7, %v5063_v26 }
 0x7bb   : > { %v5161_v61 = vsel %vm5160_vm4, %v5068_v52, %v5159_v42 }
 0x7bc   : > { %v7993_v15 = vpop.xlane.xlu1 %4958 }
 0x7bd   : > { %v5139_v4 = vrot.slane %v7993_v15, %v7984_v51  ;;  %v5168_v15 = vsel %vm5158_vm3, %v5131_v18, %v5167_v62 }
 0x7bf   : > { %v4955_v50 = vpop.xlane.xlu0 %4954 }
 0x7c0   : > { %v5135_v49 = vrot.slane %v4955_v50, %v7987_v21 }
 0x7c2   : > { %v5140_v44 = vsel %vm5013_vm13, %v5139_v4, %v5135_v49 }
 0x7c3   : > { %v4903_v35 = vpop.xlane.xlu1 %4902 }
 0x7c4   : > { %v5076_v63 = vrot.slane %v4903_v35, %v7984_v51 }
 0x7c7   : > { %v4899_v22 = vpop.xlane.xlu0 %4898 }
 0x7c8   : > { %v5072_v8 = vrot.slane %v4899_v22, %v7987_v21 }
 0x7ca   : > { %v5077_v54 = vsel %vm5013_vm13, %v5076_v63, %v5072_v8  ;;  %v4967_v53 = vpop.xlane.xlu1 %4966 }
 0x7cb   : > { %v5163_v14 = vsel %vm5162_vm5, %v5077_v54, %v5161_v61  ;;  %v5148_v23 = vrot.slane %v4967_v53, %v7984_v51  ;;  %v5169_v51 = vsel %vm5160_vm4, %v5140_v44, %v5168_v15 }
 0x7cc   : > { %v5173_v45 = vadd.f32 %v5163_v14, %v4968_v20 }
 0x7cd   : > { %v4963_v31 = vpop.xlane.xlu0 %4962 }
 0x7ce   : > { %5175 = vst.msk [vmem:[%s6629_s25] sm:$0xff] %vm596_vm0, %v5173_v45  ;;  %v5144_v32 = vrot.slane %v4963_v31, %v7987_v21 }
 0x7d0   : > { %v5149_v29 = vsel %vm5013_vm13, %v5148_v23, %v5144_v32 }
 0x7d1   : > { %v5170_v57 = vsel %vm5162_vm5, %v5149_v29, %v5169_v51 }
 0x7d2   : > { %v5174_v21 = vadd.f32 %v5170_v57, %v4969_v24 }
 0x7d4   : > { %5176 = vst.msk [vmem:[%s6629_s25 + $0x8] sm:$0xff] %vm596_vm0, %v5174_v21 }
 0x7d5   : > { %6112 = shalt.err (!%p6109_p4)
}
 0x7d6   : > { %s6113_s30 = scalar_lea.hbm %s8073_s8, 256  ;;  %s6117_s13 = scalar_lea.hbm %s8127_s5, 512 }
 0x7d7   : > { %p6114_p7 = scmp.ne.s32.totalorder %s8073_s8, %s6113_s30  ;;  %p6118_p10 = scmp.lt.u32.totalorder %s8073_s8, %s8127_s5 }
 0x7d8   : > { %p6119_p11 = scmp.lt.u32.totalorder %s6117_s13, %s6113_s30  ;;  %p6121_p13 = scmp.lt.u32.totalorder %s6113_s30, %s8073_s8 }
 0x7d9   : > { %p6115_p8 = pnand %p6114_p7, %p6246_p5 }
 0x7da   : > { %p6120_p12 = por %p6119_p11, %p6118_p10 }
 0x7db   : > { %p6116_p9 = pneg %p6115_p8 }
 0x7dc   : > { %p6122_p0 = por %p6121_p13, %p6120_p12 }
 0x7de   : > { %p6123_p1 = pnand %p6122_p0, %p6116_p9 }
 0x7e0   : > { %6126 = shalt.err (!%p6123_p1)
}
 0x7e1   : > { %s6176_s16 = smov 128   ;;  %s6177_s23 = smov 8  }
 0x7e2   : > { %5957 = dma.vmem_to_hbm [thread:$0]  (%p6246_p5), %s8075_s26, 256, %s8073_s8, %s8081_s22, %s6176_s16, %s6176_s16, %s6177_s23  }
 0x7e3 PF: > { %p5963_p2 = scmp.ge.s32.totalorder %s6165_s21, 2  ;;  %s5206_s6 = sand.u32 1, %s6153_s18  }
 0x7e4   : > { %s5207_s7 = scalar_lea.sflag [#allocation4], %s5206_s6 }
 0x7e5   : > { %p5960_p3 = pnand %p5963_p2, %p6250_p6 }
 0x7e7   : > { %6148 = dma.done.wait (!%p5960_p3), %s5207_s7, 256  }
 0x7e8   : > { %6150 = vsyncadd (!%p5960_p3), %s5207_s7, 4294967040  ;;  %p15_p4 = scmp.ge.s32.totalorder %s6233_s24, 4   ;;  %s8138_s18 = smov %s6157_s19 }
 0x7e9   : > { %s8139_s19 = smov %s6161_s20  ;;  %s8140_s20 = smov %s6244_s27 }
 0x7ea   : > { %s8141_s21 = smov %s6233_s24  ;;  %17 = sbr.rel (!%p15_p4) target bundleno = 3 (0x3), region = 111 }
 0x7f1   :  { %5212 = vsyncpa [#allocation4], 1 }
 0x7f2   :  { %5214 = vsyncpa [#allocation4 + $0x1], 1 }

</bundles_post_ra>
